<compile_context>
chip_gen: v7x
topology: tpu7x:2x2x1
jax: 0.10.0
libtpu: 0.0.40
codegen_flags: <defaults>
</compile_context>

<pallas_src>
import functools

import jax
import jax.numpy as jnp
from jax import lax
from jax.experimental import pallas as pl
from jax.experimental.pallas import tpu as pltpu

LEAKY_SLOPE = 0.01   # nn.LeakyReLU() default negative_slope
BN_EPS = 1e-5        # nn.BatchNorm2d default eps
_LANES = 128


def _round_up(x, m):
    return (x + m - 1) // m * m


# ---------------------------------------------------------------------------
# Fused kernel: grid = (phase, batch)
#   phase 0: conv1 (im2col matmul) + BN sum / sumsq accumulation -> VMEM scratch
#   phase 1: BN + LeakyReLU + conv2 (4x4 stride 2) + shortcut (avgpool+1x1) + add
# ---------------------------------------------------------------------------
def _fused_kernel(xq_ref, xavg_ref, w1_ref, b1_ref, g_ref, bt_ref,
                  w2_ref, b2_ref, wb_ref, bb_ref,
                  o_ref, y1_scr, sum_scr, sq_scr):
    p = pl.program_id(0)
    n = pl.program_id(1)

    nb, par, hh, wh, chp = y1_scr.shape          # par == 4 (2x2 spatial parity)
    cin = xq_ref.shape[-1]
    coutp = o_ref.shape[-1]
    m_total = float(nb * par * hh * wh)          # N*H*W elements for BN stats

    # -------------------- phase 0: conv1 + BN statistics --------------------
    @pl.when(p == 0)
    def _phase0():
        @pl.when(n == 0)
        def _init():
            sum_scr[...] = jnp.zeros_like(sum_scr)
            sq_scr[...] = jnp.zeros_like(sq_scr)

        xq = xq_ref[0]                           # (4, hh+1, wh+1, cin) bf16
        # im2col in parity order: rows = (ph, pw, a, b), cols = (dh, dw, cin)
        rows = []
        for ph in range(2):
            for pw in range(2):
                cols = []
                for dh in range(3):
                    for dw in range(3):
                        qh, s = (ph + dh) % 2, (ph + dh) // 2
                        qw, t = (pw + dw) % 2, (pw + dw) // 2
                        cols.append(xq[2 * qh + qw, s:s + hh, t:t + wh, :]
                                    .reshape(hh * wh, cin))
                rows.append(jnp.concatenate(cols, axis=-1))      # (hh*wh, 9*cin)
        patch = jnp.concatenate(rows, axis=0)                    # (4*hh*wh, 9*cin)

        z = jnp.dot(patch, w1_ref[...], preferred_element_type=jnp.float32)
        z = z + b1_ref[...]                                      # (4*hh*wh, chp) f32

        y1_scr[n] = z.reshape(par, hh, wh, chp)                  # parity-major store
        sum_scr[...] += jnp.sum(z, axis=0, keepdims=True)
        sq_scr[...] += jnp.sum(z * z, axis=0, keepdims=True)

    # ------------- phase 1: BN + LeakyReLU + conv2 + shortcut + add ----------
    @pl.when(p == 1)
    def _phase1():
        inv_m = 1.0 / m_total
        mean = sum_scr[...] * inv_m                              # (1, chp)
        var = jnp.maximum(sq_scr[...] * inv_m - mean * mean, 0.0)
        scale = lax.rsqrt(var + BN_EPS) * g_ref[...]
        shift = bt_ref[...] - mean * scale

        z = y1_scr[n]                                            # (4, hh, wh, chp) f32
        y = z * scale.reshape(1, 1, 1, chp) + shift.reshape(1, 1, 1, chp)
        y = jnp.where(y >= 0.0, y, LEAKY_SLOPE * y).astype(jnp.bfloat16)

        # Parity planes of the zero-padded (pad=1) hidden activation:
        # ypq[qh,qw][u, v, :] = ypad[2u+qh, 2v+qw, :]
        zr = jnp.zeros((1, wh, chp), jnp.bfloat16)
        zc = jnp.zeros((hh + 1, 1, chp), jnp.bfloat16)
        ypq = []
        for qh in range(2):
            for qw in range(2):
                plane = y[2 * (1 - qh) + (1 - qw)]               # (hh, wh, chp)
                plane = (jnp.concatenate([plane, zr], axis=0) if qh == 1
                         else jnp.concatenate([zr, plane], axis=0))
                plane = (jnp.concatenate([plane, zc], axis=1) if qw == 1
                         else jnp.concatenate([zc, plane], axis=1))
                ypq.append(plane)                                # (hh+1, wh+1, chp)

        # conv2 im2col: output(r,c) tap (dh,dw) -> ypq[dh%2, dw%2][r+dh//2, c+dw//2]
        cols = []
        for dh in range(4):
            for dw in range(4):
                qh, s = dh % 2, dh // 2
                qw, t = dw % 2, dw // 2
                cols.append(ypq[2 * qh + qw][s:s + hh, t:t + wh, :]
                            .reshape(hh * wh, chp))
        patch2 = jnp.concatenate(cols, axis=-1)                  # (hh*wh, 16*chp) bf16

        acc = jnp.dot(patch2, w2_ref[...],
                      preferred_element_type=jnp.float32) + b2_ref[...]

        xav = xavg_ref[0].reshape(hh * wh, cin)                  # bf16
        sc = jnp.dot(xav, wb_ref[...],
                     preferred_element_type=jnp.float32) + bb_ref[...]

        o_ref[0] = (acc + sc).reshape(hh, wh, coutp)


# ---------------------------------------------------------------------------
# Parameters (deterministic, PyTorch-conv-style uniform init)
# ---------------------------------------------------------------------------
def init_params(key, input_nc, output_nc, hidden_nc=None):
    hidden_nc = input_nc if hidden_nc is None else hidden_nc
    ks = jax.random.split(key, 6)

    def conv_init(kw, kb, shape_w, fan_in, nout):
        bound = float(fan_in) ** -0.5
        w = jax.random.uniform(kw, shape_w, jnp.float32, -bound, bound)
        b = jax.random.uniform(kb, (nout,), jnp.float32, -bound, bound)
        return w, b

    w1, b1 = conv_init(ks[0], ks[1], (3, 3, input_nc, hidden_nc),
                       9 * input_nc, hidden_nc)
    w2, b2 = conv_init(ks[2], ks[3], (4, 4, hidden_nc, output_nc),
                       16 * hidden_nc, output_nc)
    wb, bb = conv_init(ks[4], ks[5], (input_nc, output_nc),
                       input_nc, output_nc)
    gamma = jnp.ones((hidden_nc,), jnp.float32)
    beta = jnp.zeros((hidden_nc,), jnp.float32)
    return dict(w1=w1, b1=b1, gamma=gamma, beta=beta, w2=w2, b2=b2, wb=wb, bb=bb)


def _prep_kernel_params(params, cin, ch, cout, chp, coutp):
    f32, bf16 = jnp.float32, jnp.bfloat16
    w1m = jnp.pad(params['w1'], ((0, 0), (0, 0), (0, 0), (0, chp - ch))) \
             .reshape(9 * cin, chp).astype(bf16)
    w2m = jnp.pad(params['w2'], ((0, 0), (0, 0), (0, chp - ch), (0, coutp - cout))) \
             .reshape(16 * chp, coutp).astype(bf16)
    wbm = jnp.pad(params['wb'], ((0, 0), (0, coutp - cout))).astype(bf16)
    b1p = jnp.pad(params['b1'], (0, chp - ch)).reshape(1, chp).astype(f32)
    gp = jnp.pad(params['gamma'], (0, chp - ch),
                 constant_values=1.0).reshape(1, chp).astype(f32)
    btp = jnp.pad(params['beta'], (0, chp - ch)).reshape(1, chp).astype(f32)
    b2p = jnp.pad(params['b2'], (0, coutp - cout)).reshape(1, coutp).astype(f32)
    bbp = jnp.pad(params['bb'], (0, coutp - cout)).reshape(1, coutp).astype(f32)
    return w1m, b1p, gp, btp, w2m, b2p, wbm, bbp


# ---------------------------------------------------------------------------
# NHWC core (callers already in NHWC can use this directly and skip transposes)
# ---------------------------------------------------------------------------
def _forward_nhwc(x, params):
    n, h, w, cin = x.shape
    assert h % 2 == 0 and w % 2 == 0, "even spatial sizes required (stride-2/avgpool)"
    ch = params['w1'].shape[-1]
    cout = params['w2'].shape[-1]
    hh, wh = h // 2, w // 2
    chp = _round_up(ch, _LANES)
    coutp = _round_up(cout, _LANES)

    x = x.astype(jnp.float32)
    xpad = jnp.pad(x, ((0, 0), (1, 1), (1, 1), (0, 0)))
    # parity (space-to-depth) split of the tiny padded input -> all in-kernel
    # slices become unit-stride.  xq[:, 2*ph+pw, i, j] = xpad[:, 2i+ph, 2j+pw]
    xq = jnp.stack([xpad[:, ph::2, pw::2, :]
                    for ph in (0, 1) for pw in (0, 1)], axis=1).astype(jnp.bfloat16)
    # pre-pooled shortcut input (2x2 average pool)
    xavg = x.reshape(n, hh, 2, wh, 2, cin).mean(axis=(2, 4)).astype(jnp.bfloat16)

    w1m, b1p, gp, btp, w2m, b2p, wbm, bbp = _prep_kernel_params(
        params, cin, ch, cout, chp, coutp)

    out = pl.pallas_call(
        _fused_kernel,
        out_shape=jax.ShapeDtypeStruct((n, hh, wh, coutp), jnp.float32),
        grid=(2, n),
        in_specs=[
            # xq: fetched per batch in phase 0, pinned to block 0 in phase 1
            pl.BlockSpec((1, 4, hh + 1, wh + 1, cin),
                         lambda p, b: ((1 - p) * b, 0, 0, 0, 0)),
            # xavg: pinned in phase 0, per batch in phase 1
            pl.BlockSpec((1, hh, wh, cin), lambda p, b: (p * b, 0, 0, 0)),
            # weights / biases: constant index_map -> DMA'd once, resident
            pl.BlockSpec((9 * cin, chp), lambda p, b: (0, 0)),
            pl.BlockSpec((1, chp), lambda p, b: (0, 0)),
            pl.BlockSpec((1, chp), lambda p, b: (0, 0)),
            pl.BlockSpec((1, chp), lambda p, b: (0, 0)),
            pl.BlockSpec((16 * chp, coutp), lambda p, b: (0, 0)),
            pl.BlockSpec((1, coutp), lambda p, b: (0, 0)),
            pl.BlockSpec((cin, coutp), lambda p, b: (0, 0)),
            pl.BlockSpec((1, coutp), lambda p, b: (0, 0)),
        ],
        # phase 0 maps to block 0 (never flushed before phase 1 overwrites it)
        out_specs=pl.BlockSpec((1, hh, wh, coutp), lambda p, b: (p * b, 0, 0, 0)),
        scratch_shapes=[
            pltpu.VMEM((n, 4, hh, wh, chp), jnp.float32),   # pre-BN conv1 activation
            pltpu.VMEM((1, chp), jnp.float32),              # BN sum
            pltpu.VMEM((1, chp), jnp.float32),              # BN sum of squares
        ],
        compiler_params=pltpu.CompilerParams(
            # batch axis must stay sequential: BN stats are global and the hidden
            # activation lives in per-core VMEM scratch.
            dimension_semantics=("arbitrary", "arbitrary"),
            vmem_limit_bytes=32 * 1024 * 1024,
        ),
    )(xq, xavg, w1m, b1p, gp, btp, w2m, b2p, wbm, bbp)

    return out[..., :cout]                                   # (N, H/2, W/2, Cout)


# ---------------------------------------------------------------------------
# Public wrapper (NCHW in / NCHW out, like the PyTorch module)
# ---------------------------------------------------------------------------
@jax.jit
def res_block_encoder_optimized(x_nchw, params):
    x = jnp.transpose(x_nchw, (0, 2, 3, 1))
    y = _forward_nhwc(x, params)
    return jnp.transpose(y, (0, 3, 1, 2))


# ---------------------------------------------------------------------------
# Pure-JAX reference (same math; operands rounded to bf16 like the kernel,
# f32 accumulation) for a tight sanity check.
# ---------------------------------------------------------------------------
def _reference(x_nchw, params):
    f32, bf16 = jnp.float32, jnp.bfloat16
    hi = lax.Precision.HIGHEST
    x = jnp.transpose(x_nchw, (0, 2, 3, 1)).astype(f32)
    xb = x.astype(bf16).astype(f32)
    n, h, w, cin = x.shape
    dn = ('NHWC', 'HWIO', 'NHWC')

    w1 = params['w1'].astype(bf16).astype(f32)
    y = lax.conv_general_dilated(xb, w1, (1, 1), ((1, 1), (1, 1)),
                                 dimension_numbers=dn, precision=hi) + params['b1']
    mean = y.mean(axis=(0, 1, 2))
    var = ((y - mean) ** 2).mean(axis=(0, 1, 2))
    y = (y - mean) * lax.rsqrt(var + BN_EPS) * params['gamma'] + params['beta']
    y = jnp.where(y >= 0, y, LEAKY_SLOPE * y)
    yb = y.astype(bf16).astype(f32)

    w2 = params['w2'].astype(bf16).astype(f32)
    y2 = lax.conv_general_dilated(yb, w2, (2, 2), ((1, 1), (1, 1)),
                                  dimension_numbers=dn, precision=hi) + params['b2']

    avg = x.reshape(n, h // 2, 2, w // 2, 2, cin).mean(axis=(2, 4)) \
           .astype(bf16).astype(f32)
    wb = params['wb'].astype(bf16).astype(f32)
    sc = jnp.einsum('nhwc,co->nhwo', avg, wb, precision=hi) + params['bb']
    return jnp.transpose(y2 + sc, (0, 3, 1, 2))


if __name__ == "__main__":
    key = jax.random.PRNGKey(0)
    k_x, k_p = jax.random.split(key)
    input_nc, output_nc = 4, 8          # hidden_nc defaults to input_nc
    x = jax.random.normal(k_x, (2, input_nc, 16, 16), jnp.float32)   # NCHW
    params = init_params(k_p, input_nc, output_nc)

    out = jax.block_until_ready(res_block_encoder_optimized(x, params))
    assert out.shape == (2, output_nc, 8, 8), out.shape

    ref = _reference(x, params)
    max_err = float(jnp.max(jnp.abs(out - ref)))
    assert max_err < 2e-2, f"max abs err {max_err}"
    # TODO(synk): BatchNorm2d running_mean/running_var buffer updates (training
    # side effect) are not modeled; normalization uses batch statistics (train mode).
    print("KERNEL_OK")
</pallas_src>

<mosaic_0001>
module attributes {stable_mosaic.version = 11 : i64} {
  func.func @_fused_kernel(%arg0: i32, %arg1: i32, %arg2: memref<1x4x9x9x4xbf16, #tpu.memory_space<vmem>>, %arg3: memref<1x8x8x4xbf16, #tpu.memory_space<vmem>>, %arg4: memref<36x128xbf16, #tpu.memory_space<vmem>>, %arg5: memref<1x128xf32, #tpu.memory_space<vmem>>, %arg6: memref<1x128xf32, #tpu.memory_space<vmem>>, %arg7: memref<1x128xf32, #tpu.memory_space<vmem>>, %arg8: memref<2048x128xbf16, #tpu.memory_space<vmem>>, %arg9: memref<1x128xf32, #tpu.memory_space<vmem>>, %arg10: memref<4x128xbf16, #tpu.memory_space<vmem>>, %arg11: memref<1x128xf32, #tpu.memory_space<vmem>>, %arg12: memref<1x8x8x128xf32, #tpu.memory_space<vmem>>, %arg13: memref<2x4x8x8x128xf32, #tpu.memory_space<vmem>>, %arg14: memref<1x128xf32, #tpu.memory_space<vmem>>, %arg15: memref<1x128xf32, #tpu.memory_space<vmem>>) attributes {dimension_semantics = [#tpu.dimension_semantics<arbitrary>, #tpu.dimension_semantics<arbitrary>], iteration_bounds = array<i64: 2, 2>, scalar_prefetch = 0 : i64, scratch_operands = 3 : i64, tpu.core_type = #tpu.core_type<tc>, window_params = [{transform_indices = @transform_0, window_bounds = array<i64: 1, 4, 9, 9, 4>}, {transform_indices = @transform_1, window_bounds = array<i64: 1, 8, 8, 4>}, {pipeline_mode = #tpu.pipeline_mode<synchronous>, transform_indices = @transform_2, window_bounds = array<i64: 36, 128>}, {pipeline_mode = #tpu.pipeline_mode<synchronous>, transform_indices = @transform_3, window_bounds = array<i64: 1, 128>}, {pipeline_mode = #tpu.pipeline_mode<synchronous>, transform_indices = @transform_4, window_bounds = array<i64: 1, 128>}, {pipeline_mode = #tpu.pipeline_mode<synchronous>, transform_indices = @transform_5, window_bounds = array<i64: 1, 128>}, {pipeline_mode = #tpu.pipeline_mode<synchronous>, transform_indices = @transform_6, window_bounds = array<i64: 2048, 128>}, {pipeline_mode = #tpu.pipeline_mode<synchronous>, transform_indices = @transform_7, window_bounds = array<i64: 1, 128>}, {pipeline_mode = #tpu.pipeline_mode<synchronous>, transform_indices = @transform_8, window_bounds = array<i64: 4, 128>}, {pipeline_mode = #tpu.pipeline_mode<synchronous>, transform_indices = @transform_9, window_bounds = array<i64: 1, 128>}, {transform_indices = @transform_10, window_bounds = array<i64: 1, 8, 8, 128>}]} {
    %c0_i32 = arith.constant 0 : i32
    %0 = arith.cmpi eq, %arg0, %c0_i32 : i32
    %1 = arith.extui %0 : i1 to i32
    %c0_i32_0 = arith.constant 0 : i32
    %2 = arith.cmpi ne, %1, %c0_i32_0 : i32
    scf.if %2 {
      %c0_i32_2 = arith.constant 0 : i32
      %6 = arith.cmpi eq, %arg1, %c0_i32_2 : i32
      %7 = arith.extui %6 : i1 to i32
      %c0_i32_3 = arith.constant 0 : i32
      %8 = arith.cmpi ne, %7, %c0_i32_3 : i32
      scf.if %8 {
        %cst_26 = arith.constant 0.000000e+00 : f32
        %145 = vector.broadcast %cst_26 : f32 to vector<1x128xf32>
        %c0_27 = arith.constant 0 : index
        %c0_28 = arith.constant 0 : index
        %146 = vector.load %arg14[%c0_27, %c0_28] : memref<1x128xf32, #tpu.memory_space<vmem>>, vector<1x128xf32>
        tpu.vector_store %arg14[%c0_27, %c0_28], %145 {strides = array<i32>} : memref<1x128xf32, #tpu.memory_space<vmem>>, vector<1x128xf32>,
        %cst_29 = arith.constant 0.000000e+00 : f32
        %147 = vector.broadcast %cst_29 : f32 to vector<1x128xf32>
        %c0_30 = arith.constant 0 : index
        %c0_31 = arith.constant 0 : index
        %148 = vector.load %arg15[%c0_30, %c0_31] : memref<1x128xf32, #tpu.memory_space<vmem>>, vector<1x128xf32>
        tpu.vector_store %arg15[%c0_30, %c0_31], %147 {strides = array<i32>} : memref<1x128xf32, #tpu.memory_space<vmem>>, vector<1x128xf32>,
      } else {
      }
      %c0 = arith.constant 0 : index
      %c0_4 = arith.constant 0 : index
      %c0_5 = arith.constant 0 : index
      %c0_6 = arith.constant 0 : index
      %c0_7 = arith.constant 0 : index
      %9 = vector.load %arg2[%c0, %c0_4, %c0_5, %c0_6, %c0_7] : memref<1x4x9x9x4xbf16, #tpu.memory_space<vmem>>, vector<1x4x9x9x4xbf16>
      %10 = vector.shape_cast %9 : vector<1x4x9x9x4xbf16> to vector<4x9x9x4xbf16>
      %11 = vector.extract_strided_slice %10 {offsets = [0, 0, 0, 0], sizes = [1, 8, 8, 4], strides = [1, 1, 1, 1]} : vector<4x9x9x4xbf16> to vector<1x8x8x4xbf16>
      %12 = vector.shape_cast %11 : vector<1x8x8x4xbf16> to vector<8x8x4xbf16>
      %13 = vector.shape_cast %12 : vector<8x8x4xbf16> to vector<64x4xbf16>
      %14 = vector.extract_strided_slice %10 {offsets = [1, 0, 0, 0], sizes = [1, 8, 8, 4], strides = [1, 1, 1, 1]} : vector<4x9x9x4xbf16> to vector<1x8x8x4xbf16>
      %15 = vector.shape_cast %14 : vector<1x8x8x4xbf16> to vector<8x8x4xbf16>
      %16 = vector.shape_cast %15 : vector<8x8x4xbf16> to vector<64x4xbf16>
      %17 = vector.extract_strided_slice %10 {offsets = [0, 0, 1, 0], sizes = [1, 8, 8, 4], strides = [1, 1, 1, 1]} : vector<4x9x9x4xbf16> to vector<1x8x8x4xbf16>
      %18 = vector.shape_cast %17 : vector<1x8x8x4xbf16> to vector<8x8x4xbf16>
      %19 = vector.shape_cast %18 : vector<8x8x4xbf16> to vector<64x4xbf16>
      %20 = vector.extract_strided_slice %10 {offsets = [2, 0, 0, 0], sizes = [1, 8, 8, 4], strides = [1, 1, 1, 1]} : vector<4x9x9x4xbf16> to vector<1x8x8x4xbf16>
      %21 = vector.shape_cast %20 : vector<1x8x8x4xbf16> to vector<8x8x4xbf16>
      %22 = vector.shape_cast %21 : vector<8x8x4xbf16> to vector<64x4xbf16>
      %23 = vector.extract_strided_slice %10 {offsets = [3, 0, 0, 0], sizes = [1, 8, 8, 4], strides = [1, 1, 1, 1]} : vector<4x9x9x4xbf16> to vector<1x8x8x4xbf16>
      %24 = vector.shape_cast %23 : vector<1x8x8x4xbf16> to vector<8x8x4xbf16>
      %25 = vector.shape_cast %24 : vector<8x8x4xbf16> to vector<64x4xbf16>
      %26 = vector.extract_strided_slice %10 {offsets = [2, 0, 1, 0], sizes = [1, 8, 8, 4], strides = [1, 1, 1, 1]} : vector<4x9x9x4xbf16> to vector<1x8x8x4xbf16>
      %27 = vector.shape_cast %26 : vector<1x8x8x4xbf16> to vector<8x8x4xbf16>
      %28 = vector.shape_cast %27 : vector<8x8x4xbf16> to vector<64x4xbf16>
      %29 = vector.extract_strided_slice %10 {offsets = [0, 1, 0, 0], sizes = [1, 8, 8, 4], strides = [1, 1, 1, 1]} : vector<4x9x9x4xbf16> to vector<1x8x8x4xbf16>
      %30 = vector.shape_cast %29 : vector<1x8x8x4xbf16> to vector<8x8x4xbf16>
      %31 = vector.shape_cast %30 : vector<8x8x4xbf16> to vector<64x4xbf16>
      %32 = vector.extract_strided_slice %10 {offsets = [1, 1, 0, 0], sizes = [1, 8, 8, 4], strides = [1, 1, 1, 1]} : vector<4x9x9x4xbf16> to vector<1x8x8x4xbf16>
      %33 = vector.shape_cast %32 : vector<1x8x8x4xbf16> to vector<8x8x4xbf16>
      %34 = vector.shape_cast %33 : vector<8x8x4xbf16> to vector<64x4xbf16>
      %35 = vector.extract_strided_slice %10 {offsets = [0, 1, 1, 0], sizes = [1, 8, 8, 4], strides = [1, 1, 1, 1]} : vector<4x9x9x4xbf16> to vector<1x8x8x4xbf16>
      %36 = vector.shape_cast %35 : vector<1x8x8x4xbf16> to vector<8x8x4xbf16>
      %37 = vector.shape_cast %36 : vector<8x8x4xbf16> to vector<64x4xbf16>
      %38 = tpu.concatenate %13, %16, %19, %22, %25, %28, %31, %34, %37 in 1 : vector<64x4xbf16>, vector<64x4xbf16>, vector<64x4xbf16>, vector<64x4xbf16>, vector<64x4xbf16>, vector<64x4xbf16>, vector<64x4xbf16>, vector<64x4xbf16>, vector<64x4xbf16> -> vector<64x36xbf16>
      %39 = vector.extract_strided_slice %10 {offsets = [1, 0, 0, 0], sizes = [1, 8, 8, 4], strides = [1, 1, 1, 1]} : vector<4x9x9x4xbf16> to vector<1x8x8x4xbf16>
      %40 = vector.shape_cast %39 : vector<1x8x8x4xbf16> to vector<8x8x4xbf16>
      %41 = vector.shape_cast %40 : vector<8x8x4xbf16> to vector<64x4xbf16>
      %42 = vector.extract_strided_slice %10 {offsets = [0, 0, 1, 0], sizes = [1, 8, 8, 4], strides = [1, 1, 1, 1]} : vector<4x9x9x4xbf16> to vector<1x8x8x4xbf16>
      %43 = vector.shape_cast %42 : vector<1x8x8x4xbf16> to vector<8x8x4xbf16>
      %44 = vector.shape_cast %43 : vector<8x8x4xbf16> to vector<64x4xbf16>
      %45 = vector.extract_strided_slice %10 {offsets = [1, 0, 1, 0], sizes = [1, 8, 8, 4], strides = [1, 1, 1, 1]} : vector<4x9x9x4xbf16> to vector<1x8x8x4xbf16>
      %46 = vector.shape_cast %45 : vector<1x8x8x4xbf16> to vector<8x8x4xbf16>
      %47 = vector.shape_cast %46 : vector<8x8x4xbf16> to vector<64x4xbf16>
      %48 = vector.extract_strided_slice %10 {offsets = [3, 0, 0, 0], sizes = [1, 8, 8, 4], strides = [1, 1, 1, 1]} : vector<4x9x9x4xbf16> to vector<1x8x8x4xbf16>
      %49 = vector.shape_cast %48 : vector<1x8x8x4xbf16> to vector<8x8x4xbf16>
      %50 = vector.shape_cast %49 : vector<8x8x4xbf16> to vector<64x4xbf16>
      %51 = vector.extract_strided_slice %10 {offsets = [2, 0, 1, 0], sizes = [1, 8, 8, 4], strides = [1, 1, 1, 1]} : vector<4x9x9x4xbf16> to vector<1x8x8x4xbf16>
      %52 = vector.shape_cast %51 : vector<1x8x8x4xbf16> to vector<8x8x4xbf16>
      %53 = vector.shape_cast %52 : vector<8x8x4xbf16> to vector<64x4xbf16>
      %54 = vector.extract_strided_slice %10 {offsets = [3, 0, 1, 0], sizes = [1, 8, 8, 4], strides = [1, 1, 1, 1]} : vector<4x9x9x4xbf16> to vector<1x8x8x4xbf16>
      %55 = vector.shape_cast %54 : vector<1x8x8x4xbf16> to vector<8x8x4xbf16>
      %56 = vector.shape_cast %55 : vector<8x8x4xbf16> to vector<64x4xbf16>
      %57 = vector.extract_strided_slice %10 {offsets = [1, 1, 0, 0], sizes = [1, 8, 8, 4], strides = [1, 1, 1, 1]} : vector<4x9x9x4xbf16> to vector<1x8x8x4xbf16>
      %58 = vector.shape_cast %57 : vector<1x8x8x4xbf16> to vector<8x8x4xbf16>
      %59 = vector.shape_cast %58 : vector<8x8x4xbf16> to vector<64x4xbf16>
      %60 = vector.extract_strided_slice %10 {offsets = [0, 1, 1, 0], sizes = [1, 8, 8, 4], strides = [1, 1, 1, 1]} : vector<4x9x9x4xbf16> to vector<1x8x8x4xbf16>
      %61 = vector.shape_cast %60 : vector<1x8x8x4xbf16> to vector<8x8x4xbf16>
      %62 = vector.shape_cast %61 : vector<8x8x4xbf16> to vector<64x4xbf16>
      %63 = vector.extract_strided_slice %10 {offsets = [1, 1, 1, 0], sizes = [1, 8, 8, 4], strides = [1, 1, 1, 1]} : vector<4x9x9x4xbf16> to vector<1x8x8x4xbf16>
      %64 = vector.shape_cast %63 : vector<1x8x8x4xbf16> to vector<8x8x4xbf16>
      %65 = vector.shape_cast %64 : vector<8x8x4xbf16> to vector<64x4xbf16>
      %66 = tpu.concatenate %41, %44, %47, %50, %53, %56, %59, %62, %65 in 1 : vector<64x4xbf16>, vector<64x4xbf16>, vector<64x4xbf16>, vector<64x4xbf16>, vector<64x4xbf16>, vector<64x4xbf16>, vector<64x4xbf16>, vector<64x4xbf16>, vector<64x4xbf16> -> vector<64x36xbf16>
      %67 = vector.extract_strided_slice %10 {offsets = [2, 0, 0, 0], sizes = [1, 8, 8, 4], strides = [1, 1, 1, 1]} : vector<4x9x9x4xbf16> to vector<1x8x8x4xbf16>
      %68 = vector.shape_cast %67 : vector<1x8x8x4xbf16> to vector<8x8x4xbf16>
      %69 = vector.shape_cast %68 : vector<8x8x4xbf16> to vector<64x4xbf16>
      %70 = vector.extract_strided_slice %10 {offsets = [3, 0, 0, 0], sizes = [1, 8, 8, 4], strides = [1, 1, 1, 1]} : vector<4x9x9x4xbf16> to vector<1x8x8x4xbf16>
      %71 = vector.shape_cast %70 : vector<1x8x8x4xbf16> to vector<8x8x4xbf16>
      %72 = vector.shape_cast %71 : vector<8x8x4xbf16> to vector<64x4xbf16>
      %73 = vector.extract_strided_slice %10 {offsets = [2, 0, 1, 0], sizes = [1, 8, 8, 4], strides = [1, 1, 1, 1]} : vector<4x9x9x4xbf16> to vector<1x8x8x4xbf16>
      %74 = vector.shape_cast %73 : vector<1x8x8x4xbf16> to vector<8x8x4xbf16>
      %75 = vector.shape_cast %74 : vector<8x8x4xbf16> to vector<64x4xbf16>
      %76 = vector.extract_strided_slice %10 {offsets = [0, 1, 0, 0], sizes = [1, 8, 8, 4], strides = [1, 1, 1, 1]} : vector<4x9x9x4xbf16> to vector<1x8x8x4xbf16>
      %77 = vector.shape_cast %76 : vector<1x8x8x4xbf16> to vector<8x8x4xbf16>
      %78 = vector.shape_cast %77 : vector<8x8x4xbf16> to vector<64x4xbf16>
      %79 = vector.extract_strided_slice %10 {offsets = [1, 1, 0, 0], sizes = [1, 8, 8, 4], strides = [1, 1, 1, 1]} : vector<4x9x9x4xbf16> to vector<1x8x8x4xbf16>
      %80 = vector.shape_cast %79 : vector<1x8x8x4xbf16> to vector<8x8x4xbf16>
      %81 = vector.shape_cast %80 : vector<8x8x4xbf16> to vector<64x4xbf16>
      %82 = vector.extract_strided_slice %10 {offsets = [0, 1, 1, 0], sizes = [1, 8, 8, 4], strides = [1, 1, 1, 1]} : vector<4x9x9x4xbf16> to vector<1x8x8x4xbf16>
      %83 = vector.shape_cast %82 : vector<1x8x8x4xbf16> to vector<8x8x4xbf16>
      %84 = vector.shape_cast %83 : vector<8x8x4xbf16> to vector<64x4xbf16>
      %85 = vector.extract_strided_slice %10 {offsets = [2, 1, 0, 0], sizes = [1, 8, 8, 4], strides = [1, 1, 1, 1]} : vector<4x9x9x4xbf16> to vector<1x8x8x4xbf16>
      %86 = vector.shape_cast %85 : vector<1x8x8x4xbf16> to vector<8x8x4xbf16>
      %87 = vector.shape_cast %86 : vector<8x8x4xbf16> to vector<64x4xbf16>
      %88 = vector.extract_strided_slice %10 {offsets = [3, 1, 0, 0], sizes = [1, 8, 8, 4], strides = [1, 1, 1, 1]} : vector<4x9x9x4xbf16> to vector<1x8x8x4xbf16>
      %89 = vector.shape_cast %88 : vector<1x8x8x4xbf16> to vector<8x8x4xbf16>
      %90 = vector.shape_cast %89 : vector<8x8x4xbf16> to vector<64x4xbf16>
      %91 = vector.extract_strided_slice %10 {offsets = [2, 1, 1, 0], sizes = [1, 8, 8, 4], strides = [1, 1, 1, 1]} : vector<4x9x9x4xbf16> to vector<1x8x8x4xbf16>
      %92 = vector.shape_cast %91 : vector<1x8x8x4xbf16> to vector<8x8x4xbf16>
      %93 = vector.shape_cast %92 : vector<8x8x4xbf16> to vector<64x4xbf16>
      %94 = tpu.concatenate %69, %72, %75, %78, %81, %84, %87, %90, %93 in 1 : vector<64x4xbf16>, vector<64x4xbf16>, vector<64x4xbf16>, vector<64x4xbf16>, vector<64x4xbf16>, vector<64x4xbf16>, vector<64x4xbf16>, vector<64x4xbf16>, vector<64x4xbf16> -> vector<64x36xbf16>
      %95 = vector.extract_strided_slice %10 {offsets = [3, 0, 0, 0], sizes = [1, 8, 8, 4], strides = [1, 1, 1, 1]} : vector<4x9x9x4xbf16> to vector<1x8x8x4xbf16>
      %96 = vector.shape_cast %95 : vector<1x8x8x4xbf16> to vector<8x8x4xbf16>
      %97 = vector.shape_cast %96 : vector<8x8x4xbf16> to vector<64x4xbf16>
      %98 = vector.extract_strided_slice %10 {offsets = [2, 0, 1, 0], sizes = [1, 8, 8, 4], strides = [1, 1, 1, 1]} : vector<4x9x9x4xbf16> to vector<1x8x8x4xbf16>
      %99 = vector.shape_cast %98 : vector<1x8x8x4xbf16> to vector<8x8x4xbf16>
      %100 = vector.shape_cast %99 : vector<8x8x4xbf16> to vector<64x4xbf16>
      %101 = vector.extract_strided_slice %10 {offsets = [3, 0, 1, 0], sizes = [1, 8, 8, 4], strides = [1, 1, 1, 1]} : vector<4x9x9x4xbf16> to vector<1x8x8x4xbf16>
      %102 = vector.shape_cast %101 : vector<1x8x8x4xbf16> to vector<8x8x4xbf16>
      %103 = vector.shape_cast %102 : vector<8x8x4xbf16> to vector<64x4xbf16>
      %104 = vector.extract_strided_slice %10 {offsets = [1, 1, 0, 0], sizes = [1, 8, 8, 4], strides = [1, 1, 1, 1]} : vector<4x9x9x4xbf16> to vector<1x8x8x4xbf16>
      %105 = vector.shape_cast %104 : vector<1x8x8x4xbf16> to vector<8x8x4xbf16>
      %106 = vector.shape_cast %105 : vector<8x8x4xbf16> to vector<64x4xbf16>
      %107 = vector.extract_strided_slice %10 {offsets = [0, 1, 1, 0], sizes = [1, 8, 8, 4], strides = [1, 1, 1, 1]} : vector<4x9x9x4xbf16> to vector<1x8x8x4xbf16>
      %108 = vector.shape_cast %107 : vector<1x8x8x4xbf16> to vector<8x8x4xbf16>
      %109 = vector.shape_cast %108 : vector<8x8x4xbf16> to vector<64x4xbf16>
      %110 = vector.extract_strided_slice %10 {offsets = [1, 1, 1, 0], sizes = [1, 8, 8, 4], strides = [1, 1, 1, 1]} : vector<4x9x9x4xbf16> to vector<1x8x8x4xbf16>
      %111 = vector.shape_cast %110 : vector<1x8x8x4xbf16> to vector<8x8x4xbf16>
      %112 = vector.shape_cast %111 : vector<8x8x4xbf16> to vector<64x4xbf16>
      %113 = vector.extract_strided_slice %10 {offsets = [3, 1, 0, 0], sizes = [1, 8, 8, 4], strides = [1, 1, 1, 1]} : vector<4x9x9x4xbf16> to vector<1x8x8x4xbf16>
      %114 = vector.shape_cast %113 : vector<1x8x8x4xbf16> to vector<8x8x4xbf16>
      %115 = vector.shape_cast %114 : vector<8x8x4xbf16> to vector<64x4xbf16>
      %116 = vector.extract_strided_slice %10 {offsets = [2, 1, 1, 0], sizes = [1, 8, 8, 4], strides = [1, 1, 1, 1]} : vector<4x9x9x4xbf16> to vector<1x8x8x4xbf16>
      %117 = vector.shape_cast %116 : vector<1x8x8x4xbf16> to vector<8x8x4xbf16>
      %118 = vector.shape_cast %117 : vector<8x8x4xbf16> to vector<64x4xbf16>
      %119 = vector.extract_strided_slice %10 {offsets = [3, 1, 1, 0], sizes = [1, 8, 8, 4], strides = [1, 1, 1, 1]} : vector<4x9x9x4xbf16> to vector<1x8x8x4xbf16>
      %120 = vector.shape_cast %119 : vector<1x8x8x4xbf16> to vector<8x8x4xbf16>
      %121 = vector.shape_cast %120 : vector<8x8x4xbf16> to vector<64x4xbf16>
      %122 = tpu.concatenate %97, %100, %103, %106, %109, %112, %115, %118, %121 in 1 : vector<64x4xbf16>, vector<64x4xbf16>, vector<64x4xbf16>, vector<64x4xbf16>, vector<64x4xbf16>, vector<64x4xbf16>, vector<64x4xbf16>, vector<64x4xbf16>, vector<64x4xbf16> -> vector<64x36xbf16>
      %123 = tpu.concatenate %38, %66, %94, %122 in 0 : vector<64x36xbf16>, vector<64x36xbf16>, vector<64x36xbf16>, vector<64x36xbf16> -> vector<256x36xbf16>
      %c0_8 = arith.constant 0 : index
      %c0_9 = arith.constant 0 : index
      %124 = vector.load %arg4[%c0_8, %c0_9] : memref<36x128xbf16, #tpu.memory_space<vmem>>, vector<36x128xbf16>
      %cst = arith.constant dense<0.000000e+00> : vector<256x128xf32>
      %125 = tpu.matmul %123, %124, %cst {dimension_numbers = #tpu.dot_dimension_numbers<[1], [0], [0], [1], [0, 0, 1, 1], [], []>} : vector<256x36xbf16>, vector<36x128xbf16>, vector<256x128xf32> -> vector<256x128xf32>
      %c0_10 = arith.constant 0 : index
      %c0_11 = arith.constant 0 : index
      %126 = vector.load %arg5[%c0_10, %c0_11] : memref<1x128xf32, #tpu.memory_space<vmem>>, vector<1x128xf32>
      %127 = vector.broadcast %126 : vector<1x128xf32> to vector<256x128xf32>
      %128 = arith.addf %125, %127 : vector<256x128xf32>
      %129 = vector.shape_cast %128 : vector<256x128xf32> to vector<4x8x8x128xf32>
      %130 = arith.index_cast %arg1 : i32 to index
      %c0_12 = arith.constant 0 : index
      %c0_13 = arith.constant 0 : index
      %c0_14 = arith.constant 0 : index
      %c0_15 = arith.constant 0 : index
      %131 = vector.load %arg13[%130, %c0_12, %c0_13, %c0_14, %c0_15] : memref<2x4x8x8x128xf32, #tpu.memory_space<vmem>>, vector<1x4x8x8x128xf32>
      %132 = vector.shape_cast %131 : vector<1x4x8x8x128xf32> to vector<4x8x8x128xf32>
      %133 = vector.shape_cast %129 : vector<4x8x8x128xf32> to vector<1x4x8x8x128xf32>
      tpu.vector_store %arg13[%130, %c0_12, %c0_13, %c0_14, %c0_15], %133 {strides = array<i32>} : memref<2x4x8x8x128xf32, #tpu.memory_space<vmem>>, vector<1x4x8x8x128xf32>,
      %c0_16 = arith.constant 0 : index
      %c0_17 = arith.constant 0 : index
      %134 = vector.load %arg14[%c0_16, %c0_17] : memref<1x128xf32, #tpu.memory_space<vmem>>, vector<1x128xf32>
      %cst_18 = arith.constant dense<0.000000e+00> : vector<128xf32>
      %135 = vector.multi_reduction <add>, %128, %cst_18 [0] : vector<256x128xf32> to vector<128xf32>
      %136 = vector.shape_cast %135 : vector<128xf32> to vector<1x128xf32>
      %137 = arith.addf %134, %136 : vector<1x128xf32>
      %c0_19 = arith.constant 0 : index
      %c0_20 = arith.constant 0 : index
      %138 = vector.load %arg14[%c0_19, %c0_20] : memref<1x128xf32, #tpu.memory_space<vmem>>, vector<1x128xf32>
      tpu.vector_store %arg14[%c0_19, %c0_20], %137 {strides = array<i32>} : memref<1x128xf32, #tpu.memory_space<vmem>>, vector<1x128xf32>,
      %c0_21 = arith.constant 0 : index
      %c0_22 = arith.constant 0 : index
      %139 = vector.load %arg15[%c0_21, %c0_22] : memref<1x128xf32, #tpu.memory_space<vmem>>, vector<1x128xf32>
      %140 = arith.mulf %128, %128 : vector<256x128xf32>
      %cst_23 = arith.constant dense<0.000000e+00> : vector<128xf32>
      %141 = vector.multi_reduction <add>, %140, %cst_23 [0] : vector<256x128xf32> to vector<128xf32>
      %142 = vector.shape_cast %141 : vector<128xf32> to vector<1x128xf32>
      %143 = arith.addf %139, %142 : vector<1x128xf32>
      %c0_24 = arith.constant 0 : index
      %c0_25 = arith.constant 0 : index
      %144 = vector.load %arg15[%c0_24, %c0_25] : memref<1x128xf32, #tpu.memory_space<vmem>>, vector<1x128xf32>
      tpu.vector_store %arg15[%c0_24, %c0_25], %143 {strides = array<i32>} : memref<1x128xf32, #tpu.memory_space<vmem>>, vector<1x128xf32>,
    } else {
    }
    %c1_i32 = arith.constant 1 : i32
    %3 = arith.cmpi eq, %arg0, %c1_i32 : i32
    %4 = arith.extui %3 : i1 to i32
    %c0_i32_1 = arith.constant 0 : i32
    %5 = arith.cmpi ne, %4, %c0_i32_1 : i32
    scf.if %5 {
      %c0 = arith.constant 0 : index
      %c0_2 = arith.constant 0 : index
      %6 = vector.load %arg14[%c0, %c0_2] : memref<1x128xf32, #tpu.memory_space<vmem>>, vector<1x128xf32>
      %cst = arith.constant 0.001953125 : f32
      %7 = vector.broadcast %cst : f32 to vector<1x128xf32>
      %8 = arith.mulf %6, %7 : vector<1x128xf32>
      %c0_3 = arith.constant 0 : index
      %c0_4 = arith.constant 0 : index
      %9 = vector.load %arg15[%c0_3, %c0_4] : memref<1x128xf32, #tpu.memory_space<vmem>>, vector<1x128xf32>
      %cst_5 = arith.constant 0.001953125 : f32
      %10 = vector.broadcast %cst_5 : f32 to vector<1x128xf32>
      %11 = arith.mulf %9, %10 : vector<1x128xf32>
      %12 = arith.mulf %8, %8 : vector<1x128xf32>
      %13 = arith.subf %11, %12 : vector<1x128xf32>
      %cst_6 = arith.constant 0.000000e+00 : f32
      %14 = vector.broadcast %cst_6 : f32 to vector<1x128xf32>
      %15 = arith.maximumf %13, %14 : vector<1x128xf32>
      %cst_7 = arith.constant 9.99999974E-6 : f32
      %16 = vector.broadcast %cst_7 : f32 to vector<1x128xf32>
      %17 = arith.addf %15, %16 : vector<1x128xf32>
      %18 = math.rsqrt %17 : vector<1x128xf32>
      %c0_8 = arith.constant 0 : index
      %c0_9 = arith.constant 0 : index
      %19 = vector.load %arg6[%c0_8, %c0_9] : memref<1x128xf32, #tpu.memory_space<vmem>>, vector<1x128xf32>
      %20 = arith.mulf %18, %19 : vector<1x128xf32>
      %c0_10 = arith.constant 0 : index
      %c0_11 = arith.constant 0 : index
      %21 = vector.load %arg7[%c0_10, %c0_11] : memref<1x128xf32, #tpu.memory_space<vmem>>, vector<1x128xf32>
      %22 = arith.mulf %8, %20 : vector<1x128xf32>
      %23 = arith.subf %21, %22 : vector<1x128xf32>
      %24 = arith.index_cast %arg1 : i32 to index
      %c0_12 = arith.constant 0 : index
      %c0_13 = arith.constant 0 : index
      %c0_14 = arith.constant 0 : index
      %c0_15 = arith.constant 0 : index
      %25 = vector.load %arg13[%24, %c0_12, %c0_13, %c0_14, %c0_15] : memref<2x4x8x8x128xf32, #tpu.memory_space<vmem>>, vector<1x4x8x8x128xf32>
      %26 = vector.shape_cast %25 : vector<1x4x8x8x128xf32> to vector<4x8x8x128xf32>
      %27 = vector.shape_cast %20 : vector<1x128xf32> to vector<1x1x1x128xf32>
      %28 = vector.broadcast %27 : vector<1x1x1x128xf32> to vector<4x8x8x128xf32>
      %29 = arith.mulf %26, %28 : vector<4x8x8x128xf32>
      %30 = vector.shape_cast %23 : vector<1x128xf32> to vector<1x1x1x128xf32>
      %31 = vector.broadcast %30 : vector<1x1x1x128xf32> to vector<4x8x8x128xf32>
      %32 = arith.addf %29, %31 : vector<4x8x8x128xf32>
      %cst_16 = arith.constant 0.000000e+00 : f32
      %33 = vector.broadcast %cst_16 : f32 to vector<4x8x8x128xf32>
      %34 = arith.cmpf oge, %32, %33 : vector<4x8x8x128xf32>
      %cst_17 = arith.constant 0.00999999977 : f32
      %35 = vector.broadcast %cst_17 : f32 to vector<4x8x8x128xf32>
      %36 = arith.mulf %35, %32 : vector<4x8x8x128xf32>
      %37 = arith.select %34, %32, %36 : vector<4x8x8x128xi1>, vector<4x8x8x128xf32>
      %38 = arith.truncf %37 : vector<4x8x8x128xf32> to vector<4x8x8x128xbf16>
      %cst_18 = arith.constant 0.000000e+00 : bf16
      %39 = vector.broadcast %cst_18 : bf16 to vector<1x8x128xbf16>
      %cst_19 = arith.constant 0.000000e+00 : bf16
      %40 = vector.broadcast %cst_19 : bf16 to vector<9x1x128xbf16>
      %41 = vector.extract_strided_slice %38 {offsets = [3, 0, 0, 0], sizes = [1, 8, 8, 128], strides = [1, 1, 1, 1]} : vector<4x8x8x128xbf16> to vector<1x8x8x128xbf16>
      %42 = vector.shape_cast %41 : vector<1x8x8x128xbf16> to vector<8x8x128xbf16>
      %43 = tpu.concatenate %39, %42 in 0 : vector<1x8x128xbf16>, vector<8x8x128xbf16> -> vector<9x8x128xbf16>
      %44 = tpu.concatenate %40, %43 in 1 : vector<9x1x128xbf16>, vector<9x8x128xbf16> -> vector<9x9x128xbf16>
      %45 = vector.extract_strided_slice %38 {offsets = [2, 0, 0, 0], sizes = [1, 8, 8, 128], strides = [1, 1, 1, 1]} : vector<4x8x8x128xbf16> to vector<1x8x8x128xbf16>
      %46 = vector.shape_cast %45 : vector<1x8x8x128xbf16> to vector<8x8x128xbf16>
      %47 = tpu.concatenate %39, %46 in 0 : vector<1x8x128xbf16>, vector<8x8x128xbf16> -> vector<9x8x128xbf16>
      %48 = tpu.concatenate %47, %40 in 1 : vector<9x8x128xbf16>, vector<9x1x128xbf16> -> vector<9x9x128xbf16>
      %49 = vector.extract_strided_slice %38 {offsets = [1, 0, 0, 0], sizes = [1, 8, 8, 128], strides = [1, 1, 1, 1]} : vector<4x8x8x128xbf16> to vector<1x8x8x128xbf16>
      %50 = vector.shape_cast %49 : vector<1x8x8x128xbf16> to vector<8x8x128xbf16>
      %51 = tpu.concatenate %50, %39 in 0 : vector<8x8x128xbf16>, vector<1x8x128xbf16> -> vector<9x8x128xbf16>
      %52 = tpu.concatenate %40, %51 in 1 : vector<9x1x128xbf16>, vector<9x8x128xbf16> -> vector<9x9x128xbf16>
      %53 = vector.extract_strided_slice %38 {offsets = [0, 0, 0, 0], sizes = [1, 8, 8, 128], strides = [1, 1, 1, 1]} : vector<4x8x8x128xbf16> to vector<1x8x8x128xbf16>
      %54 = vector.shape_cast %53 : vector<1x8x8x128xbf16> to vector<8x8x128xbf16>
      %55 = tpu.concatenate %54, %39 in 0 : vector<8x8x128xbf16>, vector<1x8x128xbf16> -> vector<9x8x128xbf16>
      %56 = tpu.concatenate %55, %40 in 1 : vector<9x8x128xbf16>, vector<9x1x128xbf16> -> vector<9x9x128xbf16>
      %57 = vector.extract_strided_slice %44 {offsets = [0, 0, 0], sizes = [8, 8, 128], strides = [1, 1, 1]} : vector<9x9x128xbf16> to vector<8x8x128xbf16>
      %58 = vector.shape_cast %57 : vector<8x8x128xbf16> to vector<64x128xbf16>
      %59 = vector.extract_strided_slice %48 {offsets = [0, 0, 0], sizes = [8, 8, 128], strides = [1, 1, 1]} : vector<9x9x128xbf16> to vector<8x8x128xbf16>
      %60 = vector.shape_cast %59 : vector<8x8x128xbf16> to vector<64x128xbf16>
      %61 = vector.extract_strided_slice %44 {offsets = [0, 1, 0], sizes = [8, 8, 128], strides = [1, 1, 1]} : vector<9x9x128xbf16> to vector<8x8x128xbf16>
      %62 = vector.shape_cast %61 : vector<8x8x128xbf16> to vector<64x128xbf16>
      %63 = vector.extract_strided_slice %48 {offsets = [0, 1, 0], sizes = [8, 8, 128], strides = [1, 1, 1]} : vector<9x9x128xbf16> to vector<8x8x128xbf16>
      %64 = vector.shape_cast %63 : vector<8x8x128xbf16> to vector<64x128xbf16>
      %65 = vector.extract_strided_slice %52 {offsets = [0, 0, 0], sizes = [8, 8, 128], strides = [1, 1, 1]} : vector<9x9x128xbf16> to vector<8x8x128xbf16>
      %66 = vector.shape_cast %65 : vector<8x8x128xbf16> to vector<64x128xbf16>
      %67 = vector.extract_strided_slice %56 {offsets = [0, 0, 0], sizes = [8, 8, 128], strides = [1, 1, 1]} : vector<9x9x128xbf16> to vector<8x8x128xbf16>
      %68 = vector.shape_cast %67 : vector<8x8x128xbf16> to vector<64x128xbf16>
      %69 = vector.extract_strided_slice %52 {offsets = [0, 1, 0], sizes = [8, 8, 128], strides = [1, 1, 1]} : vector<9x9x128xbf16> to vector<8x8x128xbf16>
      %70 = vector.shape_cast %69 : vector<8x8x128xbf16> to vector<64x128xbf16>
      %71 = vector.extract_strided_slice %56 {offsets = [0, 1, 0], sizes = [8, 8, 128], strides = [1, 1, 1]} : vector<9x9x128xbf16> to vector<8x8x128xbf16>
      %72 = vector.shape_cast %71 : vector<8x8x128xbf16> to vector<64x128xbf16>
      %73 = vector.extract_strided_slice %44 {offsets = [1, 0, 0], sizes = [8, 8, 128], strides = [1, 1, 1]} : vector<9x9x128xbf16> to vector<8x8x128xbf16>
      %74 = vector.shape_cast %73 : vector<8x8x128xbf16> to vector<64x128xbf16>
      %75 = vector.extract_strided_slice %48 {offsets = [1, 0, 0], sizes = [8, 8, 128], strides = [1, 1, 1]} : vector<9x9x128xbf16> to vector<8x8x128xbf16>
      %76 = vector.shape_cast %75 : vector<8x8x128xbf16> to vector<64x128xbf16>
      %77 = vector.extract_strided_slice %44 {offsets = [1, 1, 0], sizes = [8, 8, 128], strides = [1, 1, 1]} : vector<9x9x128xbf16> to vector<8x8x128xbf16>
      %78 = vector.shape_cast %77 : vector<8x8x128xbf16> to vector<64x128xbf16>
      %79 = vector.extract_strided_slice %48 {offsets = [1, 1, 0], sizes = [8, 8, 128], strides = [1, 1, 1]} : vector<9x9x128xbf16> to vector<8x8x128xbf16>
      %80 = vector.shape_cast %79 : vector<8x8x128xbf16> to vector<64x128xbf16>
      %81 = vector.extract_strided_slice %52 {offsets = [1, 0, 0], sizes = [8, 8, 128], strides = [1, 1, 1]} : vector<9x9x128xbf16> to vector<8x8x128xbf16>
      %82 = vector.shape_cast %81 : vector<8x8x128xbf16> to vector<64x128xbf16>
      %83 = vector.extract_strided_slice %56 {offsets = [1, 0, 0], sizes = [8, 8, 128], strides = [1, 1, 1]} : vector<9x9x128xbf16> to vector<8x8x128xbf16>
      %84 = vector.shape_cast %83 : vector<8x8x128xbf16> to vector<64x128xbf16>
      %85 = vector.extract_strided_slice %52 {offsets = [1, 1, 0], sizes = [8, 8, 128], strides = [1, 1, 1]} : vector<9x9x128xbf16> to vector<8x8x128xbf16>
      %86 = vector.shape_cast %85 : vector<8x8x128xbf16> to vector<64x128xbf16>
      %87 = vector.extract_strided_slice %56 {offsets = [1, 1, 0], sizes = [8, 8, 128], strides = [1, 1, 1]} : vector<9x9x128xbf16> to vector<8x8x128xbf16>
      %88 = vector.shape_cast %87 : vector<8x8x128xbf16> to vector<64x128xbf16>
      %89 = tpu.concatenate %58, %60, %62, %64, %66, %68, %70, %72, %74, %76, %78, %80, %82, %84, %86, %88 in 1 : vector<64x128xbf16>, vector<64x128xbf16>, vector<64x128xbf16>, vector<64x128xbf16>, vector<64x128xbf16>, vector<64x128xbf16>, vector<64x128xbf16>, vector<64x128xbf16>, vector<64x128xbf16>, vector<64x128xbf16>, vector<64x128xbf16>, vector<64x128xbf16>, vector<64x128xbf16>, vector<64x128xbf16>, vector<64x128xbf16>, vector<64x128xbf16> -> vector<64x2048xbf16>
      %c0_20 = arith.constant 0 : index
      %c0_21 = arith.constant 0 : index
      %90 = vector.load %arg8[%c0_20, %c0_21] : memref<2048x128xbf16, #tpu.memory_space<vmem>>, vector<2048x128xbf16>
      %cst_22 = arith.constant dense<0.000000e+00> : vector<64x128xf32>
      %91 = tpu.matmul %89, %90, %cst_22 {dimension_numbers = #tpu.dot_dimension_numbers<[1], [0], [0], [1], [0, 0, 1, 1], [], []>} : vector<64x2048xbf16>, vector<2048x128xbf16>, vector<64x128xf32> -> vector<64x128xf32>
      %c0_23 = arith.constant 0 : index
      %c0_24 = arith.constant 0 : index
      %92 = vector.load %arg9[%c0_23, %c0_24] : memref<1x128xf32, #tpu.memory_space<vmem>>, vector<1x128xf32>
      %93 = vector.broadcast %92 : vector<1x128xf32> to vector<64x128xf32>
      %94 = arith.addf %91, %93 : vector<64x128xf32>
      %c0_25 = arith.constant 0 : index
      %c0_26 = arith.constant 0 : index
      %c0_27 = arith.constant 0 : index
      %c0_28 = arith.constant 0 : index
      %95 = vector.load %arg3[%c0_25, %c0_26, %c0_27, %c0_28] : memref<1x8x8x4xbf16, #tpu.memory_space<vmem>>, vector<1x8x8x4xbf16>
      %96 = vector.shape_cast %95 : vector<1x8x8x4xbf16> to vector<8x8x4xbf16>
      %97 = vector.shape_cast %96 : vector<8x8x4xbf16> to vector<64x4xbf16>
      %c0_29 = arith.constant 0 : index
      %c0_30 = arith.constant 0 : index
      %98 = vector.load %arg10[%c0_29, %c0_30] : memref<4x128xbf16, #tpu.memory_space<vmem>>, vector<4x128xbf16>
      %cst_31 = arith.constant dense<0.000000e+00> : vector<64x128xf32>
      %99 = tpu.matmul %97, %98, %cst_31 {dimension_numbers = #tpu.dot_dimension_numbers<[1], [0], [0], [1], [0, 0, 1, 1], [], []>} : vector<64x4xbf16>, vector<4x128xbf16>, vector<64x128xf32> -> vector<64x128xf32>
      %c0_32 = arith.constant 0 : index
      %c0_33 = arith.constant 0 : index
      %100 = vector.load %arg11[%c0_32, %c0_33] : memref<1x128xf32, #tpu.memory_space<vmem>>, vector<1x128xf32>
      %101 = vector.broadcast %100 : vector<1x128xf32> to vector<64x128xf32>
      %102 = arith.addf %99, %101 : vector<64x128xf32>
      %103 = arith.addf %94, %102 : vector<64x128xf32>
      %104 = vector.shape_cast %103 : vector<64x128xf32> to vector<8x8x128xf32>
      %c0_34 = arith.constant 0 : index
      %c0_35 = arith.constant 0 : index
      %c0_36 = arith.constant 0 : index
      %c0_37 = arith.constant 0 : index
      %105 = vector.load %arg12[%c0_34, %c0_35, %c0_36, %c0_37] : memref<1x8x8x128xf32, #tpu.memory_space<vmem>>, vector<1x8x8x128xf32>
      %106 = vector.shape_cast %105 : vector<1x8x8x128xf32> to vector<8x8x128xf32>
      %107 = vector.shape_cast %104 : vector<8x8x128xf32> to vector<1x8x8x128xf32>
      tpu.vector_store %arg12[%c0_34, %c0_35, %c0_36, %c0_37], %107 {strides = array<i32>} : memref<1x8x8x128xf32, #tpu.memory_space<vmem>>, vector<1x8x8x128xf32>,
    } else {
    }
    return
  }
  func.func @transform_0(%arg0: i32, %arg1: i32) -> (i32, i32, i32, i32, i32) {
    %c1_i32 = arith.constant 1 : i32
    %0 = arith.subi %c1_i32, %arg0 : i32
    %1 = arith.muli %0, %arg1 : i32
    %c0_i32 = arith.constant 0 : i32
    %c0_i32_0 = arith.constant 0 : i32
    %c0_i32_1 = arith.constant 0 : i32
    %c0_i32_2 = arith.constant 0 : i32
    %c0_i32_3 = arith.constant 0 : i32
    return %1, %c0_i32, %c0_i32_0, %c0_i32_1, %c0_i32_2 : i32, i32, i32, i32, i32
  }
  func.func @transform_1(%arg0: i32, %arg1: i32) -> (i32, i32, i32, i32) {
    %0 = arith.muli %arg0, %arg1 : i32
    %c0_i32 = arith.constant 0 : i32
    %c0_i32_0 = arith.constant 0 : i32
    %c0_i32_1 = arith.constant 0 : i32
    %c0_i32_2 = arith.constant 0 : i32
    return %0, %c0_i32, %c0_i32_0, %c0_i32_1 : i32, i32, i32, i32
  }
  func.func @transform_2(%arg0: i32, %arg1: i32) -> (i32, i32) {
    %c0_i32 = arith.constant 0 : i32
    %c0_i32_0 = arith.constant 0 : i32
    %c0_i32_1 = arith.constant 0 : i32
    return %c0_i32, %c0_i32_0 : i32, i32
  }
  func.func @transform_3(%arg0: i32, %arg1: i32) -> (i32, i32) {
    %c0_i32 = arith.constant 0 : i32
    %c0_i32_0 = arith.constant 0 : i32
    %c0_i32_1 = arith.constant 0 : i32
    return %c0_i32, %c0_i32_0 : i32, i32
  }
  func.func @transform_4(%arg0: i32, %arg1: i32) -> (i32, i32) {
    %c0_i32 = arith.constant 0 : i32
    %c0_i32_0 = arith.constant 0 : i32
    %c0_i32_1 = arith.constant 0 : i32
    return %c0_i32, %c0_i32_0 : i32, i32
  }
  func.func @transform_5(%arg0: i32, %arg1: i32) -> (i32, i32) {
    %c0_i32 = arith.constant 0 : i32
    %c0_i32_0 = arith.constant 0 : i32
    %c0_i32_1 = arith.constant 0 : i32
    return %c0_i32, %c0_i32_0 : i32, i32
  }
  func.func @transform_6(%arg0: i32, %arg1: i32) -> (i32, i32) {
    %c0_i32 = arith.constant 0 : i32
    %c0_i32_0 = arith.constant 0 : i32
    %c0_i32_1 = arith.constant 0 : i32
    return %c0_i32, %c0_i32_0 : i32, i32
  }
  func.func @transform_7(%arg0: i32, %arg1: i32) -> (i32, i32) {
    %c0_i32 = arith.constant 0 : i32
    %c0_i32_0 = arith.constant 0 : i32
    %c0_i32_1 = arith.constant 0 : i32
    return %c0_i32, %c0_i32_0 : i32, i32
  }
  func.func @transform_8(%arg0: i32, %arg1: i32) -> (i32, i32) {
    %c0_i32 = arith.constant 0 : i32
    %c0_i32_0 = arith.constant 0 : i32
    %c0_i32_1 = arith.constant 0 : i32
    return %c0_i32, %c0_i32_0 : i32, i32
  }
  func.func @transform_9(%arg0: i32, %arg1: i32) -> (i32, i32) {
    %c0_i32 = arith.constant 0 : i32
    %c0_i32_0 = arith.constant 0 : i32
    %c0_i32_1 = arith.constant 0 : i32
    return %c0_i32, %c0_i32_0 : i32, i32
  }
  func.func @transform_10(%arg0: i32, %arg1: i32) -> (i32, i32, i32, i32) {
    %0 = arith.muli %arg0, %arg1 : i32
    %c0_i32 = arith.constant 0 : i32
    %c0_i32_0 = arith.constant 0 : i32
    %c0_i32_1 = arith.constant 0 : i32
    %c0_i32_2 = arith.constant 0 : i32
    return %0, %c0_i32, %c0_i32_0, %c0_i32_1 : i32, i32, i32, i32
  }
}

</mosaic_0001>

<bundles_post_ra>
// kernel: res_block_encoder_optimized.1
= control target key start
LH: loop header
LB: loop body
LE: loop exit
PB: predicated region body
PF: predicated region fallthrough
CT: control target
= control target key end

     0   :  { %s6222_s13 = smov 0   ;;  %s6224_s14 = smov 0   ;;  %s8517_s0 = inlined_call_operand.vmem [shape: bf16[2,4,9,9,4], index: 0, kind: input, shape index: {}]   ;;  %s8518_s1 = inlined_call_operand.vmem [shape: bf16[2,8,8,4], index: 1, kind: input, shape index: {}]   ;;  %s8519_s2 = inlined_call_operand.vmem [shape: bf16[36,128], index: 2, kind: input, shape index: {}]   ;;  %s8520_s3 = inlined_call_operand.vmem [shape: f32[1,128], index: 3, kind: input, shape index: {}]   ;;  %s8521_s4 = inlined_call_operand.vmem [shape: f32[1,128], index: 4, kind: input, shape index: {}]   ;;  %s8522_s5 = inlined_call_operand.vmem [shape: f32[1,128], index: 5, kind: input, shape index: {}]   ;;  %s8523_s6 = inlined_call_operand.vmem [shape: bf16[2048,128], index: 6, kind: input, shape index: {}]   ;;  %s8524_s7 = inlined_call_operand.vmem [shape: f32[1,128], index: 7, kind: input, shape index: {}]   ;;  %s8525_s8 = inlined_call_operand.vmem [shape: bf16[4,128], index: 8, kind: input, shape index: {}]   ;;  %s8526_s9 = inlined_call_operand.vmem [shape: f32[1,128], index: 9, kind: input, shape index: {}]   ;;  %s8527_s10 = inlined_call_operand.vmem [shape: f32[2,8,8,128], index: 10, kind: output, shape index: {}]  }
   0x1   :  { %s6226_s15 = smov 0   ;;  %s6228_s16 = smov 0  }
   0x2   :  { %s6230_s17 = smov 0  }
   0x3 LB: > { %s29_s18 = sadd.s32 1, %s6147_s15  ;;  %s32_s19 = sadd.s32 1, %s6151_s16  ;;  %s6155_s17 = sphi %s6230_s17, %s20_s17   ;;  %s6151_s16 = sphi %s6228_s16, %s8714_s16   ;;  %s6147_s15 = sphi %s6226_s15, %s8713_s15   ;;  %s6143_s14 = sphi %s6224_s14, %s8712_s14   ;;  %s6139_s13 = sphi %s6222_s13, %s8711_s13  }
   0x4   : > { %p30_p0 = scmp.ge.s32.totalorder %s29_s18, 2  ;;  %p5118_p1 = scmp.ge.s32.totalorder %s6155_s17, 1 }
   0x5   : > { %p348_p2 = scmp.lt.s32.totalorder %s6155_s17, 5 }
   0x6   : > { %s8716_s18 = smov (%p30_p0, %s29_s18), 0  ;;  %s8718_s19 = smov (!%p30_p0, %s32_s19), %s6151_s16 }
   0x7   : > { %p349_p3 = pnand %p5118_p1, %p348_p2  ;;  %p34_p4 = scmp.ge.s32.totalorder %s8718_s19, 2 }
   0x8   : > { %s395_s20 = ssub.s32 (!%p349_p3), 1, %s6143_s14  ;;  %s404_s21 = smul.u32 (!%p349_p3), %s6139_s13, %s6143_s14 }
   0x9   : > { %s8720_s19 = smov (%p34_p4, %s8718_s19), 0  ;;  %352 = sbr.rel (%p349_p3) target bundleno = 1159 (0x487), region = 60 }
   0xa   : > { %8584 = sst [smem:[#allocation5_spill]] %s8720_s19  ;;  %s396_s22 = smul.u32 (!%p349_p3), %s6139_s13, %s395_s20 }
   0xb   : > { %p405_p5 = scmp.lt.s32.totalorder (!%p349_p3), %s404_s21, 1  ;;  %p5124_p7 = scmp.ne.s32.totalorder (!%p349_p3), %s6143_s14, 0 }
   0xc   : > { %p397_p6 = scmp.lt.s32.totalorder (!%p349_p3), %s396_s22, 1 }
  0x10   : > { %s8722_s21 = smov (!%p405_p5, %s404_s21), 1  ;;  %s8724_s22 = smov (!%p397_p6, %s396_s22), 1 }
  0x11   : > { %s5485_s23 = sshll.u32 %s8722_s21, 5  ;;  %s5486_s24 = sshll.u32 %s8722_s21, 6 }
  0x12   : > { %s5891_s25 = smul.u32 288, %s8724_s22  ;;  %s6263_s28 = scalar_lea.vmem %s8518_s1, %s5485_s23 }
  0x13   : > { %s6268_s11 = scalar_lea.vmem %s8527_s10, %s5486_s24  ;;  %422 = sbr.rel (%p5124_p7) target bundleno = 658 (0x292), region = 64 }
  0x14   : > { %s6273_s20 = scalar_lea.vmem %s8517_s0, %s5891_s25 }
  0x1a   : > { %p5125_p8 = scmp.ne.s32.totalorder %s6139_s13, 0 }
  0x1b   : > { %v6157_v0 = vmov (!%p5125_p8), 0.0  }
  0x1c   : > { %426 = sbr.rel (%p5125_p8) target bundleno = 35 (0x23), region = 68  ;;  %427 = vst [vmem:[#allocation3] sm:$0x1] (!%p5125_p8), %v6157_v0  ;;  %428 = vst [vmem:[#allocation4] sm:$0x1] (!%p5125_p8), %v6157_v0 }
  0x23 PF: > { %v6278_v1 = vld [vmem:[%s6273_s20 + $0x48] sm:$0xf]  ;;  %v6281_v2 = vld [vmem:[%s6273_s20 + $0x50] sm:$0xf]  ;;  %v469_v4 = vld [vmem:[%s6273_s20 + $0xa0] sm:$0xf] }
  0x24   : > { %v6285_v3 = vcombine.low %v6278_v1, %v6281_v2  ;;  %v471_v5 = vld [vmem:[%s6273_s20 + $0xa8] sm:$0xf]  ;;  %s6158_s19 = smov 4   ;;  %v645_v6 = vshrl.u32 %v469_v4, 16  ;;  %v6292_v7 = vld [vmem:[%s6273_s20 + $0x58] sm:$0xf] }
  0x25   : > { %v659_v8 = vshrl.u32 %v471_v5, 16  ;;  %v6294_v9 = vcombine.low %v469_v4, %v471_v5  ;;  %v648_v10 = vshll.u32 %v469_v4, 16  ;;  %v6297_v11 = vld [vmem:[%s6273_s20 + $0x60] sm:$0xf]  ;;  %v662_v12 = vshll.u32 %v471_v5, 16  ;;  %s6159_s21 = smov 12  }
  0x26   : > { %8585 = vst [vmem:[#allocation6_spill] sm:$0xff] %v6285_v3  ;;  %782 = vrot.lane.b32.xlu0 %v6285_v3, %s6158_s19  ;;  %v6301_v13 = vcombine.low %v6292_v7, %v6297_v11  ;;  %v6304_v14 = vld [vmem:[%s6273_s20 + $0xe8] sm:$0xf]  ;;  %v6307_v15 = vld [vmem:[%s6273_s20 + $0xf0] sm:$0xf]  ;;  %v1004_v16 = vshrl.u32 %v6278_v1, 16 }
  0x27   : > { %8586 = vst [vmem:[#allocation7_spill] sm:$0xff] %v6294_v9  ;;  %v1007_v17 = vshll.u32 %v6278_v1, 16  ;;  %832 = vrot.lane.b32.xlu1 %v6294_v9, %s6159_s21  ;;  %v465_v18 = vld [vmem:[%s6273_s20 + $0x90] sm:$0xf]  ;;  %v1018_v19 = vshrl.u32 %v6281_v2, 16  ;;  %v1021_v20 = vshll.u32 %v6281_v2, 16  ;;  %v6322_v22 = vcombine.low %v6304_v14, %v6307_v15 }
  0x28   : > { %8587 = vst [vmem:[#allocation8_spill] sm:$0xff] %v6301_v13  ;;  %v6316_v21 = vrot.slane %v645_v6, 4  ;;  %v467_v23 = vld [vmem:[%s6273_s20 + $0x98] sm:$0xf]  ;;  %v6325_v24 = vrot.slane %v659_v8, 4  ;;  %v6327_v25 = vrot.slane %v648_v10, 5 }
  0x29   : > { %8588 = vst [vmem:[#allocation9_spill] sm:$0xff] %v6322_v22  ;;  %v617_v26 = vshrl.u32 %v465_v18, 16  ;;  %v620_v27 = vshll.u32 %v465_v18, 16  ;;  %v6330_v28 = vld [vmem:[%s6273_s20] sm:$0xf]  ;;  %v6332_v29 = vrot.slane %v662_v12, 5  ;;  %v6334_v31 = vcombine.low %v465_v18, %v467_v23 }
  0x2a   : > { %784 = vrot.lane.b32.xlu0 %v6301_v13, %s6158_s19  ;;  %8589 = vst [vmem:[#allocation10_spill] sm:$0xff] %v6330_v28  ;;  %v631_v30 = vshrl.u32 %v467_v23, 16  ;;  %v430_v32 = vld [vmem:[%s6273_s20 + $0x4] sm:$0x1]  ;;  %v6338_v33 = vld [vmem:[%s6273_s20 + $0x8] sm:$0xf]  ;;  %v651_v49 = vor.u32 %v6327_v25, %v6316_v21 }
  0x2b   : > { %8590 = vst [vmem:[#allocation11_spill] sm:$0xff] %v6334_v31  ;;  %8591 = vst [vmem:[#allocation12_spill] sm:$0xff] %v6338_v33  ;;  %s6160_s22 = smov 16   ;;  %v619_v34 = vrot.slane %v617_v26, 4  ;;  %v622_v35 = vrot.slane %v620_v27, 5  ;;  %v634_v38 = vshll.u32 %v467_v23, 16  ;;  %v665_v54 = vor.u32 %v6332_v29, %v6325_v24 }
  0x2c   : > { %860 = vrot.lane.b32.xlu1 %v6322_v22, %s6160_s22  ;;  %v432_v36 = vld [vmem:[%s6273_s20 + $0xc] sm:$0x1]  ;;  %v6344_v37 = vld [vmem:[%s6273_s20 + $0xd8] sm:$0xf]  ;;  %vm501_vm0 = vsmask.f32 3328 }
  0x2d   : > { %vm502_vm1 = vsmask.f32 7440  ;;  %v505_v39 = vshrl.u32 %v6330_v28, 16  ;;  %v623_v40 = vor.u32 %v622_v35, %v619_v34  ;;  %v508_v41 = vshll.u32 %v6330_v28, 16  ;;  %v6352_v44 = vld [vmem:[%s6273_s20 + $0xe0] sm:$0xf] }
  0x2e   : > { %830 = vrot.lane.b32.xlu0 %v6334_v31, %s6159_s21  ;;  %v514_v42 = vshll.u32 %v430_v32, 16  ;;  %v519_v43 = vshrl.u32 %v6338_v33, 16  ;;  %v522_v46 = vshll.u32 %v6338_v33, 16  ;;  %v528_v47 = vshll.u32 %v432_v36, 16  ;;  %v6362_v52 = vld [vmem:[%s6273_s20 + $0x10] sm:$0xf]  ;;  %vm6377_vm2 = vmor %vm501_vm0, %vm502_vm1 }
  0x2f   : > { %v507_v45 = vrot.slane %v505_v39, 4  ;;  %v6357_v48 = vcombine.low %v6344_v37, %v6352_v44  ;;  %v510_v50 = vrot.slane %v508_v41, 5  ;;  %8593 = vst [vmem:[#allocation14_spill] sm:$0xff] %v6362_v52  ;;  %v434_v53 = vld [vmem:[%s6273_s20 + $0x14] sm:$0x1]  ;;  %v633_v55 = vrot.slane %v631_v30, 4 }
  0x30   : > { %v521_v51 = vrot.slane %v519_v43, 4  ;;  %v636_v56 = vrot.slane %v634_v38, 5  ;;  %v524_v57 = vrot.slane %v522_v46, 5  ;;  %v6370_v58 = vld [vmem:[%s6273_s20 + $0x18] sm:$0xf]  ;;  %v6372_v59 = vrot.slane %v623_v40, 4 }
  0x31   : > { %8592 = vst [vmem:[#allocation13_spill] sm:$0xff] %v6357_v48  ;;  %8594 = vst [vmem:[#allocation15_spill] sm:$0xff] %v6370_v58  ;;  %v511_v60 = vor.u32 %v510_v50, %v507_v45  ;;  %v516_v61 = vrot.slane %v514_v42, 5  ;;  %v530_v62 = vrot.slane %v528_v47, 5  ;;  %v436_v63 = vld [vmem:[%s6273_s20 + $0x1c] sm:$0x1] }
  0x32   : > { %858 = vrot.lane.b32.xlu0 %v6357_v48, %s6160_s22  ;;  %v525_v4 = vor.u32 %v524_v57, %v521_v51  ;;  %v533_v5 = vshrl.u32 %v6362_v52, 16  ;;  %v536_v6 = vshll.u32 %v6362_v52, 16  ;;  %v542_v8 = vshll.u32 %v434_v53, 16  ;;  %v466_v26 = vld [vmem:[%s6273_s20 + $0x94] sm:$0x1]  ;;  %s6161_s23 = smov 8  }
  0x33   : > { %v512_v10 = vrot.slane %v511_v60, 4  ;;  %v547_v12 = vshrl.u32 %v6370_v58, 16  ;;  %v550_v18 = vshll.u32 %v6370_v58, 16  ;;  %v556_v21 = vshll.u32 %v436_v63, 16  ;;  %v6389_v30 = vld [vmem:[%s6273_s20 + $0x20] sm:$0xf] }
  0x34   : > { %v526_v23 = vrot.slane %v525_v4, 4  ;;  %v535_v24 = vrot.slane %v533_v5, 4  ;;  %v538_v25 = vrot.slane %v536_v6, 5  ;;  %v637_v27 = vor.u32 %v636_v56, %v633_v55  ;;  %8597 = vst [vmem:[#allocation16_spill] sm:$0xff] %v6389_v30  ;;  %v468_v41 = vld [vmem:[%s6273_s20 + $0x9c] sm:$0x1] }
  0x35   : > { %v517_v29 = vsel %vm6377_vm2, %v512_v10, %v516_v61  ;;  %v544_v32 = vrot.slane %v542_v8, 5  ;;  %v549_v34 = vrot.slane %v547_v12, 4  ;;  %v552_v35 = vrot.slane %v550_v18, 5  ;;  %v470_v47 = vld [vmem:[%s6273_s20 + $0xa4] sm:$0x1]  ;;  %s6162_s29 = smov 20  }
  0x36   : > { %v6393_v36 = vsel %vm6377_vm2, %v526_v23, %v530_v62  ;;  %v539_v38 = vor.u32 %v538_v25, %v535_v24  ;;  %v558_v39 = vrot.slane %v556_v21, 5  ;;  %v561_v40 = vshrl.u32 %v6389_v30, 16  ;;  %v472_v50 = vld [vmem:[%s6273_s20 + $0xac] sm:$0x1]  ;;  %v438_v63 = vld [vmem:[%s6273_s20 + $0x24] sm:$0x1] }
  0x37   : > { %v6398_v42 = vcombine.low %v517_v29, %v6393_v36  ;;  %v553_v43 = vor.u32 %v552_v35, %v549_v34  ;;  %v564_v45 = vshll.u32 %v6389_v30, 16  ;;  %v626_v46 = vshll.u32 %v466_v26, 16  ;;  %v5964_v12 = vld [vmem:[%s8519_s2] sm:$0xff]   ;;  %v6453_v29 = vld [vmem:[%s6273_s20 + $0x28] sm:$0xf]  ;;  %s6163_s30 = smov 24  }
  0x38   : > { %v6405_v51 = vrot.slane %v1004_v16, 4  ;;  %v666_v53 = vrot.slane %v665_v54, 4  ;;  %v652_v55 = vrot.slane %v651_v49, 4  ;;  %v540_v56 = vrot.slane %v539_v38, 4  ;;  %5831 = vmatprep.subr.bf16.mxu0 %v5964_v12  ;;  %8601 = vst [vmem:[#allocation20_spill] sm:$0xff] %v6453_v29  ;;  %5879 = vmatprep.subr.bf16.mxu1 %v5964_v12  ;;  %s6164_s12 = smov 28  }
  0x39   : > { %802 = vrot.lane.b32.xlu1 %v6398_v42, %s6161_s23  ;;  %v554_v57 = vrot.slane %v553_v43, 4  ;;  %v628_v60 = vrot.slane %v626_v46, 5  ;;  %v638_v61 = vrot.slane %v637_v27, 4  ;;  %v640_v62 = vshll.u32 %v468_v41, 16  ;;  %v6464_v38 = vld [vmem:[%s6273_s20 + $0x30] sm:$0xf]  ;;  %5832 = vmatpush3.bf16.msra.mxu0 %v5964_v12 }
  0x3a   : > { %v6412_v4 = vsel %vm6377_vm2, %v540_v56, %v544_v32  ;;  %v563_v5 = vrot.slane %v561_v40, 4  ;;  %v654_v6 = vshll.u32 %v470_v47, 16  ;;  %v668_v16 = vshll.u32 %v472_v50, 16  ;;  %v6487_v47 = vld [vmem:[%s6273_s20 + $0x68] sm:$0xf]  ;;  %5882 = vmatpush3.bf16.msra.mxu1 %v5964_v12  ;;  %s6165_s24 = smov 32  }
  0x3b   : > { %v6416_v49 = vsel %vm6377_vm2, %v554_v57, %v558_v39  ;;  %v566_v54 = vrot.slane %v564_v45, 5  ;;  %v629_v8 = vsel %vm6377_vm2, %v6372_v59, %v628_v60  ;;  %v642_v10 = vrot.slane %v640_v62, 5  ;;  %v5965_v59 = vld [vmem:[%s8519_s2 + $0x8] sm:$0xff]   ;;  %v6467_v39 = vld [vmem:[%s6273_s20 + $0x38] sm:$0xf] }
  0x3c   : > { %v6426_v18 = vrot.slane %v1007_v17, 5  ;;  %v6430_v21 = vcombine.low %v6412_v4, %v6416_v49  ;;  %v656_v23 = vrot.slane %v654_v6, 5  ;;  %v670_v24 = vrot.slane %v668_v16, 5  ;;  %5833 = vmatprep.subr.bf16.mxu0 %v5965_v59  ;;  %5880 = vmatprep.subr.bf16.mxu1 %v5965_v59  ;;  %v6564_v12 = vld [vmem:[%s6273_s20 + $0x40] sm:$0xf] }
  0x3d   : > { %v570_v25 = vshll.u32 %v438_v63, 16  ;;  %v6437_v26 = vsel %vm6377_vm2, %v638_v61, %v642_v10  ;;  %v6457_v32 = vrot.slane %v1018_v19, 4  ;;  %v567_v34 = vor.u32 %v566_v54, %v563_v5  ;;  %v444_v63 = vld [vmem:[%s6273_s20 + $0x3c] sm:$0x1]  ;;  %5834 = vmatpush3.bf16.msra.mxu0 %v5965_v59  ;;  %v6507_v10 = vld [vmem:[%s6273_s20 + $0xb0] sm:$0xf] }
  0x3e   : > { %8598 = vst [vmem:[#allocation17_spill] sm:$0xff] %v6437_v26  ;;  %804 = vrot.lane.b32.xlu1 %v6430_v21, %s6161_s23  ;;  %v6442_v1 = vcombine.low %v629_v8, %v6437_v26  ;;  %v6446_v17 = vsel %vm6377_vm2, %v652_v55, %v656_v23  ;;  %v6450_v27 = vsel %vm6377_vm2, %v666_v53, %v670_v24  ;;  %v6473_v19 = vrot.slane %v1021_v20, 5  ;;  %v440_v20 = vld [vmem:[%s6273_s20 + $0x2c] sm:$0x1]  ;;  %v442_v55 = vld [vmem:[%s6273_s20 + $0x34] sm:$0x1] }
  0x3f   : > { %8599 = vst [vmem:[#allocation18_spill] sm:$0xff] %v6446_v17  ;;  %8600 = vst [vmem:[#allocation19_spill] sm:$0xff] %v6450_v27  ;;  %v6461_v35 = vcombine.low %v6446_v17, %v6450_v27  ;;  %v1010_v40 = vor.u32 %v6426_v18, %v6405_v51  ;;  %v6480_v43 = vcombine.low %v6338_v33, %v6362_v52  ;;  %v572_v45 = vrot.slane %v570_v25, 5  ;;  %v474_v3 = vld [vmem:[%s6273_s20 + $0xb4] sm:$0x1] }
  0x40   : > { %878 = vrot.lane.b32.xlu0 %v6442_v1, %s6162_s29  ;;  %v6484_v46 = vcombine.low %v6281_v2, %v6292_v7  ;;  %v575_v50 = vshrl.u32 %v6453_v29, 16  ;;  %v578_v51 = vshll.u32 %v6453_v29, 16  ;;  %v6496_v53 = vcombine.low %v6370_v58, %v6389_v30  ;;  %8604 = vst [vmem:[#allocation23_spill] sm:$0xff] %v6507_v10  ;;  %5883 = vmatpush3.bf16.msra.mxu1 %v5965_v59  ;;  %v478_v30 = vld [vmem:[%s6273_s20 + $0xc4] sm:$0x1] }
  0x41   : > { %8602 = vst [vmem:[#allocation21_spill] sm:$0xff] %v6480_v43  ;;  %v589_v2 = vshrl.u32 %v6464_v38, 16  ;;  %v592_v56 = vshll.u32 %v6464_v38, 16  ;;  %v603_v57 = vshrl.u32 %v6467_v39, 16  ;;  %v568_v60 = vrot.slane %v567_v34, 4 }
  0x42   : > { %880 = vrot.lane.b32.xlu1 %v6461_v35, %s6162_s29  ;;  %8603 = vst [vmem:[#allocation22_spill] sm:$0xff] %v6496_v53  ;;  %v577_v61 = vrot.slane %v575_v50, 4  ;;  %v580_v62 = vrot.slane %v578_v51, 5  ;;  %v606_v5 = vshll.u32 %v6467_v39, 16  ;;  %v584_v6 = vshll.u32 %v440_v20, 16 }
  0x43   : > { %v591_v16 = vrot.slane %v589_v2, 4  ;;  %v594_v54 = vrot.slane %v592_v56, 5  ;;  %v605_v8 = vrot.slane %v603_v57, 4  ;;  %v598_v23 = vshll.u32 %v442_v55, 16  ;;  %v6518_v20 = vld [vmem:[%s6273_s20 + $0x70] sm:$0xf] }
  0x44   : > { %892 = vrot.lane.b32.xlu0 %v6480_v43, %s6163_s30  ;;  %v581_v18 = vor.u32 %v580_v62, %v577_v61  ;;  %v608_v24 = vrot.slane %v606_v5, 5  ;;  %v6515_v34 = vcombine.low %v6297_v11, %v6487_v47  ;;  %v612_v51 = vshll.u32 %v444_v63, 16  ;;  %v6521_v2 = vld [vmem:[%s6273_s20 + $0xb8] sm:$0xf]  ;;  %v6539_v63 = vld [vmem:[%s6273_s20 + $0x80] sm:$0xf] }
  0x45   : > { %v595_v50 = vor.u32 %v594_v54, %v591_v16  ;;  %v6523_v55 = vrot.slane %v1010_v40, 4  ;;  %v673_v57 = vshrl.u32 %v6507_v10, 16  ;;  %v573_v61 = vsel %vm6377_vm2, %v568_v60, %v572_v45  ;;  %v6536_v40 = vld [vmem:[%s6273_s20 + $0x78] sm:$0xf]  ;;  %v6548_v60 = vld [vmem:[%s6273_s20 + $0xc0] sm:$0xf] }
  0x46   : > { %894 = vrot.lane.b32.xlu1 %v6496_v53, %s6163_s30  ;;  %8605 = vst [vmem:[#allocation24_spill] sm:$0xff] %v6515_v34  ;;  %v609_v56 = vor.u32 %v608_v24, %v605_v8  ;;  %v6531_v62 = vcombine.low %v6393_v36, %v6412_v4  ;;  %v582_v5 = vrot.slane %v581_v18, 4  ;;  %v586_v16 = vrot.slane %v584_v6, 5  ;;  %v6554_v6 = vld [vmem:[%s6273_s20 + $0xc8] sm:$0xf] }
  0x47   : > { %v6543_v54 = vcombine.low %v6487_v47, %v6518_v20  ;;  %v600_v45 = vrot.slane %v598_v23, 5  ;;  %v676_v36 = vshll.u32 %v6507_v10, 16  ;;  %v687_v4 = vshrl.u32 %v6521_v2, 16  ;;  %8608 = vst [vmem:[#allocation27_spill] sm:$0xff] %v6554_v6 }
  0x48   : > { %8606 = vst [vmem:[#allocation25_spill] sm:$0xff] %v6531_v62  ;;  %906 = vrot.lane.b32.xlu0 %v6484_v46, %s6164_s12  ;;  %v596_v8 = vrot.slane %v595_v50, 4  ;;  %v610_v24 = vrot.slane %v609_v56, 4  ;;  %v614_v59 = vrot.slane %v612_v51, 5  ;;  %v690_v18 = vshll.u32 %v6521_v2, 16 }
  0x49   : > { %8607 = vst [vmem:[#allocation26_spill] sm:$0xff] %v6543_v54  ;;  %v6557_v25 = vcombine.low %v6416_v49, %v573_v61  ;;  %v6561_v23 = vcombine.low %v6536_v40, %v6539_v63  ;;  %v675_v41 = vrot.slane %v673_v57, 4  ;;  %v6572_v49 = vsel %vm6377_vm2, %v582_v5, %v586_v16 }
  0x4a   : > { %908 = vrot.lane.b32.xlu1 %v6515_v34, %s6164_s12  ;;  %v678_v51 = vrot.slane %v676_v36, 5  ;;  %v689_v56 = vrot.slane %v687_v4, 4  ;;  %v692_v9 = vrot.slane %v690_v18, 5  ;;  %v701_v31 = vshrl.u32 %v6548_v60, 16  ;;  %v476_v18 = vld [vmem:[%s6273_s20 + $0xbc] sm:$0x1] }
  0x4b   : > { %8609 = vst [vmem:[#allocation28_spill] sm:$0xff] %v6557_v25  ;;  %8610 = vst [vmem:[#allocation29_spill] sm:$0xff] %v6561_v23  ;;  %v704_v57 = vshll.u32 %v6548_v60, 16  ;;  %v715_v50 = vshrl.u32 %v6554_v6, 16  ;;  %v718_v13 = vshll.u32 %v6554_v6, 16  ;;  %v6583_v5 = vsel %vm6377_vm2, %v596_v8, %v600_v45 }
  0x4c   : > { %919 = vrot.lane.b32.xlu0 %v6531_v62, %s6165_s24  ;;  %v6587_v16 = vsel %vm6377_vm2, %v610_v24, %v614_v59  ;;  %v729_v36 = vshrl.u32 %v6564_v12, 16  ;;  %v732_v4 = vshll.u32 %v6564_v12, 16  ;;  %v6594_v27 = vcombine.low %v573_v61, %v6572_v49  ;;  %v480_v45 = vld [vmem:[%s6273_s20 + $0xcc] sm:$0x1]  ;;  %v6600_v8 = vld [vmem:[%s6273_s20 + $0xf8] sm:$0xf] }
  0x4d   : > { %v706_v26 = vrot.slane %v704_v57, 5  ;;  %v717_v17 = vrot.slane %v715_v50, 4  ;;  %v720_v59 = vrot.slane %v718_v13, 5  ;;  %v6603_v24 = vld [vmem:[%s6273_s20 + $0x100] sm:$0xf]  ;;  %v679_v53 = vor.u32 %v678_v51, %v675_v41 }
  0x4e   : > { %786 = vrot.lane.b32.xlu1 %v6543_v54, %s6158_s19  ;;  %v703_v54 = vrot.slane %v701_v31, 4  ;;  %v682_v43 = vshll.u32 %v474_v3, 16  ;;  %v693_v52 = vor.u32 %v692_v9, %v689_v56  ;;  %v6607_v61 = vcombine.low %v6583_v5, %v6587_v16  ;;  %v6610_v31 = vld [vmem:[%s6273_s20 + $0x108] sm:$0xf]  ;;  %v6613_v50 = vld [vmem:[%s6273_s20 + $0x110] sm:$0xf] }
  0x4f   : > { %v696_v57 = vshll.u32 %v476_v18, 16  ;;  %v710_v58 = vshll.u32 %v478_v30, 16  ;;  %v680_v28 = vrot.slane %v679_v53, 4  ;;  %v721_v41 = vor.u32 %v720_v59, %v717_v17  ;;  %v448_v9 = vld [vmem:[%s6273_s20 + $0x4c] sm:$0x1] }
  0x50   : > { %921 = vrot.lane.b32.xlu0 %v6557_v25, %s6165_s24  ;;  %8611 = vst [vmem:[#allocation30_spill] sm:$0xff] %v6607_v61  ;;  %v707_v13 = vor.u32 %v706_v26, %v703_v54  ;;  %v684_v33 = vrot.slane %v682_v43, 5  ;;  %v724_v3 = vshll.u32 %v480_v45, 16  ;;  %v450_v51 = vld [vmem:[%s6273_s20 + $0x54] sm:$0x1]  ;;  %v6619_v56 = vrot.slane %v729_v36, 4 }
  0x51   : > { %v6621_v25 = vrot.slane %v732_v4, 5  ;;  %v694_v62 = vrot.slane %v693_v52, 4  ;;  %v698_v34 = vrot.slane %v696_v57, 5  ;;  %v6627_v30 = vcombine.low %v6507_v10, %v6521_v2  ;;  %v452_v26 = vld [vmem:[%s6273_s20 + $0x5c] sm:$0x1] }
  0x52   : > { %788 = vrot.lane.b32.xlu1 %v6561_v23, %s6158_s19  ;;  %v6632_v17 = vcombine.low %v6548_v60, %v6554_v6  ;;  %v6636_v43 = vcombine.low %v6600_v8, %v6603_v24  ;;  %v6640_v52 = vcombine.low %v6610_v31, %v6613_v50  ;;  %v708_v53 = vrot.slane %v707_v13, 4  ;;  %v454_v45 = vld [vmem:[%s6273_s20 + $0x64] sm:$0x1] }
  0x53   : > { %8612 = vst [vmem:[#allocation31_spill] sm:$0xff] %v6627_v30  ;;  %v6646_v54 = vsel %vm6377_vm2, %v680_v28, %v684_v33  ;;  %v712_v36 = vrot.slane %v710_v58, 5  ;;  %v722_v4 = vrot.slane %v721_v41, 4  ;;  %v726_v18 = vrot.slane %v724_v3, 5 }
  0x54   : > { %806 = vrot.lane.b32.xlu0 %v6594_v27, %s6161_s23  ;;  %8613 = vst [vmem:[#allocation32_spill] sm:$0xff] %v6632_v17  ;;  %8614 = vst [vmem:[#allocation33_spill] sm:$0xff] %v6636_v43  ;;  %v6651_v59 = vsel %vm6377_vm2, %v694_v62, %v698_v34  ;;  %v1013_v57 = vshll.u32 %v448_v9, 16  ;;  %v8617_v13 = vor.u32 %v6473_v19, %v6457_v32  ;;  %v1027_v6 = vshll.u32 %v450_v51, 16  ;;  %v446_v51 = vld [vmem:[%s6273_s20 + $0x44] sm:$0x1] }
  0x55   : > { %8615 = vst [vmem:[#allocation34_spill] sm:$0xff] %v6640_v52  ;;  %8616 = vst [vmem:[#allocation35_spill] sm:$0xff] %v6646_v54  ;;  %v8618_v28 = vshrl.u32 %v6292_v7, 16  ;;  %v8619_v58 = vshll.u32 %v6292_v7, 16  ;;  %v1041_v3 = vshll.u32 %v452_v26, 16  ;;  %v8620_v10 = vshrl.u32 %v6297_v11, 16 }
  0x56   : > { %808 = vrot.lane.b32.xlu1 %v6607_v61, %s6161_s23  ;;  %v1025_v23 = vrot.slane %v8617_v13, 4  ;;  %v1015_v62 = vrot.slane %v1013_v57, 5  ;;  %v1029_v9 = vrot.slane %v1027_v6, 5  ;;  %v8621_v61 = vshll.u32 %v6297_v11, 16 }
  0x57   : > { %v1034_v33 = vrot.slane %v8618_v28, 4  ;;  %v1037_v41 = vrot.slane %v8619_v58, 5  ;;  %v1048_v34 = vrot.slane %v8620_v10, 4  ;;  %v1055_v19 = vshll.u32 %v454_v45, 16  ;;  %v486_v28 = vld [vmem:[%s6273_s20 + $0xe4] sm:$0x1] }
  0x58   : > { %834 = vrot.lane.b32.xlu0 %v6627_v30, %s6159_s21  ;;  %v1051_v32 = vrot.slane %v8621_v61, 5  ;;  %v6671_v13 = vsel %vm6377_vm2, %v708_v53, %v712_v36  ;;  %v6675_v7 = vsel %vm6377_vm2, %v722_v4, %v726_v18  ;;  %v1043_v26 = vrot.slane %v1041_v3, 5  ;;  %v488_v3 = vld [vmem:[%s6273_s20 + $0xec] sm:$0x1] }
  0x59   : > { %8622 = vst [vmem:[#allocation36_spill] sm:$0xff] %v6675_v7  ;;  %v1038_v10 = vor.u32 %v1037_v41, %v1034_v33  ;;  %v1016_v11 = vsel %vm6377_vm2, %v6523_v55, %v1015_v62  ;;  %v1030_v6 = vsel %vm6377_vm2, %v1025_v23, %v1029_v9  ;;  %v1057_v45 = vrot.slane %v1055_v19, 5 }
  0x5a   : > { %836 = vrot.lane.b32.xlu1 %v6632_v17, %s6159_s21  ;;  %v1052_v61 = vor.u32 %v1051_v32, %v1048_v34  ;;  %v6686_v53 = vcombine.low %v6646_v54, %v6651_v59  ;;  %v6688_v36 = vcombine.low %v1016_v11, %v1030_v6  ;;  %v738_v18 = vshll.u32 %v446_v51, 16 }
  0x5b   : > { %v1039_v4 = vrot.slane %v1038_v10, 4  ;;  %v1130_v55 = vshrl.u32 %v6352_v44, 16  ;;  %v1133_v23 = vshll.u32 %v6352_v44, 16  ;;  %v735_v33 = vor.u32 %v6621_v25, %v6619_v56 }
  0x5c   : > { %862 = vrot.lane.b32.xlu0 %v6636_v43, %s6160_s22  ;;  %v1053_v57 = vrot.slane %v1052_v61, 4  ;;  %v6699_v58 = vcombine.low %v6671_v13, %v6675_v7  ;;  %v1144_v34 = vshrl.u32 %v6304_v14, 16  ;;  %v6709_v44 = vcombine.low %v6453_v29, %v6464_v38 }
  0x5d   : > { %v6703_v41 = vsel %vm6377_vm2, %v1039_v4, %v1043_v26  ;;  %v1132_v56 = vrot.slane %v1130_v55, 4  ;;  %v1135_v62 = vrot.slane %v1133_v23, 5  ;;  %v1139_v32 = vshll.u32 %v486_v28, 16 }
  0x5e   : > { %864 = vrot.lane.b32.xlu1 %v6640_v52, %s6160_s22  ;;  %8623 = vst [vmem:[#allocation37_spill] sm:$0xff] %v6709_v44  ;;  %v6713_v25 = vsel %vm6377_vm2, %v1053_v57, %v1057_v45  ;;  %v1146_v19 = vrot.slane %v1144_v34, 4  ;;  %v1147_v51 = vshll.u32 %v6304_v14, 16  ;;  %v1153_v26 = vshll.u32 %v488_v3, 16  ;;  %v6734_v14 = vld [vmem:[%s6273_s20 + $0x88] sm:$0xf] }
  0x5f   : > { %v1136_v10 = vor.u32 %v1135_v62, %v1132_v56  ;;  %v6724_v11 = vcombine.low %v6467_v39, %v6564_v12  ;;  %v6727_v45 = vcombine.low %v1030_v6, %v6703_v41  ;;  %v736_v4 = vrot.slane %v735_v33, 4 }
  0x60   : > { %882 = vrot.lane.b32.xlu0 %v6686_v53, %s6162_s29  ;;  %v1149_v61 = vrot.slane %v1147_v51, 5  ;;  %v740_v57 = vrot.slane %v738_v18, 5  ;;  %v6731_v28 = vcombine.low %v6518_v20, %v6536_v40  ;;  %v1141_v23 = vrot.slane %v1139_v32, 5 }
  0x61   : > { %8624 = vst [vmem:[#allocation38_spill] sm:$0xff] %v6724_v11  ;;  %v1137_v55 = vrot.slane %v1136_v10, 4  ;;  %v1155_v12 = vrot.slane %v1153_v26, 5  ;;  %v1158_v34 = vshrl.u32 %v6307_v15, 16  ;;  %v1161_v6 = vshll.u32 %v6307_v15, 16 }
  0x62   : > { %884 = vrot.lane.b32.xlu1 %v6699_v58, %s6162_s29  ;;  %v1150_v3 = vor.u32 %v1149_v61, %v1146_v19  ;;  %v6744_v18 = vcombine.low %v6539_v63, %v6734_v14  ;;  %v1116_v56 = vshrl.u32 %v6344_v37, 16  ;;  %v1119_v62 = vshll.u32 %v6344_v37, 16 }
  0x63   : > { %v741_v32 = vsel %vm6377_vm2, %v736_v4, %v740_v57  ;;  %v6752_v15 = vcombine.low %v6572_v49, %v6583_v5  ;;  %v6758_v19 = vsel %vm6377_vm2, %v1137_v55, %v1141_v23  ;;  %v1160_v37 = vrot.slane %v1158_v34, 4  ;;  %v490_v5 = vld [vmem:[%s6273_s20 + $0xf4] sm:$0x1]  ;;  %v492_v57 = vld [vmem:[%s6273_s20 + $0xfc] sm:$0x1] }
  0x64   : > { %896 = vrot.lane.b32.xlu0 %v6709_v44, %s6163_s30  ;;  %v1151_v33 = vrot.slane %v1150_v3, 4  ;;  %v1163_v10 = vrot.slane %v1161_v6, 5  ;;  %v6767_v49 = vcombine.low %v6587_v16, %v741_v32  ;;  %v1118_v61 = vrot.slane %v1116_v56, 4  ;;  %v484_v55 = vld [vmem:[%s6273_s20 + $0xdc] sm:$0x1] }
  0x65   : > { %v1121_v4 = vrot.slane %v1119_v62, 5  ;;  %v1172_v23 = vshrl.u32 %v6600_v8, 16  ;;  %v494_v34 = vld [vmem:[%s6273_s20 + $0x104] sm:$0x1]  ;;  %v1175_v6 = vshll.u32 %v6600_v8, 16  ;;  %v1125_v62 = vshll.u32 %v484_v55, 16 }
  0x66   : > { %898 = vrot.lane.b32.xlu1 %v6724_v11, %s6163_s30  ;;  %v6762_v51 = vsel %vm6377_vm2, %v1151_v33, %v1155_v12  ;;  %v1164_v3 = vor.u32 %v1163_v10, %v1160_v37  ;;  %v1167_v12 = vshll.u32 %v490_v5, 16  ;;  %v1181_v33 = vshll.u32 %v492_v57, 16  ;;  %v496_v10 = vld [vmem:[%s6273_s20 + $0x10c] sm:$0x1] }
  0x67   : > { %v1174_v16 = vrot.slane %v1172_v23, 4  ;;  %v1122_v56 = vor.u32 %v1121_v4, %v1118_v61  ;;  %v1186_v32 = vshrl.u32 %v6603_v24, 16  ;;  %v1189_v26 = vshll.u32 %v6603_v24, 16 }
  0x68   : > { %910 = vrot.lane.b32.xlu0 %v6731_v28, %s6164_s12  ;;  %v1177_v9 = vrot.slane %v1175_v6, 5  ;;  %v1195_v37 = vshll.u32 %v494_v34, 16  ;;  %v1200_v5 = vshrl.u32 %v6610_v31, 16  ;;  %v1203_v17 = vshll.u32 %v6610_v31, 16 }
  0x69   : > { %v1165_v23 = vrot.slane %v1164_v3, 4  ;;  %v1169_v30 = vrot.slane %v1167_v12, 5  ;;  %v1188_v7 = vrot.slane %v1186_v32, 4  ;;  %v1191_v57 = vrot.slane %v1189_v26, 5 }
  0x6a   : > { %912 = vrot.lane.b32.xlu1 %v6744_v18, %s6164_s12  ;;  %v1178_v61 = vor.u32 %v1177_v9, %v1174_v16  ;;  %v1183_v4 = vrot.slane %v1181_v33, 5  ;;  %v1202_v55 = vrot.slane %v1200_v5, 4  ;;  %v1205_v11 = vrot.slane %v1203_v17, 5  ;;  %v5967_v16 = vld [vmem:[%s8519_s2 + $0x10] ss:$0 sps:$4 sm:$0x33]  }
  0x6b   : > { %v1192_v44 = vor.u32 %v1191_v57, %v1188_v7  ;;  %v1197_v6 = vrot.slane %v1195_v37, 5  ;;  %v1123_v54 = vrot.slane %v1122_v56, 4  ;;  %v1127_v3 = vrot.slane %v1125_v62, 5 }
  0x6c   : > { %923 = vrot.lane.b32.xlu0 %v6752_v15, %s6165_s24  ;;  %v1179_v34 = vrot.slane %v1178_v61, 4  ;;  %v1206_v29 = vor.u32 %v1205_v11, %v1202_v55  ;;  %v6798_v17 = vsel %vm6377_vm2, %v1165_v23, %v1169_v30  ;;  %v1063_v11 = vshll.u32 %v6487_v47, 16  ;;  %v456_v23 = vld [vmem:[%s6273_s20 + $0x6c] sm:$0x1] }
  0x6d   : > { %v1193_v12 = vrot.slane %v1192_v44, 4  ;;  %v1128_v30 = vsel %vm6377_vm2, %v1123_v54, %v1127_v3  ;;  %v1074_v33 = vshrl.u32 %v6518_v20, 16  ;;  %v1088_v37 = vshrl.u32 %v6536_v40, 16 }
  0x6e   : > { %925 = vrot.lane.b32.xlu1 %v6767_v49, %s6165_s24  ;;  %v6802_v7 = vsel %vm6377_vm2, %v1179_v34, %v1183_v4  ;;  %v6830_v54 = vcombine.low %v1128_v30, %v6758_v19  ;;  %v1065_v62 = vrot.slane %v1063_v11, 5  ;;  %v6840_v5 = vcombine.low %v6762_v51, %v6798_v17 }
  0x6f   : > { %v6810_v44 = vsel %vm6377_vm2, %v1193_v12, %v1197_v6  ;;  %vm1776_vm3 = vcmask 1041408   ;;  %v1102_v57 = vshrl.u32 %v6539_v63, 16  ;;  %v5129_v61 = vcombine.low %v6464_v38, %v6467_v39  ;;  %v8644_v12 = vld [vmem:[#allocation37_spill] sm:$0xff]  ;;  %v482_v38 = vld [vmem:[%s6273_s20 + $0xd4] sm:$0x1] }
  0x70   : > { %1241 = vrot.lane.b32.xlu0 %v6398_v42, %s6158_s19  ;;  %v1209_v42 = vshll.u32 %v496_v10, 16  ;;  %v1091_v10 = vshll.u32 %v6536_v40, 16  ;;  %5887 = vmatprep.subr.msk.bf16.mxu0 %vm1776_vm3, %v5967_v16  ;;  %v1778_v40 = vsel %vm1776_vm3, %v5967_v16, 0  ;;  %v1069_v55 = vshll.u32 %v456_v23, 16  ;;  %v8628_v23 = vld [vmem:[#allocation25_spill] sm:$0xff] }
  0x71   : > { %5888 = vmatprep.subr.msk.bf16.mxu1 %vm1776_vm3, %v5967_v16  ;;  %5836 = vmatpush3.bf16.msra.mxu0 %v1778_v40  ;;  %v1090_v6 = vrot.slane %v1088_v37, 4  ;;  %v6857_v30 = vcombine.low %v6603_v24, %v6610_v31  ;;  %v6864_v11 = vcombine.low %v6651_v59, %v6671_v13  ;;  %v8629_v13 = vld [vmem:[#allocation28_spill] sm:$0xff]  ;;  %vm927_vm4 = vcmask 31744  }
  0x72   : > { %1243 = vrot.lane.b32.xlu1 %v6430_v21, %s6158_s19  ;;  %v1211_v32 = vrot.slane %v1209_v42, 5  ;;  %v8625_v21 = vcombine.low %v6703_v41, %v6713_v25  ;;  %v1076_v42 = vrot.slane %v1074_v33, 4  ;;  %v1093_v3 = vrot.slane %v1091_v10, 5  ;;  %5884 = vmatpush3.bf16.msra.mxu1 %v1778_v40 }
  0x73   : > { %v1071_v33 = vrot.slane %v1069_v55, 5  ;;  %vm940_vm5 = vcmask 64512   ;;  %vm949_vm6 = vcmask 97280   ;;  %vm958_vm7 = vcmask 130048  }
  0x74   : > { %1261 = vrot.lane.b32.xlu0 %v6688_v36, %s6161_s23  ;;  %v1207_v36 = vrot.slane %v1206_v29, 4  ;;  %v1060_v29 = vshrl.u32 %v6487_v47, 16  ;;  %v1077_v47 = vshll.u32 %v6518_v20, 16  ;;  %v1105_v20 = vshll.u32 %v6539_v63, 16  ;;  %v458_v63 = vld [vmem:[%s6273_s20 + $0x74] sm:$0x1] }
  0x75   : > { %v1094_v37 = vor.u32 %v1093_v3, %v1090_v6  ;;  %vm967_vm8 = vcmask 162816   ;;  %vm976_vm9 = vcmask 195584   ;;  %vm985_vm10 = vcmask 228352  }
  0x76   : > { %1263 = vrot.lane.b32.xlu1 %v8625_v21, %s6161_s23  ;;  %v6814_v41 = vsel %vm6377_vm2, %v1207_v36, %v1211_v32  ;;  %v1062_v56 = vrot.slane %v1060_v29, 4  ;;  %v1079_v34 = vrot.slane %v1077_v47, 5  ;;  %v460_v32 = vld [vmem:[%s6273_s20 + $0x7c] sm:$0x1]  ;;  %v1104_v21 = vrot.slane %v1102_v57, 4 }
  0x77   : > { %8626 = vst [vmem:[#allocation39_spill] sm:$0xff] %v6814_v41  ;;  %v1107_v36 = vrot.slane %v1105_v20, 5  ;;  %v462_v29 = vld [vmem:[%s6273_s20 + $0x84] sm:$0x1]  ;;  %v1097_v10 = vshll.u32 %v460_v32, 16  ;;  %v1095_v40 = vrot.slane %v1094_v37, 4 }
  0x78   : > { %1269 = vrot.lane.b32.xlu0 %v6357_v48, %s6159_s21  ;;  %v1066_v4 = vor.u32 %v1065_v62, %v1062_v56  ;;  %v1080_v47 = vor.u32 %v1079_v34, %v1076_v42  ;;  %v1083_v56 = vshll.u32 %v458_v63, 16  ;;  %v8627_v62 = vld [vmem:[#allocation24_spill] sm:$0xff]  ;;  %v1111_v31 = vshll.u32 %v462_v29, 16 }
  0x79   : > { %v1108_v24 = vor.u32 %v1107_v36, %v1104_v21  ;;  %v1214_v34 = vshrl.u32 %v6613_v50, 16  ;;  %v1217_v63 = vshll.u32 %v6613_v50, 16  ;;  %v1228_v37 = vshrl.u32 %v6734_v14, 16 }
  0x7a   : > { %1271 = vrot.lane.b32.xlu1 %v6322_v22, %s6159_s21  ;;  %v1067_v16 = vrot.slane %v1066_v4, 4  ;;  %v1081_v20 = vrot.slane %v1080_v47, 4  ;;  %v1085_v59 = vrot.slane %v1083_v56, 5  ;;  %v1099_v4 = vrot.slane %v1097_v10, 5 }
  0x7b   : > { %v1109_v55 = vrot.slane %v1108_v24, 4  ;;  %v1113_v42 = vrot.slane %v1111_v31, 5  ;;  %v1216_v36 = vrot.slane %v1214_v34, 4  ;;  %v1219_v29 = vrot.slane %v1217_v63, 5 }
  0x7c   : > { %1277 = vrot.lane.b32.xlu0 %v6442_v1, %s6160_s22  ;;  %v1072_v57 = vsel %vm6377_vm2, %v1067_v16, %v1071_v33  ;;  %v1086_v3 = vsel %vm6377_vm2, %v1081_v20, %v1085_v59  ;;  %v1100_v32 = vsel %vm6377_vm2, %v1095_v40, %v1099_v4  ;;  %v8630_v33 = vld [vmem:[#allocation30_spill] sm:$0xff]  ;;  %v1231_v10 = vshll.u32 %v6734_v14, 16  ;;  %v464_v4 = vld [vmem:[%s6273_s20 + $0x8c] sm:$0x1] }
  0x7d   : > { %v6879_v6 = vcombine.low %v6713_v25, %v1072_v57  ;;  %v1114_v21 = vsel %vm6377_vm2, %v1109_v55, %v1113_v42  ;;  %v5164_v16 = vcombine.low %v1072_v57, %v1086_v3  ;;  %v498_v25 = vld [vmem:[%s6273_s20 + $0x114] sm:$0x1]  ;;  %v1220_v56 = vor.u32 %v1219_v29, %v1216_v36 }
  0x7e   : > { %1279 = vrot.lane.b32.xlu1 %v6461_v35, %s6160_s22  ;;  %v5165_v47 = vcombine.low %v1100_v32, %v1114_v21  ;;  %v1230_v59 = vrot.slane %v1228_v37, 4  ;;  %v1233_v40 = vrot.slane %v1231_v10, 5  ;;  %v6910_v14 = vcombine.low %v6802_v7, %v6810_v44 }
  0x7f   : > { %v1221_v24 = vrot.slane %v1220_v56, 4  ;;  %v1237_v63 = vshll.u32 %v464_v4, 16  ;;  %v6931_v56 = vcombine.low %v1086_v3, %v1100_v32  ;;  %v8633_v3 = vld [vmem:[#allocation15_spill] sm:$0xff]  ;;  %v8634_v32 = vld [vmem:[#allocation14_spill] sm:$0xff]  ;;  %vm994_vm11 = vcmask 261120  }
  0x80   : > { %1297 = vrot.lane.b32.xlu0 %v6830_v54, %s6162_s29  ;;  %v1234_v34 = vor.u32 %v1233_v40, %v1230_v59  ;;  %vm1743_vm12 = vcmask 293888  }
  0x82   : > { %1299 = vrot.lane.b32.xlu1 %v6840_v5, %s6162_s29  ;;  %v1235_v29 = vrot.slane %v1234_v34, 4 }
  0x84   : > { %1305 = vrot.lane.b32.xlu0 %v6484_v46, %s6163_s30 }
  0x86   : > { %1307 = vrot.lane.b32.xlu1 %v8627_v62, %s6163_s30 }
  0x88   : > { %1313 = vrot.lane.b32.xlu0 %v8628_v23, %s6164_s12 }
  0x8a   : > { %1315 = vrot.lane.b32.xlu1 %v8629_v13, %s6164_s12 }
  0x8c   : > { %1326 = vrot.lane.b32.xlu0 %v6727_v45, %s6165_s24 }
  0x8e   : > { %1245 = vrot.lane.b32.xlu1 %v6594_v27, %s6158_s19  ;;  %v1223_v27 = vshll.u32 %v498_v25, 16 }
  0x90   : > { %1328 = vrot.lane.b32.xlu0 %v6879_v6, %s6165_s24  ;;  %v1225_v31 = vrot.slane %v1223_v27, 5 }
  0x92   : > { %1247 = vrot.lane.b32.xlu1 %v8630_v33, %s6158_s19  ;;  %v6904_v20 = vsel %vm6377_vm2, %v1221_v24, %v1225_v31  ;;  %v8631_v24 = vld [vmem:[#allocation12_spill] sm:$0xff]  ;;  %v8632_v31 = vld [vmem:[#allocation10_spill] sm:$0xff] }
  0x93   : > { %v6917_v55 = vcombine.low %v6814_v41, %v6904_v20  ;;  %v5126_v59 = vcombine.low %v8632_v31, %v8631_v24 }
  0x94   : > { %1265 = vrot.lane.b32.xlu0 %v5164_v16, %s6161_s23  ;;  %v1239_v16 = vrot.slane %v1237_v63, 5 }
  0x96   : > { %1267 = vrot.lane.b32.xlu1 %v5165_v47, %s6161_s23  ;;  %v1240_v47 = vsel %vm6377_vm2, %v1235_v29, %v1239_v16 }
  0x97   : > { %v6935_v27 = vcombine.low %v1114_v21, %v1240_v47  ;;  %v5127_v21 = vcombine.low %v8634_v32, %v8633_v3 }
  0x98   : > { %1273 = vrot.lane.b32.xlu0 %v6636_v43, %s6159_s21  ;;  %v783_v57 = vpop.permute.xlu0 %782 }
  0x99   : > { %v833_v42 = vpop.permute.xlu1 %832  ;;  %v930_v34 = vsel %vm927_vm4, %v5126_v59, %v783_v57  ;;  %v8635_v57 = vld [vmem:[#allocation21_spill] sm:$0xff] }
  0x9a   : > { %1275 = vrot.lane.b32.xlu1 %v6640_v52, %s6159_s21 }
  0x9c   : > { %1281 = vrot.lane.b32.xlu0 %v6686_v53, %s6160_s22  ;;  %v785_v36 = vpop.permute.xlu0 %784 }
  0x9d   : > { %v933_v16 = vsel %vm927_vm4, %v5127_v21, %v785_v36 }
  0x9e   : > { %1283 = vrot.lane.b32.xlu1 %v6699_v58, %s6160_s22  ;;  %v861_v25 = vpop.permute.xlu1 %860 }
  0xa0   : > { %1301 = vrot.lane.b32.xlu0 %v6910_v14, %s6162_s29  ;;  %v831_v33 = vpop.permute.xlu0 %830 }
  0xa2   : > { %1303 = vrot.lane.b32.xlu1 %v6917_v55, %s6162_s29 }
  0xa4   : > { %1309 = vrot.lane.b32.xlu0 %v6731_v28, %s6163_s30  ;;  %v859_v10 = vpop.permute.xlu0 %858 }
  0xa6   : > { %1311 = vrot.lane.b32.xlu1 %v6744_v18, %s6163_s30 }
  0xa8   : > { %1317 = vrot.lane.b32.xlu0 %v6752_v15, %s6164_s12 }
  0xaa   : > { %1319 = vrot.lane.b32.xlu1 %v6767_v49, %s6164_s12 }
  0xab   : > { %v803_v37 = vpop.permute.xlu1 %802 }
  0xac   : > { %1330 = vrot.lane.b32.xlu0 %v6931_v56, %s6165_s24  ;;  %v942_v29 = vsel %vm940_vm5, %v930_v34, %v803_v37  ;;  %v8636_v37 = vld [vmem:[#allocation22_spill] sm:$0xff] }
  0xad   : > { %v951_v31 = vsel %vm949_vm6, %v942_v29, %v831_v33 }
  0xae   : > { %1332 = vrot.lane.b32.xlu1 %v6935_v27, %s6165_s24  ;;  %v960_v32 = vsel %vm958_vm7, %v951_v31, %v859_v10 }
  0xb0   : > { %v805_v40 = vpop.permute.xlu1 %804  ;;  %1416 = vrot.lane.b32.xlu0 %v6357_v48, %s6158_s19 }
  0xb1   : > { %v944_v24 = vsel %vm940_vm5, %v933_v16, %v805_v40 }
  0xb2   : > { %1418 = vrot.lane.b32.xlu1 %v6322_v22, %s6158_s19  ;;  %v879_v4 = vpop.permute.xlu0 %878  ;;  %v953_v59 = vsel %vm949_vm6, %v944_v24, %v833_v42 }
  0xb3   : > { %v969_v40 = vsel %vm967_vm8, %v960_v32, %v879_v4  ;;  %v962_v21 = vsel %vm958_vm7, %v953_v59, %v861_v25  ;;  %v5977_v25 = vld [vmem:[%s6273_s20 + $0xa0] sm:$0xf]  ;;  %v5979_v59 = vld [vmem:[%s6273_s20 + $0xa8] sm:$0xf] }
  0xb4   : > { %v881_v63 = vpop.permute.xlu1 %880  ;;  %1424 = vrot.lane.b32.xlu0 %v6442_v1, %s6161_s23 }
  0xb5   : > { %v971_v29 = vsel %vm967_vm8, %v962_v21, %v881_v63  ;;  %v5980_v21 = vld [vmem:[%s6273_s20 + $0xe8] sm:$0xf] }
  0xb6   : > { %1426 = vrot.lane.b32.xlu1 %v6461_v35, %s6161_s23  ;;  %v893_v47 = vpop.permute.xlu0 %892 }
  0xb7   : > { %v978_v42 = vsel %vm976_vm9, %v969_v40, %v893_v47  ;;  %v5978_v47 = vld [vmem:[%s6273_s20 + $0x98] sm:$0xf] }
  0xb8   : > { %v895_v3 = vpop.permute.xlu1 %894  ;;  %1432 = vrot.lane.b32.xlu0 %v8635_v57, %s6159_s21  ;;  %v5174_v24 = vcombine.low %v5978_v47, %v5977_v25  ;;  %v8639_v25 = vld [vmem:[#allocation17_spill] sm:$0xff] }
  0xb9   : > { %v980_v31 = vsel %vm976_vm9, %v971_v29, %v895_v3  ;;  %v8638_v29 = vld [vmem:[#allocation18_spill] sm:$0xff] }
  0xba   : > { %1434 = vrot.lane.b32.xlu1 %v8636_v37, %s6159_s21  ;;  %v907_v36 = vpop.permute.xlu0 %906  ;;  %v8637_v37 = vld [vmem:[#allocation23_spill] sm:$0xff]  ;;  %v7001_v47 = vcombine.low %v8639_v25, %v8638_v29 }
  0xbb   : > { %v987_v34 = vsel %vm985_vm10, %v978_v42, %v907_v36  ;;  %v5175_v36 = vcombine.low %v5979_v59, %v8637_v37  ;;  %v5981_v42 = vld [vmem:[%s6273_s20 + $0xe0] sm:$0xf]  ;;  %v481_v29 = vld [vmem:[%s6273_s20 + $0xd0] sm:$0xf] }
  0xbc   : > { %v909_v33 = vpop.permute.xlu1 %908  ;;  %1440 = vrot.lane.b32.xlu0 %v6484_v46, %s6160_s22 }
  0xbd   : > { %v989_v57 = vsel %vm985_vm10, %v980_v31, %v909_v33  ;;  %v5982_v33 = vld [vmem:[%s6273_s20 + $0xf0] sm:$0xf] }
  0xbe   : > { %1442 = vrot.lane.b32.xlu1 %v8627_v62, %s6160_s22  ;;  %v920_v10 = vpop.permute.xlu0 %919 }
  0xbf   : > { %v996_v4 = vsel %vm994_vm11, %v987_v34, %v920_v10  ;;  %v6990_v34 = vcombine.low %v5981_v42, %v5980_v21  ;;  %v6995_v10 = vcombine.low %v5982_v33, %v6600_v8  ;;  %v8641_v8 = vld [vmem:[#allocation19_spill] sm:$0xff]  ;;  %v8643_v21 = vld [vmem:[#allocation16_spill] sm:$0xff] }
  0xc0   : > { %v787_v16 = vpop.permute.xlu1 %786  ;;  %1448 = vrot.lane.b32.xlu0 %v8628_v23, %s6162_s29  ;;  %5837 = vmatprep.mubr.msk.bf16.mxu0 %vm1743_vm12, %v996_v4 }
  0xc2   : > { %1450 = vrot.lane.b32.xlu1 %v8629_v13, %s6162_s29  ;;  %v922_v63 = vpop.permute.xlu0 %921 }
  0xc3   : > { %v998_v32 = vsel %vm994_vm11, %v989_v57, %v922_v63  ;;  %v8640_v57 = vld [vmem:[#allocation35_spill] sm:$0xff] }
  0xc4   : > { %v789_v40 = vpop.permute.xlu1 %788  ;;  %1462 = vrot.lane.b32.xlu0 %v5174_v24, %s6163_s30  ;;  %5838 = vmatmul.mubr.msk.bf16.vlgmr.msra.gmra.mrb[0].mxu0 %vm1743_vm12, %v998_v32  ;;  %v7009_v63 = vcombine.low %v8641_v8, %v8640_v57  ;;  %v8642_v32 = vld [vmem:[#allocation20_spill] sm:$0xff]  ;;  %v1403_v57 = vshrl.u32 %v481_v29, 16  ;;  %v1406_v8 = vshll.u32 %v481_v29, 16 }
  0xc5   : > { %v5128_v42 = vcombine.low %v8643_v21, %v8642_v32  ;;  %v939_v21 = vsel %vm927_vm4, %v5129_v61, %v789_v40 }
  0xc6   : > { %1464 = vrot.lane.b32.xlu1 %v5175_v36, %s6163_s30  ;;  %v807_v3 = vpop.permute.xlu0 %806  ;;  %v1405_v48 = vrot.slane %v1403_v57, 4  ;;  %v1408_v41 = vrot.slane %v1406_v8, 5 }
  0xc7   : > { %v936_v26 = vsel %vm927_vm4, %v5128_v42, %v787_v16 }
  0xc8   : > { %v809_v4 = vpop.permute.xlu1 %808  ;;  %1476 = vrot.lane.b32.xlu0 %v6990_v34, %s6164_s12  ;;  %v946_v32 = vsel %vm940_vm5, %v936_v26, %v807_v3 }
  0xc9   : > { %v948_v16 = vsel %vm940_vm5, %v939_v21, %v809_v4 }
  0xca   : > { %1478 = vrot.lane.b32.xlu1 %v6995_v10, %s6164_s12  ;;  %v835_v24 = vpop.permute.xlu0 %834 }
  0xcc   : > { %v837_v31 = vpop.permute.xlu1 %836  ;;  %1489 = vrot.lane.b32.xlu0 %v7001_v47, %s6165_s24 }
  0xce   : > { %1420 = vrot.lane.b32.xlu1 %v6636_v43, %s6158_s19  ;;  %v863_v59 = vpop.permute.xlu0 %862  ;;  %v8645_v43 = vld [vmem:[#allocation38_spill] sm:$0xff] }
  0xd0   : > { %v865_v37 = vpop.permute.xlu1 %864  ;;  %1491 = vrot.lane.b32.xlu0 %v7009_v63, %s6165_s24 }
  0xd2   : > { %1422 = vrot.lane.b32.xlu1 %v6640_v52, %s6158_s19  ;;  %v883_v36 = vpop.permute.xlu0 %882  ;;  %v955_v52 = vsel %vm949_vm6, %v946_v32, %v835_v24  ;;  %v8647_v32 = vcombine.low %v6521_v2, %v6548_v60  ;;  %v8648_v2 = vld [vmem:[#allocation36_spill] sm:$0xff] }
  0xd3   : > { %v964_v42 = vsel %vm958_vm7, %v955_v52, %v863_v59  ;;  %v1412_v59 = vshll.u32 %v482_v38, 16 }
  0xd4   : > { %v885_v33 = vpop.permute.xlu1 %884  ;;  %1428 = vrot.lane.b32.xlu0 %v6686_v53, %s6161_s23  ;;  %v973_v26 = vsel %vm967_vm8, %v964_v42, %v883_v36 }
  0xd5   : > { %v1414_v57 = vrot.slane %v1412_v59, 5 }
  0xd6   : > { %1430 = vrot.lane.b32.xlu1 %v6699_v58, %s6161_s23  ;;  %v897_v25 = vpop.permute.xlu0 %896 }
  0xd8   : > { %v899_v9 = vpop.permute.xlu1 %898  ;;  %1436 = vrot.lane.b32.xlu0 %v8644_v12, %s6159_s21  ;;  %v957_v12 = vsel %vm949_vm6, %v948_v16, %v837_v31  ;;  %v1409_v31 = vor.u32 %v1408_v41, %v1405_v48  ;;  %v7060_v48 = vld [vmem:[%s6273_s20 + $0x118] sm:$0xf] }
  0xd9   : > { %v966_v39 = vsel %vm958_vm7, %v957_v12, %v865_v37  ;;  %v7069_v16 = vcombine.low %v6613_v50, %v7060_v48 }
  0xda   : > { %1438 = vrot.lane.b32.xlu1 %v8645_v43, %s6159_s21  ;;  %v911_v22 = vpop.permute.xlu0 %910  ;;  %v982_v43 = vsel %vm976_vm9, %v973_v26, %v897_v25  ;;  %v975_v61 = vsel %vm967_vm8, %v966_v39, %v885_v33  ;;  %v8646_v33 = vld [vmem:[#allocation27_spill] sm:$0xff]  ;;  %v1410_v41 = vrot.slane %v1409_v31, 4 }
  0xdb   : > { %v991_v40 = vsel %vm985_vm10, %v982_v43, %v911_v22  ;;  %v984_v4 = vsel %vm976_vm9, %v975_v61, %v899_v9  ;;  %v5177_v25 = vcombine.low %v8646_v33, %v481_v29  ;;  %v8649_v61 = vld [vmem:[#allocation6_spill] sm:$0xff] }
  0xdc   : > { %v913_v3 = vpop.permute.xlu1 %912  ;;  %1444 = vrot.lane.b32.xlu0 %v6731_v28, %s6160_s22  ;;  %v1415_v29 = vsel %vm6377_vm2, %v1410_v41, %v1414_v57 }
  0xdd   : > { %v993_v36 = vsel %vm985_vm10, %v984_v4, %v913_v3  ;;  %v7078_v60 = vcombine.low %v8648_v2, %v1415_v29  ;;  %v8653_v2 = vld [vmem:[#allocation26_spill] sm:$0xff] }
  0xde   : > { %1446 = vrot.lane.b32.xlu1 %v6744_v18, %s6160_s22  ;;  %v924_v52 = vpop.permute.xlu0 %923 }
  0xdf   : > { %v1000_v24 = vsel %vm994_vm11, %v991_v40, %v924_v52 }
  0xe0   : > { %v926_v37 = vpop.permute.xlu1 %925  ;;  %1452 = vrot.lane.b32.xlu0 %v6752_v15, %s6162_s29  ;;  %5841 = vmatprep.mubr.msk.bf16.mxu0 %vm1743_vm12, %v1000_v24  ;;  %v8650_v24 = vld [vmem:[#allocation8_spill] sm:$0xff] }
  0xe1   : > { %v1002_v22 = vsel %vm994_vm11, %v993_v36, %v926_v37 }
  0xe2   : > { %1454 = vrot.lane.b32.xlu1 %v6767_v49, %s6162_s29  ;;  %5842 = vmatmul.mubr.msk.bf16.gmra.mrb[4].mxu0 %vm1743_vm12, %v1002_v22  ;;  %v1242_v9 = vpop.permute.xlu0 %1241 }
  0xe3   : > { %v1336_v40 = vsel %vm927_vm4, %v8649_v61, %v1242_v9 }
  0xe4   : > { %v1244_v8 = vpop.permute.xlu1 %1243  ;;  %1466 = vrot.lane.b32.xlu0 %v8647_v32, %s6163_s30 }
  0xe6   : > { %1468 = vrot.lane.b32.xlu1 %v5177_v25, %s6163_s30  ;;  %v1262_v21 = vpop.permute.xlu0 %1261 }
  0xe8   : > { %v1264_v42 = vpop.permute.xlu1 %1263  ;;  %1480 = vrot.lane.b32.xlu0 %v6857_v30, %s6164_s12 }
  0xea   : > { %1482 = vrot.lane.b32.xlu1 %v7069_v16, %s6164_s12  ;;  %v1270_v12 = vpop.permute.xlu0 %1269 }
  0xec   : > { %v1272_v26 = vpop.permute.xlu1 %1271  ;;  %1493 = vrot.lane.b32.xlu0 %v6864_v11, %s6165_s24 }
  0xee   : > { %1495 = vrot.lane.b32.xlu1 %v7078_v60, %s6165_s24  ;;  %v1278_v50 = vpop.permute.xlu0 %1277 }
  0xf0   : > { %v1280_v3 = vpop.permute.xlu1 %1279  ;;  %1579 = vrot.lane.b32.xlu0 %v6442_v1, %s6158_s19  ;;  %v1347_v1 = vsel %vm940_vm5, %v1336_v40, %v1262_v21 }
  0xf2   : > { %1581 = vrot.lane.b32.xlu1 %v6461_v35, %s6158_s19  ;;  %v1298_v38 = vpop.permute.xlu0 %1297  ;;  %v1355_v35 = vsel %vm949_vm6, %v1347_v1, %v1270_v12  ;;  %v8652_v12 = vcombine.low %v6798_v17, %v6802_v7 }
  0xf4   : > { %v1300_v39 = vpop.permute.xlu1 %1299  ;;  %1587 = vrot.lane.b32.xlu0 %v6830_v54, %s6161_s23  ;;  %v1363_v54 = vsel %vm958_vm7, %v1355_v35, %v1278_v50 }
  0xf5   : > { %v1371_v31 = vsel %vm967_vm8, %v1363_v54, %v1298_v38 }
  0xf6   : > { %1589 = vrot.lane.b32.xlu1 %v6840_v5, %s6161_s23  ;;  %v1306_v43 = vpop.permute.xlu0 %1305  ;;  %v1339_v5 = vsel %vm927_vm4, %v8650_v24, %v1244_v8 }
  0xf7   : > { %v1379_v36 = vsel %vm976_vm9, %v1371_v31, %v1306_v43  ;;  %v500_v43 = vld [vmem:[%s6273_s20 + $0x11c] sm:$0x1]  ;;  %s5210_s20 = sshll.u32 %s6139_s13, 8 }
  0xf8   : > { %v1308_v52 = vpop.permute.xlu1 %1307  ;;  %1595 = vrot.lane.b32.xlu0 %v6484_v46, %s6159_s21  ;;  %v1349_v46 = vsel %vm940_vm5, %v1339_v5, %v1264_v42  ;;  %v8651_v42 = vcombine.low %v6758_v19, %v6762_v51  ;;  %v1566_v19 = vshrl.u32 %v7060_v48, 16  ;;  %v1569_v51 = vshll.u32 %v7060_v48, 16 }
  0xf9   : > { %v1357_v37 = vsel %vm949_vm6, %v1349_v46, %v1272_v26  ;;  %v8654_v26 = vld [vmem:[#allocation29_spill] sm:$0xff]  ;;  %v1575_v24 = vshll.u32 %v500_v43, 16 }
  0xfa   : > { %1597 = vrot.lane.b32.xlu1 %v8627_v62, %s6159_s21  ;;  %v1314_v4 = vpop.permute.xlu0 %1313  ;;  %v1365_v9 = vsel %vm958_vm7, %v1357_v37, %v1280_v3  ;;  %v1568_v3 = vrot.slane %v1566_v19, 4  ;;  %v1571_v48 = vrot.slane %v1569_v51, 5 }
  0xfb   : > { %v1387_v62 = vsel %vm985_vm10, %v1379_v36, %v1314_v4  ;;  %v1373_v25 = vsel %vm967_vm8, %v1365_v9, %v1300_v39  ;;  %v1577_v37 = vrot.slane %v1575_v24, 5 }
  0xfc   : > { %v1316_v59 = vpop.permute.xlu1 %1315  ;;  %1603 = vrot.lane.b32.xlu0 %v8628_v23, %s6160_s22  ;;  %v1381_v23 = vsel %vm976_vm9, %v1373_v25, %v1308_v52  ;;  %v1572_v54 = vor.u32 %v1571_v48, %v1568_v3 }
  0xfd   : > { %v1389_v57 = vsel %vm985_vm10, %v1381_v23, %v1316_v59 }
  0xfe   : > { %1605 = vrot.lane.b32.xlu1 %v8629_v13, %s6160_s22  ;;  %v1327_v22 = vpop.permute.xlu0 %1326  ;;  %v1573_v36 = vrot.slane %v1572_v54, 4 }
  0xff   : > { %v1395_v33 = vsel %vm994_vm11, %v1387_v62, %v1327_v22 }
 0x100   : > { %v1246_v41 = vpop.permute.xlu1 %1245  ;;  %1611 = vrot.lane.b32.xlu0 %v6727_v45, %s6162_s29  ;;  %5845 = vmatprep.mubr.msk.bf16.mxu0 %vm1743_vm12, %v1395_v33  ;;  %v1578_v22 = vsel %vm6377_vm2, %v1573_v36, %v1577_v37 }
 0x101   : > { %v1342_v17 = vsel %vm927_vm4, %v8653_v2, %v1246_v41 }
 0x102   : > { %1613 = vrot.lane.b32.xlu1 %v6879_v6, %s6162_s29  ;;  %v1329_v13 = vpop.permute.xlu0 %1328 }
 0x103   : > { %v1397_v8 = vsel %vm994_vm11, %v1389_v57, %v1329_v13 }
 0x104   : > { %v1248_v32 = vpop.permute.xlu1 %1247  ;;  %1619 = vrot.lane.b32.xlu0 %v6990_v34, %s6163_s30  ;;  %5846 = vmatmul.mubr.msk.bf16.gmra.mrb[8].mxu0 %vm1743_vm12, %v1397_v8 }
 0x106   : > { %1621 = vrot.lane.b32.xlu1 %v6995_v10, %s6163_s30  ;;  %v1266_v45 = vpop.permute.xlu0 %1265 }
 0x108   : > { %v1268_v21 = vpop.permute.xlu1 %1267  ;;  %1627 = vrot.lane.b32.xlu0 %v7001_v47, %s6164_s12 }
 0x10a   : > { %1629 = vrot.lane.b32.xlu1 %v7009_v63, %s6164_s12  ;;  %v1274_v6 = vpop.permute.xlu0 %1273 }
 0x10c   : > { %v1276_v29 = vpop.permute.xlu1 %1275  ;;  %1640 = vrot.lane.b32.xlu0 %v8651_v42, %s6165_s24 }
 0x10e   : > { %1583 = vrot.lane.b32.xlu1 %v6686_v53, %s6158_s19  ;;  %v1282_v34 = vpop.permute.xlu0 %1281 }
 0x110   : > { %v1284_v10 = vpop.permute.xlu1 %1283  ;;  %1642 = vrot.lane.b32.xlu0 %v8652_v12, %s6165_s24 }
 0x112   : > { %1585 = vrot.lane.b32.xlu1 %v6699_v58, %s6158_s19  ;;  %v1302_v47 = vpop.permute.xlu0 %1301  ;;  %v1351_v58 = vsel %vm940_vm5, %v1342_v17, %v1266_v45 }
 0x114   : > { %v1304_v63 = vpop.permute.xlu1 %1303  ;;  %1591 = vrot.lane.b32.xlu0 %v6910_v14, %s6161_s23  ;;  %v1345_v14 = vsel %vm927_vm4, %v8654_v26, %v1248_v32 }
 0x115   : > { %v1353_v38 = vsel %vm940_vm5, %v1345_v14, %v1268_v21 }
 0x116   : > { %1593 = vrot.lane.b32.xlu1 %v6917_v55, %s6161_s23  ;;  %v1310_v53 = vpop.permute.xlu0 %1309  ;;  %v1359_v55 = vsel %vm949_vm6, %v1351_v58, %v1274_v6 }
 0x117   : > { %v1367_v39 = vsel %vm958_vm7, %v1359_v55, %v1282_v34 }
 0x118   : > { %v1312_v7 = vpop.permute.xlu1 %1311  ;;  %1599 = vrot.lane.b32.xlu0 %v6731_v28, %s6159_s21  ;;  %v1361_v28 = vsel %vm949_vm6, %v1353_v38, %v1276_v29  ;;  %v1375_v61 = vsel %vm967_vm8, %v1367_v39, %v1302_v47 }
 0x119   : > { %v1369_v52 = vsel %vm958_vm7, %v1361_v28, %v1284_v10 }
 0x11a   : > { %1601 = vrot.lane.b32.xlu1 %v6744_v18, %s6159_s21  ;;  %v1318_v50 = vpop.permute.xlu0 %1317  ;;  %v1383_v18 = vsel %vm976_vm9, %v1375_v61, %v1310_v53  ;;  %v1377_v1 = vsel %vm967_vm8, %v1369_v52, %v1304_v63 }
 0x11b   : > { %v1391_v35 = vsel %vm985_vm10, %v1383_v18, %v1318_v50  ;;  %v1385_v5 = vsel %vm976_vm9, %v1377_v1, %v1312_v7 }
 0x11c   : > { %v1320_v40 = vpop.permute.xlu1 %1319  ;;  %1607 = vrot.lane.b32.xlu0 %v6752_v15, %s6160_s22 }
 0x11d   : > { %v1393_v15 = vsel %vm985_vm10, %v1385_v5, %v1320_v40  ;;  %v8659_v40 = vld [vmem:[#allocation31_spill] sm:$0xff] }
 0x11e   : > { %1609 = vrot.lane.b32.xlu1 %v6767_v49, %s6160_s22  ;;  %v1331_v4 = vpop.permute.xlu0 %1330  ;;  %s7275_s22 = scalar_lea.vmem [#allocation2], %s5210_s20 }
 0x11f   : > { %v1399_v31 = vsel %vm994_vm11, %v1391_v35, %v1331_v4  ;;  %v8660_v35 = vld [vmem:[#allocation32_spill] sm:$0xff] }
 0x120   : > { %v1333_v59 = vpop.permute.xlu1 %1332  ;;  %1615 = vrot.lane.b32.xlu0 %v6931_v56, %s6162_s29  ;;  %5849 = vmatprep.mubr.msk.bf16.mxu0 %vm1743_vm12, %v1399_v31 }
 0x121   : > { %v1401_v46 = vsel %vm994_vm11, %v1393_v15, %v1333_v59 }
 0x122   : > { %1617 = vrot.lane.b32.xlu1 %v6935_v27, %s6162_s29  ;;  %5850 = vmatmul.mubr.msk.bf16.gmra.mrb[12].mxu0 %vm1743_vm12, %v1401_v46  ;;  %v1417_v49 = vpop.permute.xlu0 %1416  ;;  %v5189_v27 = vcombine.low %v6904_v20, %v1578_v22 }
 0x124   : > { %v1419_v62 = vpop.permute.xlu1 %1418  ;;  %1623 = vrot.lane.b32.xlu0 %v6857_v30, %s6163_s30  ;;  %v8655_v30 = vld [vmem:[#allocation39_spill] sm:$0xff] }
 0x125   : > { %v8656_v41 = vcombine.low %v6810_v44, %v8655_v30  ;;  %v8658_v44 = vld [vmem:[#allocation7_spill] sm:$0xff] }
 0x126   : > { %1625 = vrot.lane.b32.xlu1 %v7069_v16, %s6163_s30  ;;  %v1425_v56 = vpop.permute.xlu0 %1424  ;;  %v1502_v6 = vsel %vm927_vm4, %v8658_v44, %v1419_v62 }
 0x128   : > { %v1427_v9 = vpop.permute.xlu1 %1426  ;;  %1631 = vrot.lane.b32.xlu0 %v6864_v11, %s6164_s12  ;;  %v8657_v11 = vld [vmem:[#allocation11_spill] sm:$0xff] }
 0x129   : > { %v1499_v20 = vsel %vm927_vm4, %v8657_v11, %v1417_v49  ;;  %v1512_v34 = vsel %vm940_vm5, %v1502_v6, %v1427_v9 }
 0x12a   : > { %1633 = vrot.lane.b32.xlu1 %v7078_v60, %s6164_s12  ;;  %v1433_v33 = vpop.permute.xlu0 %1432  ;;  %v1510_v60 = vsel %vm940_vm5, %v1499_v20, %v1425_v56 }
 0x12b   : > { %v1518_v32 = vsel %vm949_vm6, %v1510_v60, %v1433_v33 }
 0x12c   : > { %v1435_v25 = vpop.permute.xlu1 %1434  ;;  %1644 = vrot.lane.b32.xlu0 %v8656_v41, %s6165_s24 }
 0x12d   : > { %v1520_v12 = vsel %vm949_vm6, %v1512_v34, %v1435_v25  ;;  %v8662_v34 = vld [vmem:[#allocation9_spill] sm:$0xff] }
 0x12e   : > { %1646 = vrot.lane.b32.xlu1 %v5189_v27, %s6165_s24  ;;  %v1441_v0 = vpop.permute.xlu0 %1440 }
 0x12f   : > { %v1526_v21 = vsel %vm958_vm7, %v1518_v32, %v1441_v0  ;;  %v8661_v32 = vld [vmem:[#allocation13_spill] sm:$0xff] }
 0x130   : > { %v1443_v16 = vpop.permute.xlu1 %1442 }
 0x131   : > { %v1528_v53 = vsel %vm958_vm7, %v1520_v12, %v1443_v16 }
 0x132   : > { %v1449_v23 = vpop.permute.xlu0 %1448 }
 0x133   : > { %v1534_v29 = vsel %vm967_vm8, %v1526_v21, %v1449_v23 }
 0x134   : > { %v1451_v57 = vpop.permute.xlu1 %1450 }
 0x135   : > { %v1536_v51 = vsel %vm967_vm8, %v1528_v53, %v1451_v57 }
 0x136   : > { %v1463_v13 = vpop.permute.xlu0 %1462 }
 0x137   : > { %v1542_v10 = vsel %vm976_vm9, %v1534_v29, %v1463_v13 }
 0x138   : > { %v1465_v8 = vpop.permute.xlu1 %1464 }
 0x139   : > { %v1544_v17 = vsel %vm976_vm9, %v1536_v51, %v1465_v8 }
 0x13a   : > { %v1477_v45 = vpop.permute.xlu0 %1476 }
 0x13b   : > { %v1550_v47 = vsel %vm985_vm10, %v1542_v10, %v1477_v45 }
 0x13c   : > { %v1479_v42 = vpop.permute.xlu1 %1478 }
 0x13d   : > { %v1552_v7 = vsel %vm985_vm10, %v1544_v17, %v1479_v42 }
 0x13e   : > { %v1490_v63 = vpop.permute.xlu0 %1489 }
 0x13f   : > { %v1558_v19 = vsel %vm994_vm11, %v1550_v47, %v1490_v63 }
 0x140   : > { %v1421_v2 = vpop.permute.xlu1 %1420  ;;  %5853 = vmatprep.mubr.msk.bf16.mxu1 %vm1743_vm12, %v1558_v19 }
 0x141   : > { %v1505_v52 = vsel %vm927_vm4, %v8659_v40, %v1421_v2 }
 0x142   : > { %v1492_v58 = vpop.permute.xlu0 %1491 }
 0x143   : > { %v1560_v26 = vsel %vm994_vm11, %v1552_v7, %v1492_v58 }
 0x144   : > { %v1423_v14 = vpop.permute.xlu1 %1422  ;;  %5854 = vmatmul.mubr.msk.bf16.vlgmr.msra.gmra.mrb[0].mxu1 %vm1743_vm12, %v1560_v26 }
 0x145   : > { %v1508_v4 = vsel %vm927_vm4, %v8660_v35, %v1423_v14 }
 0x146   : > { %v1429_v55 = vpop.permute.xlu0 %1428 }
 0x147   : > { %v1514_v1 = vsel %vm940_vm5, %v1505_v52, %v1429_v55 }
 0x148   : > { %v1431_v50 = vpop.permute.xlu1 %1430 }
 0x149   : > { %v1516_v5 = vsel %vm940_vm5, %v1508_v4, %v1431_v50 }
 0x14a   : > { %v1437_v3 = vpop.permute.xlu0 %1436 }
 0x14b   : > { %v1522_v54 = vsel %vm949_vm6, %v1514_v1, %v1437_v3  ;;  %v7263_v1 = vld [vmem:[%s8520_s3] ss:$0 sm:$0xff] }
 0x14c   : > { %v1439_v48 = vpop.permute.xlu1 %1438 }
 0x14d   : > { %v1524_v15 = vsel %vm949_vm6, %v1516_v5, %v1439_v48  ;;  %v8664_v5 = vld [vmem:[#allocation34_spill] sm:$0xff] }
 0x14e   : > { %v1445_v38 = vpop.permute.xlu0 %1444 }
 0x14f   : > { %v1530_v31 = vsel %vm958_vm7, %v1522_v54, %v1445_v38  ;;  %v8663_v54 = vld [vmem:[#allocation33_spill] sm:$0xff] }
 0x150   : > { %v1447_v39 = vpop.permute.xlu1 %1446 }
 0x151   : > { %v1532_v49 = vsel %vm958_vm7, %v1524_v15, %v1447_v39 }
 0x152   : > { %v1453_v43 = vpop.permute.xlu0 %1452 }
 0x153   : > { %v1538_v59 = vsel %vm967_vm8, %v1530_v31, %v1453_v43 }
 0x154   : > { %v1455_v28 = vpop.permute.xlu1 %1454 }
 0x155   : > { %v1540_v37 = vsel %vm967_vm8, %v1532_v49, %v1455_v28 }
 0x156   : > { %v1467_v61 = vpop.permute.xlu0 %1466 }
 0x157   : > { %v1546_v36 = vsel %vm976_vm9, %v1538_v59, %v1467_v61 }
 0x158   : > { %v1469_v18 = vpop.permute.xlu1 %1468 }
 0x159   : > { %v1548_v22 = vsel %vm976_vm9, %v1540_v37, %v1469_v18 }
 0x15a   : > { %v1481_v24 = vpop.permute.xlu0 %1480 }
 0x15b   : > { %v1554_v62 = vsel %vm985_vm10, %v1546_v36, %v1481_v24 }
 0x15c   : > { %v1483_v46 = vpop.permute.xlu1 %1482 }
 0x15d   : > { %v1556_v27 = vsel %vm985_vm10, %v1548_v22, %v1483_v46 }
 0x15e   : > { %v1494_v56 = vpop.permute.xlu0 %1493 }
 0x15f   : > { %v1562_v9 = vsel %vm994_vm11, %v1554_v62, %v1494_v56 }
 0x160   : > { %v1496_v33 = vpop.permute.xlu1 %1495  ;;  %5857 = vmatprep.mubr.msk.bf16.mxu1 %vm1743_vm12, %v1562_v9 }
 0x161   : > { %v1564_v25 = vsel %vm994_vm11, %v1556_v27, %v1496_v33 }
 0x162   : > { %5858 = vmatmul.mubr.msk.bf16.gmra.mrb[4].mxu1 %vm1743_vm12, %v1564_v25  ;;  %v1580_v30 = vpop.permute.xlu0 %1579 }
 0x163   : > { %v1650_v45 = vsel %vm927_vm4, %v8661_v32, %v1580_v30 }
 0x164   : > { %v1582_v41 = vpop.permute.xlu1 %1581 }
 0x165   : > { %v1653_v10 = vsel %vm927_vm4, %v8662_v34, %v1582_v41 }
 0x166   : > { %v1588_v0 = vpop.permute.xlu0 %1587 }
 0x167   : > { %v1661_v44 = vsel %vm940_vm5, %v1650_v45, %v1588_v0 }
 0x168   : > { %v1590_v16 = vpop.permute.xlu1 %1589 }
 0x169   : > { %v1663_v63 = vsel %vm940_vm5, %v1653_v10, %v1590_v16 }
 0x16a   : > { %v1596_v23 = vpop.permute.xlu0 %1595 }
 0x16b   : > { %v1669_v6 = vsel %vm949_vm6, %v1661_v44, %v1596_v23 }
 0x16c   : > { %v1598_v57 = vpop.permute.xlu1 %1597 }
 0x16d   : > { %v1671_v19 = vsel %vm949_vm6, %v1663_v63, %v1598_v57 }
 0x16e   : > { %v1604_v13 = vpop.permute.xlu0 %1603 }
 0x16f   : > { %v1677_v42 = vsel %vm958_vm7, %v1669_v6, %v1604_v13 }
 0x170   : > { %v1606_v11 = vpop.permute.xlu1 %1605 }
 0x171   : > { %v1679_v17 = vsel %vm958_vm7, %v1671_v19, %v1606_v11 }
 0x172   : > { %v1612_v20 = vpop.permute.xlu0 %1611 }
 0x173   : > { %v1685_v12 = vsel %vm967_vm8, %v1677_v42, %v1612_v20 }
 0x174   : > { %v1614_v8 = vpop.permute.xlu1 %1613 }
 0x175   : > { %v1687_v58 = vsel %vm967_vm8, %v1679_v17, %v1614_v8 }
 0x176   : > { %v1620_v60 = vpop.permute.xlu0 %1619 }
 0x177   : > { %v1693_v53 = vsel %vm976_vm9, %v1685_v12, %v1620_v60 }
 0x178   : > { %v1622_v21 = vpop.permute.xlu1 %1621 }
 0x179   : > { %v1695_v14 = vsel %vm976_vm9, %v1687_v58, %v1622_v21 }
 0x17a   : > { %v1628_v29 = vpop.permute.xlu0 %1627 }
 0x17b   : > { %v1701_v51 = vsel %vm985_vm10, %v1693_v53, %v1628_v29 }
 0x17c   : > { %v1630_v47 = vpop.permute.xlu1 %1629 }
 0x17d   : > { %v1703_v55 = vsel %vm985_vm10, %v1695_v14, %v1630_v47 }
 0x17e   : > { %v1641_v2 = vpop.permute.xlu0 %1640 }
 0x17f   : > { %v1709_v7 = vsel %vm994_vm11, %v1701_v51, %v1641_v2 }
 0x180   : > { %v1584_v26 = vpop.permute.xlu1 %1583  ;;  %5861 = vmatprep.mubr.msk.bf16.mxu1 %vm1743_vm12, %v1709_v7 }
 0x181   : > { %v1656_v24 = vsel %vm927_vm4, %v8663_v54, %v1584_v26 }
 0x182   : > { %v1643_v50 = vpop.permute.xlu0 %1642 }
 0x183   : > { %v1711_v3 = vsel %vm994_vm11, %v1703_v55, %v1643_v50 }
 0x184   : > { %v1586_v48 = vpop.permute.xlu1 %1585  ;;  %5862 = vmatmul.mubr.msk.bf16.gmra.mrb[8].mxu1 %vm1743_vm12, %v1711_v3 }
 0x185   : > { %v1659_v31 = vsel %vm927_vm4, %v8664_v5, %v1586_v48 }
 0x186   : > { %v1592_v38 = vpop.permute.xlu0 %1591 }
 0x187   : > { %v1665_v49 = vsel %vm940_vm5, %v1656_v24, %v1592_v38 }
 0x188   : > { %v1594_v39 = vpop.permute.xlu1 %1593 }
 0x189   : > { %v1667_v36 = vsel %vm940_vm5, %v1659_v31, %v1594_v39 }
 0x18a   : > { %v1600_v43 = vpop.permute.xlu0 %1599 }
 0x18b   : > { %v1673_v56 = vsel %vm949_vm6, %v1665_v49, %v1600_v43 }
 0x18c   : > { %v1602_v28 = vpop.permute.xlu1 %1601 }
 0x18d   : > { %v1675_v22 = vsel %vm949_vm6, %v1667_v36, %v1602_v28 }
 0x18e   : > { %v1608_v61 = vpop.permute.xlu0 %1607 }
 0x18f   : > { %v1681_v25 = vsel %vm958_vm7, %v1673_v56, %v1608_v61 }
 0x190   : > { %v1610_v40 = vpop.permute.xlu1 %1609 }
 0x191   : > { %v1683_v30 = vsel %vm958_vm7, %v1675_v22, %v1610_v40 }
 0x192   : > { %v1616_v52 = vpop.permute.xlu0 %1615 }
 0x193   : > { %v1689_v0 = vsel %vm967_vm8, %v1681_v25, %v1616_v52 }
 0x194   : > { %v1618_v18 = vpop.permute.xlu1 %1617 }
 0x195   : > { %v1691_v16 = vsel %vm967_vm8, %v1683_v30, %v1618_v18 }
 0x196   : > { %v1624_v35 = vpop.permute.xlu0 %1623 }
 0x197   : > { %v5839_v4 = vpop.f32.mrb[0].mxu0  ;;  %v1697_v57 = vsel %vm976_vm9, %v1689_v0, %v1624_v35 }
 0x198   : > { %v1823_v15 = vadd.f32 %v5839_v4, %v7263_v1  ;;  %v1626_v59 = vpop.permute.xlu1 %1625  ;;  %v1814_v46 = vpop.f32.mrb[1].mxu0 }
 0x199   : > { %v1815_v37 = vadd.f32 %v7263_v1, %v1814_v46  ;;  %v5840_v62 = vpop.f32.mrb[2].mxu0  ;;  %v1699_v8 = vsel %vm976_vm9, %v1691_v16, %v1626_v59 }
 0x19a   : > { %1945 = vst [vmem:[%s7275_s22 + $0x10] sm:$0xff] %v1823_v15  ;;  %v1826_v9 = vadd.f32 %v5840_v62, %v7263_v1  ;;  %v1632_v27 = vpop.permute.xlu0 %1631  ;;  %v1817_v33 = vpop.f32.mrb[3].mxu0  ;;  %v2018_v45 = vmul.f32 %v1823_v15, %v1823_v15 }
 0x19b   : > { %1943 = vst [vmem:[%s7275_s22] sm:$0xff] %v1815_v37  ;;  %v1818_v41 = vadd.f32 %v7263_v1, %v1817_v33  ;;  %v2016_v13 = vmul.f32 %v1815_v37, %v1815_v37  ;;  %v1705_v60 = vsel %vm985_vm10, %v1697_v57, %v1632_v27 }
 0x19c   : > { %1946 = vst [vmem:[%s7275_s22 + $0x18] sm:$0xff] %v1826_v9  ;;  %v1634_v23 = vpop.permute.xlu1 %1633  ;;  %v2019_v34 = vmul.f32 %v1826_v9, %v1826_v9 }
 0x19d   : > { %1944 = vst [vmem:[%s7275_s22 + $0x8] sm:$0xff] %v1818_v41  ;;  %v1976_v11 = vadd.f32 %v1818_v41, %v1815_v37  ;;  %v2017_v20 = vmul.f32 %v1818_v41, %v1818_v41  ;;  %v1707_v29 = vsel %vm985_vm10, %v1699_v8, %v1634_v23 }
 0x19e   : > { %v1645_v32 = vpop.permute.xlu0 %1644 }
 0x19f   : > { %v1977_v21 = vadd.f32 %v1976_v11, %v1823_v15  ;;  %v2048_v44 = vadd.f32 %v2017_v20, %v2016_v13  ;;  %v1713_v6 = vsel %vm994_vm11, %v1705_v60, %v1645_v32 }
 0x1a0   : > { %v1647_v42 = vpop.permute.xlu1 %1646  ;;  %5865 = vmatprep.mubr.msk.bf16.mxu1 %vm1743_vm12, %v1713_v6 }
 0x1a1   : > { %v2049_v10 = vadd.f32 %v2048_v44, %v2018_v45  ;;  %v1715_v12 = vsel %vm994_vm11, %v1707_v29, %v1647_v42  ;;  %v1978_v47 = vadd.f32 %v1977_v21, %v1826_v9 }
 0x1a2   : > { %5866 = vmatmul.mubr.msk.bf16.gmra.mrb[12].mxu1 %vm1743_vm12, %v1715_v12 }
 0x1a3   : > { %v2050_v63 = vadd.f32 %v2049_v10, %v2019_v34 }
 0x1b5   : > { %v5843_v53 = vpop.f32.mrb[4].mxu0 }
 0x1b6   : > { %v1839_v19 = vadd.f32 %v5843_v53, %v7263_v1  ;;  %v1830_v51 = vpop.f32.mrb[5].mxu0 }
 0x1b7   : > { %v1831_v2 = vadd.f32 %v7263_v1, %v1830_v51  ;;  %v5844_v17 = vpop.f32.mrb[6].mxu0 }
 0x1b8   : > { %1949 = vst [vmem:[%s7275_s22 + $0x30] sm:$0xff] %v1839_v19  ;;  %v1842_v7 = vadd.f32 %v5844_v17, %v7263_v1  ;;  %v1833_v58 = vpop.f32.mrb[7].mxu0  ;;  %v2022_v38 = vmul.f32 %v1839_v19, %v1839_v19 }
 0x1b9   : > { %1947 = vst [vmem:[%s7275_s22 + $0x20] sm:$0xff] %v1831_v2  ;;  %v1979_v26 = vadd.f32 %v1978_v47, %v1831_v2  ;;  %v2020_v14 = vmul.f32 %v1831_v2, %v1831_v2  ;;  %v1834_v55 = vadd.f32 %v7263_v1, %v1833_v58 }
 0x1ba   : > { %1950 = vst [vmem:[%s7275_s22 + $0x38] sm:$0xff] %v1842_v7  ;;  %v2023_v28 = vmul.f32 %v1842_v7, %v1842_v7 }
 0x1bb   : > { %v2051_v50 = vadd.f32 %v2050_v63, %v2020_v14  ;;  %1948 = vst [vmem:[%s7275_s22 + $0x28] sm:$0xff] %v1834_v55  ;;  %v1980_v3 = vadd.f32 %v1979_v26, %v1834_v55  ;;  %v2021_v48 = vmul.f32 %v1834_v55, %v1834_v55 }
 0x1bd   : > { %v1981_v39 = vadd.f32 %v1980_v3, %v1839_v19  ;;  %v2052_v43 = vadd.f32 %v2051_v50, %v2021_v48 }
 0x1bf   : > { %v2053_v61 = vadd.f32 %v2052_v43, %v2022_v38  ;;  %v1982_v40 = vadd.f32 %v1981_v39, %v1842_v7 }
 0x1c1   : > { %v2054_v52 = vadd.f32 %v2053_v61, %v2023_v28 }
 0x1d7   : > { %v5847_v18 = vpop.f32.mrb[8].mxu0 }
 0x1d8   : > { %v1855_v35 = vadd.f32 %v5847_v18, %v7263_v1  ;;  %v1846_v4 = vpop.f32.mrb[9].mxu0 }
 0x1d9   : > { %v1847_v54 = vadd.f32 %v7263_v1, %v1846_v4  ;;  %v5848_v24 = vpop.f32.mrb[10].mxu0 }
 0x1da   : > { %1953 = vst [vmem:[%s7275_s22 + $0x50] sm:$0xff] %v1855_v35  ;;  %v1858_v5 = vadd.f32 %v5848_v24, %v7263_v1  ;;  %v1849_v31 = vpop.f32.mrb[11].mxu0  ;;  %v2026_v62 = vmul.f32 %v1855_v35, %v1855_v35 }
 0x1db   : > { %1951 = vst [vmem:[%s7275_s22 + $0x40] sm:$0xff] %v1847_v54  ;;  %v1983_v15 = vadd.f32 %v1982_v40, %v1847_v54  ;;  %v2024_v59 = vmul.f32 %v1847_v54, %v1847_v54  ;;  %v1850_v46 = vadd.f32 %v7263_v1, %v1849_v31 }
 0x1dc   : > { %1954 = vst [vmem:[%s7275_s22 + $0x58] sm:$0xff] %v1858_v5  ;;  %v2027_v9 = vmul.f32 %v1858_v5, %v1858_v5 }
 0x1dd   : > { %v2055_v49 = vadd.f32 %v2054_v52, %v2024_v59  ;;  %1952 = vst [vmem:[%s7275_s22 + $0x48] sm:$0xff] %v1850_v46  ;;  %v1984_v36 = vadd.f32 %v1983_v15, %v1850_v46  ;;  %v2025_v37 = vmul.f32 %v1850_v46, %v1850_v46 }
 0x1df   : > { %v1985_v56 = vadd.f32 %v1984_v36, %v1855_v35  ;;  %v2056_v22 = vadd.f32 %v2055_v49, %v2025_v37 }
 0x1e1   : > { %v2057_v27 = vadd.f32 %v2056_v22, %v2026_v62  ;;  %v1986_v33 = vadd.f32 %v1985_v56, %v1858_v5 }
 0x1e3   : > { %v2058_v25 = vadd.f32 %v2057_v27, %v2027_v9 }
 0x1f5   : > { %v5851_v30 = vpop.f32.mrb[12].mxu0 }
 0x1f6   : > { %v1871_v41 = vadd.f32 %v5851_v30, %v7263_v1  ;;  %v1862_v0 = vpop.f32.mrb[13].mxu0 }
 0x1f7   : > { %v1863_v16 = vadd.f32 %v7263_v1, %v1862_v0  ;;  %v5852_v23 = vpop.f32.mrb[14].mxu0 }
 0x1f8   : > { %1957 = vst [vmem:[%s7275_s22 + $0x70] sm:$0xff] %v1871_v41  ;;  %v1874_v57 = vadd.f32 %v5852_v23, %v7263_v1  ;;  %v1865_v13 = vpop.f32.mrb[15].mxu0  ;;  %v2030_v21 = vmul.f32 %v1871_v41, %v1871_v41 }
 0x1f9   : > { %1955 = vst [vmem:[%s7275_s22 + $0x60] sm:$0xff] %v1863_v16  ;;  %v1987_v11 = vadd.f32 %v1986_v33, %v1863_v16  ;;  %v2028_v20 = vmul.f32 %v1863_v16, %v1863_v16  ;;  %v1866_v8 = vadd.f32 %v7263_v1, %v1865_v13 }
 0x1fa   : > { %1958 = vst [vmem:[%s7275_s22 + $0x78] sm:$0xff] %v1874_v57  ;;  %v2031_v29 = vmul.f32 %v1874_v57, %v1874_v57 }
 0x1fb   : > { %v2059_v60 = vadd.f32 %v2058_v25, %v2028_v20  ;;  %1956 = vst [vmem:[%s7275_s22 + $0x68] sm:$0xff] %v1866_v8  ;;  %v1988_v32 = vadd.f32 %v1987_v11, %v1866_v8  ;;  %v2029_v45 = vmul.f32 %v1866_v8, %v1866_v8 }
 0x1fd   : > { %v1989_v44 = vadd.f32 %v1988_v32, %v1871_v41  ;;  %v2060_v6 = vadd.f32 %v2059_v60, %v2029_v45 }
 0x1ff   : > { %v2061_v42 = vadd.f32 %v2060_v6, %v2030_v21  ;;  %v1990_v34 = vadd.f32 %v1989_v44, %v1874_v57 }
 0x201   : > { %v2062_v10 = vadd.f32 %v2061_v42, %v2031_v29 }
 0x217   : > { %v5855_v12 = vpop.f32.mrb[0].mxu1 }
 0x218   : > { %v1887_v47 = vadd.f32 %v5855_v12, %v7263_v1  ;;  %v1878_v63 = vpop.f32.mrb[1].mxu1 }
 0x219   : > { %v1879_v53 = vadd.f32 %v7263_v1, %v1878_v63  ;;  %v5856_v19 = vpop.f32.mrb[2].mxu1 }
 0x21a   : > { %1961 = vst [vmem:[%s7275_s22 + $0x90] sm:$0xff] %v1887_v47  ;;  %v1890_v51 = vadd.f32 %v5856_v19, %v7263_v1  ;;  %v1881_v2 = vpop.f32.mrb[3].mxu1  ;;  %v2034_v50 = vmul.f32 %v1887_v47, %v1887_v47 }
 0x21b   : > { %1959 = vst [vmem:[%s7275_s22 + $0x80] sm:$0xff] %v1879_v53  ;;  %v1991_v17 = vadd.f32 %v1990_v34, %v1879_v53  ;;  %v2032_v7 = vmul.f32 %v1879_v53, %v1879_v53  ;;  %v1882_v58 = vadd.f32 %v7263_v1, %v1881_v2 }
 0x21c   : > { %1962 = vst [vmem:[%s7275_s22 + $0x98] sm:$0xff] %v1890_v51  ;;  %v2035_v38 = vmul.f32 %v1890_v51, %v1890_v51 }
 0x21d   : > { %v2063_v26 = vadd.f32 %v2062_v10, %v2032_v7  ;;  %1960 = vst [vmem:[%s7275_s22 + $0x88] sm:$0xff] %v1882_v58  ;;  %v1992_v14 = vadd.f32 %v1991_v17, %v1882_v58  ;;  %v2033_v55 = vmul.f32 %v1882_v58, %v1882_v58 }
 0x21f   : > { %v1993_v3 = vadd.f32 %v1992_v14, %v1887_v47  ;;  %v2064_v48 = vadd.f32 %v2063_v26, %v2033_v55 }
 0x221   : > { %v2065_v39 = vadd.f32 %v2064_v48, %v2034_v50  ;;  %v1994_v43 = vadd.f32 %v1993_v3, %v1890_v51 }
 0x223   : > { %v2066_v28 = vadd.f32 %v2065_v39, %v2035_v38 }
 0x235   : > { %v5859_v61 = vpop.f32.mrb[4].mxu1 }
 0x236   : > { %v1903_v40 = vadd.f32 %v5859_v61, %v7263_v1  ;;  %v1894_v52 = vpop.f32.mrb[5].mxu1 }
 0x237   : > { %v1895_v18 = vadd.f32 %v7263_v1, %v1894_v52  ;;  %v5860_v35 = vpop.f32.mrb[6].mxu1 }
 0x238   : > { %1965 = vst [vmem:[%s7275_s22 + $0xb0] sm:$0xff] %v1903_v40  ;;  %v1906_v4 = vadd.f32 %v5860_v35, %v7263_v1  ;;  %v1897_v54 = vpop.f32.mrb[7].mxu1  ;;  %v2038_v49 = vmul.f32 %v1903_v40, %v1903_v40 }
 0x239   : > { %1963 = vst [vmem:[%s7275_s22 + $0xa0] sm:$0xff] %v1895_v18  ;;  %v1995_v24 = vadd.f32 %v1994_v43, %v1895_v18  ;;  %v2036_v5 = vmul.f32 %v1895_v18, %v1895_v18  ;;  %v1898_v31 = vadd.f32 %v7263_v1, %v1897_v54 }
 0x23a   : > { %1966 = vst [vmem:[%s7275_s22 + $0xb8] sm:$0xff] %v1906_v4  ;;  %v2039_v62 = vmul.f32 %v1906_v4, %v1906_v4 }
 0x23b   : > { %v2067_v15 = vadd.f32 %v2066_v28, %v2036_v5  ;;  %1964 = vst [vmem:[%s7275_s22 + $0xa8] sm:$0xff] %v1898_v31  ;;  %v1996_v59 = vadd.f32 %v1995_v24, %v1898_v31  ;;  %v2037_v46 = vmul.f32 %v1898_v31, %v1898_v31  ;;  %v2015_v5 = vld [vmem:[#allocation4] sm:$0x1] }
 0x23d   : > { %v1997_v36 = vadd.f32 %v1996_v59, %v1903_v40  ;;  %v2068_v37 = vadd.f32 %v2067_v15, %v2037_v46 }
 0x23f   : > { %v2069_v56 = vadd.f32 %v2068_v37, %v2038_v49  ;;  %v1998_v22 = vadd.f32 %v1997_v36, %v1906_v4  ;;  %v1975_v4 = vld [vmem:[#allocation3] sm:$0x1] }
 0x241   : > { %v2070_v9 = vadd.f32 %v2069_v56, %v2039_v62 }
 0x257   : > { %v5863_v27 = vpop.f32.mrb[8].mxu1 }
 0x258   : > { %v1919_v33 = vadd.f32 %v5863_v27, %v7263_v1  ;;  %v1910_v25 = vpop.f32.mrb[9].mxu1 }
 0x259   : > { %v1911_v30 = vadd.f32 %v7263_v1, %v1910_v25  ;;  %v5864_v41 = vpop.f32.mrb[10].mxu1 }
 0x25a   : > { %1969 = vst [vmem:[%s7275_s22 + $0xd0] sm:$0xff] %v1919_v33  ;;  %v1922_v0 = vadd.f32 %v5864_v41, %v7263_v1  ;;  %v1913_v16 = vpop.f32.mrb[11].mxu1  ;;  %v2042_v60 = vmul.f32 %v1919_v33, %v1919_v33 }
 0x25b   : > { %1967 = vst [vmem:[%s7275_s22 + $0xc0] sm:$0xff] %v1911_v30  ;;  %v1999_v23 = vadd.f32 %v1998_v22, %v1911_v30  ;;  %v2040_v57 = vmul.f32 %v1911_v30, %v1911_v30  ;;  %v1914_v13 = vadd.f32 %v7263_v1, %v1913_v16 }
 0x25c   : > { %1970 = vst [vmem:[%s7275_s22 + $0xd8] sm:$0xff] %v1922_v0  ;;  %v2043_v21 = vmul.f32 %v1922_v0, %v1922_v0 }
 0x25d   : > { %v2071_v11 = vadd.f32 %v2070_v9, %v2040_v57  ;;  %1968 = vst [vmem:[%s7275_s22 + $0xc8] sm:$0xff] %v1914_v13  ;;  %v2000_v20 = vadd.f32 %v1999_v23, %v1914_v13  ;;  %v2041_v8 = vmul.f32 %v1914_v13, %v1914_v13 }
 0x25f   : > { %v2001_v32 = vadd.f32 %v2000_v20, %v1919_v33  ;;  %v2072_v45 = vadd.f32 %v2071_v11, %v2041_v8 }
 0x261   : > { %v2073_v44 = vadd.f32 %v2072_v45, %v2042_v60  ;;  %v2002_v6 = vadd.f32 %v2001_v32, %v1922_v0 }
 0x263   : > { %v2074_v29 = vadd.f32 %v2073_v44, %v2043_v21 }
 0x275   : > { %v5867_v42 = vpop.f32.mrb[12].mxu1 }
 0x276   : > { %v1935_v34 = vadd.f32 %v5867_v42, %v7263_v1  ;;  %v1926_v10 = vpop.f32.mrb[13].mxu1 }
 0x277   : > { %v1927_v12 = vadd.f32 %v7263_v1, %v1926_v10  ;;  %v5868_v47 = vpop.f32.mrb[14].mxu1 }
 0x278   : > { %1973 = vst [vmem:[%s7275_s22 + $0xf0] sm:$0xff] %v1935_v34  ;;  %v1938_v63 = vadd.f32 %v5868_v47, %v7263_v1  ;;  %v1929_v53 = vpop.f32.mrb[15].mxu1  ;;  %v2046_v26 = vmul.f32 %v1935_v34, %v1935_v34 }
 0x279   : > { %1971 = vst [vmem:[%s7275_s22 + $0xe0] sm:$0xff] %v1927_v12  ;;  %v2003_v19 = vadd.f32 %v2002_v6, %v1927_v12  ;;  %v2044_v51 = vmul.f32 %v1927_v12, %v1927_v12  ;;  %v1930_v2 = vadd.f32 %v7263_v1, %v1929_v53 }
 0x27a   : > { %1974 = vst [vmem:[%s7275_s22 + $0xf8] sm:$0xff] %v1938_v63  ;;  %v2047_v50 = vmul.f32 %v1938_v63, %v1938_v63 }
 0x27b   : > { %v2075_v17 = vadd.f32 %v2074_v29, %v2044_v51  ;;  %1972 = vst [vmem:[%s7275_s22 + $0xe8] sm:$0xff] %v1930_v2  ;;  %v2004_v7 = vadd.f32 %v2003_v19, %v1930_v2  ;;  %v2045_v58 = vmul.f32 %v1930_v2, %v1930_v2 }
 0x27d   : > { %v2005_v14 = vadd.f32 %v2004_v7, %v1935_v34  ;;  %v2076_v55 = vadd.f32 %v2075_v17, %v2045_v58 }
 0x27f   : > { %v2006_v3 = vadd.f32 %v2005_v14, %v1938_v63  ;;  %v2077_v48 = vadd.f32 %v2076_v55, %v2046_v26 }
 0x281   : > { %v2007_v38 = vrot.slane %v2006_v3, 4  ;;  %v2078_v39 = vadd.f32 %v2077_v48, %v2047_v50 }
 0x283   : > { %v2008_v43 = vadd.f32 %v2007_v38, %v2006_v3  ;;  %v2079_v28 = vrot.slane %v2078_v39, 4 }
 0x285   : > { %v2009_v61 = vrot.slane %v2008_v43, 2  ;;  %v2080_v40 = vadd.f32 %v2079_v28, %v2078_v39 }
 0x287   : > { %v2010_v52 = vadd.f32 %v2009_v61, %v2008_v43  ;;  %v2081_v18 = vrot.slane %v2080_v40, 2 }
 0x289   : > { %v2011_v1 = vrot.slane %v2010_v52, 1  ;;  %v2082_v35 = vadd.f32 %v2081_v18, %v2080_v40 }
 0x28b   : > { %v2012_v54 = vadd.f32 %v2011_v1, %v2010_v52  ;;  %v2083_v24 = vrot.slane %v2082_v35, 1 }
 0x28d   : > { %v2013_v31 = vadd.f32 %v2012_v54, %v1975_v4  ;;  %v2084_v15 = vadd.f32 %v2083_v24, %v2082_v35 }
 0x28f   : > { %2014 = vst [vmem:[#allocation3] sm:$0x1] %v2013_v31  ;;  %v2085_v59 = vadd.f32 %v2084_v15, %v2015_v5 }
 0x291   : > { %2086 = vst [vmem:[#allocation4] sm:$0x1] %v2085_v59 }
 0x292 PF: > { %p5211_p9 = scmp.ne.s32.totalorder %s6143_s14, 1 }
 0x294   : > { %2090 = sbr.rel (%p5211_p9) target bundleno = 1159 (0x487), region = 72 }
 0x29b   : > { %v5983_v46 = vld [vmem:[%s8523_s6 + $0x40] sm:$0xff]   ;;  %v5985_v36 = vld [vmem:[%s8523_s6 + $0x48] sm:$0xff]   ;;  %v5987_v62 = vld [vmem:[%s8523_s6 + $0x50] sm:$0xff]   ;;  %vm2415_vm13 = vcmask 1040384   ;;  %v8565_v47 = vmov 0   ;;  %v2140_v48 = vlaneseq  ;;  %s5212_s27 = sshll.u32 %s6139_s13, 8 }
 0x29c   : > { %v5984_v49 = vld [vmem:[%s8523_s6] sm:$0xff]   ;;  %5506 = vmatprep.subr.bf16.mxu0 %v5983_v46  ;;  %v5986_v37 = vld [vmem:[%s8523_s6 + $0x8] sm:$0xff]   ;;  %v5988_v56 = vld [vmem:[%s8523_s6 + $0x10] sm:$0xff]   ;;  %v2346_v63 = vrot.slane %v8565_v47, 7  ;;  %vm2416_vm14 = vsmask.f32 256  ;;  %v5229_v14 = vcombine.low %v8565_v47, %v8565_v47  ;;  %v5230_v40 = vcombine.high %v8565_v47, %v8565_v47 }
 0x29d   : > { %5507 = vmatpush3.bf16.msra.mxu0 %v5984_v49  ;;  %v5989_v22 = vld [vmem:[%s8523_s6 + $0xc0] sm:$0xff]   ;;  %v5991_v27 = vld [vmem:[%s8523_s6 + $0x58] sm:$0xff]   ;;  %v5993_v25 = vld [vmem:[%s8523_s6 + $0xc8] sm:$0xff]   ;;  %v2141_v52 = vshrl.u32 %v2140_v48, 7  ;;  %vm2572_vm0 = vsmask.f32 3328 }
 0x29e   : > { %5508 = vmatprep.subr.bf16.mxu0 %v5985_v36  ;;  %v5990_v9 = vld [vmem:[%s8523_s6 + $0x80] sm:$0xff]   ;;  %5546 = vmatprep.subr.bf16.mxu1 %v5989_v22  ;;  %v5992_v33 = vld [vmem:[%s8523_s6 + $0x18] sm:$0xff]   ;;  %v5994_v30 = vld [vmem:[%s8523_s6 + $0x88] sm:$0xff]   ;;  %v2728_v38 = vshrl.u32 %v5229_v14, 16  ;;  %v2731_v43 = vshll.u32 %v5229_v14, 16  ;;  %v2737_v5 = vshll.u32 %v5230_v40, 16 }
 0x29f   : > { %5547 = vmatpush3.bf16.msra.mxu1 %v5990_v9  ;;  %v5995_v41 = vld [vmem:[%s8523_s6 + $0x60] sm:$0xff]   ;;  %v5997_v16 = vld [vmem:[%s8523_s6 + $0xd0] sm:$0xff]   ;;  %v5999_v57 = vld [vmem:[%s8523_s6 + $0x68] sm:$0xff]   ;;  %v2142_v15 = vsub.s32 0, %v2141_v52  ;;  %s7478_s26 = scalar_lea.vmem [#allocation2], %s5212_s27  ;;  %vm2427_vm3 = vcmask 1043456  }
 0x2a0   : > { %5548 = vmatprep.subr.bf16.mxu1 %v5993_v25  ;;  %v5996_v0 = vld [vmem:[%s8523_s6 + $0x20] sm:$0xff]   ;;  %v5998_v23 = vld [vmem:[%s8523_s6 + $0x90] sm:$0xff]   ;;  %v6000_v13 = vld [vmem:[%s8523_s6 + $0x28] sm:$0xff]   ;;  %v2730_v18 = vrot.slane %v2728_v38, 4  ;;  %v2733_v1 = vrot.slane %v2731_v43, 5 }
 0x2a1   : > { %5509 = vmatpush3.bf16.msra.mxu0 %v5986_v37  ;;  %v6001_v11 = vld [vmem:[%s8523_s6 + $0xd8] sm:$0xff]   ;;  %v6003_v8 = vld [vmem:[%s8523_s6 + $0x70] sm:$0xff]   ;;  %v6005_v32 = vld [vmem:[%s8523_s6 + $0xe0] sm:$0xff]   ;;  %vm2573_vm1 = vsmask.f32 7440 }
 0x2a2   : > { %5510 = vmatprep.subr.bf16.mxu0 %v5987_v62  ;;  %v6002_v20 = vld [vmem:[%s8523_s6 + $0x98] sm:$0xff]   ;;  %v6004_v60 = vld [vmem:[%s8523_s6 + $0x30] sm:$0xff]   ;;  %v6006_v45 = vld [vmem:[%s8523_s6 + $0xa0] sm:$0xff]   ;;  %v2734_v59 = vor.u32 %v2733_v1, %v2730_v18 }
 0x2a3   : > { %5549 = vmatpush3.bf16.msra.mxu1 %v5994_v30  ;;  %v6007_v21 = vld [vmem:[%s8523_s6 + $0x78] sm:$0xff]   ;;  %v6009_v44 = vld [vmem:[%s8523_s6 + $0xe8] sm:$0xff]   ;;  %v2091_v29 = vld [vmem:[#allocation3] sm:$0x1]  ;;  %v2739_v30 = vrot.slane %v2737_v5, 5 }
 0x2a4   : > { %5550 = vmatprep.subr.bf16.mxu1 %v5997_v16  ;;  %v6008_v6 = vld [vmem:[%s8523_s6 + $0x38] sm:$0xff]   ;;  %v2093_v42 = vld [vmem:[#allocation4] sm:$0x1]  ;;  %v2092_v34 = vmul.f32 0.001953125, %v2091_v29  ;;  %v6010_v12 = vld [vmem:[%s8523_s6 + $0xa8] sm:$0xff]  }
 0x2a5   : > { %5511 = vmatpush3.bf16.msra.mxu0 %v5988_v56  ;;  %v2094_v10 = vmul.f32 0.001953125, %v2093_v42  ;;  %vm7437_vm15 = vmand %vm2415_vm13, %vm2416_vm14  ;;  %v6011_v51 = vld [vmem:[%s8523_s6 + $0x140] sm:$0xff]   ;;  %v6013_v7 = vld [vmem:[%s8523_s6 + $0xf0] sm:$0xff]  }
 0x2a6   : > { %5512 = vmatprep.subr.bf16.mxu0 %v5991_v27  ;;  %v2095_v53 = vmul.f32 %v2092_v34, %v2092_v34  ;;  %v7446_v17 = vsel %vm7437_vm15, 0, %v2346_v63  ;;  %v6014_v26 = vld [vmem:[%s8523_s6 + $0xb0] sm:$0xff]   ;;  %v6017_v3 = vld [vmem:[%s8523_s6 + $0xf8] sm:$0xff]   ;;  %v6021_v35 = vld [vmem:[%s8523_s6 + $0x1c0] sm:$0xff]  }
 0x2a7   : > { %5551 = vmatpush3.bf16.msra.mxu1 %v5998_v23  ;;  %8667 = vst [vmem:[#allocation40_spill] sm:$0xff] %v7446_v17  ;;  %v5213_v50 = vcombine.low %v7446_v17, %v7446_v17  ;;  %v6018_v39 = vld [vmem:[%s8523_s6 + $0xb8] sm:$0xff]   ;;  %v5214_v4 = vcombine.high %v7446_v17, %v7446_v17  ;;  %v2100_v31 = vld [vmem:[%s8521_s4] sm:$0x1]  ;;  %v2124_v9 = vld [vmem:[%s7478_s26 + $0x88] sm:$0xff] }
 0x2a8   : > { %5552 = vmatprep.subr.bf16.mxu1 %v6001_v11  ;;  %v2096_v2 = vsub.f32 %v2094_v10, %v2095_v53  ;;  %v2102_v36 = vld [vmem:[%s8522_s5] sm:$0x1]  ;;  %v2125_v27 = vld [vmem:[%s7478_s26 + $0x90] sm:$0xff]  ;;  %v2114_v16 = vld [vmem:[%s7478_s26 + $0x38] sm:$0xff] }
 0x2a9   : > { %5513 = vmatpush3.bf16.msra.mxu0 %v5992_v33  ;;  %v2576_v28 = vshrl.u32 %v5213_v50, 16  ;;  %v2579_v61 = vshll.u32 %v5213_v50, 16  ;;  %v2585_v46 = vshll.u32 %v5214_v4, 16  ;;  %v2123_v37 = vld [vmem:[%s7478_s26 + $0x80] sm:$0xff]  ;;  %v2132_v33 = vld [vmem:[%s7478_s26 + $0xc8] sm:$0xff]  ;;  %v2133_v25 = vld [vmem:[%s7478_s26 + $0xd0] sm:$0xff] }
 0x2aa   : > { %5514 = vmatprep.subr.bf16.mxu0 %v5995_v41  ;;  %v2097_v58 = vmax.f32 %v2096_v2, 0.0  ;;  %v2131_v62 = vld [vmem:[%s7478_s26 + $0xc0] sm:$0xff]  ;;  %vm7490_vm2 = vmor %vm2572_vm0, %vm2573_vm1  ;;  %v2134_v42 = vld [vmem:[%s7478_s26 + $0xd8] sm:$0xff] }
 0x2ab   : > { %5553 = vmatpush3.bf16.msra.mxu1 %v6002_v20  ;;  %v2578_v54 = vrot.slane %v2576_v28, 4  ;;  %v2581_v24 = vrot.slane %v2579_v61, 5  ;;  %v2126_v20 = vld [vmem:[%s7478_s26 + $0x98] sm:$0xff] }
 0x2ac   : > { %5554 = vmatprep.subr.bf16.mxu1 %v6005_v32  ;;  %v2098_v55 = vadd.f32 1e-05, %v2097_v58  ;;  %v6109_v23 = vld [vmem:[%s8523_s6 + $0x3f8] sm:$0xff]  }
 0x2ad   : > { %5515 = vmatpush3.bf16.msra.mxu0 %v5996_v0  ;;  %v2582_v56 = vor.u32 %v2581_v24, %v2578_v54 }
 0x2ae   : > { %5516 = vmatprep.subr.bf16.mxu0 %v5999_v57  ;;  %6115 = vrsqrt.f32 %v2098_v55  ;;  %v2735_v57 = vrot.slane %v2734_v59, 4 }
 0x2af   : > { %5555 = vmatpush3.bf16.msra.mxu1 %v6006_v45  ;;  %v2583_v11 = vrot.slane %v2582_v56, 4 }
 0x2b0   : > { %5556 = vmatprep.subr.bf16.mxu1 %v6009_v44  ;;  %v7507_v10 = vsel %vm7490_vm2, %v2735_v57, %v2739_v30 }
 0x2b1   : > { %5517 = vmatpush3.bf16.msra.mxu0 %v6000_v13  ;;  %v2587_v13 = vrot.slane %v2585_v46, 5  ;;  %8670 = vst [vmem:[#allocation41_spill] sm:$0xff] %v7507_v10 }
 0x2b2   : > { %5518 = vmatprep.subr.bf16.mxu0 %v6003_v8 }
 0x2b3   : > { %5557 = vmatpush3.bf16.msra.mxu1 %v6010_v12  ;;  %v2135_v12 = vld [vmem:[%s7478_s26 + $0xe0] sm:$0xff]  ;;  %v7513_v53 = vsel %vm7490_vm2, %v2583_v11, %v2587_v13 }
 0x2b4   : > { %5558 = vmatprep.subr.bf16.mxu1 %v6013_v7  ;;  %8671 = vst [vmem:[#allocation42_spill] sm:$0xff] %v7513_v53 }
 0x2b5   : > { %5519 = vmatpush3.bf16.msra.mxu0 %v6004_v60 }
 0x2b6   : > { %5520 = vmatprep.subr.bf16.mxu0 %v6007_v21  ;;  %v2127_v21 = vld [vmem:[%s7478_s26 + $0xa0] sm:$0xff] }
 0x2b7   : > { %5559 = vmatpush3.bf16.msra.mxu1 %v6014_v26 }
 0x2b8   : > { %5560 = vmatprep.subr.bf16.mxu1 %v6017_v3  ;;  %v6116_v49 = vpop.eup %6115 }
 0x2b9   : > { %5521 = vmatpush3.bf16.msra.mxu0 %v6008_v6  ;;  %v2101_v22 = vmul.f32 %v6116_v49, %v2100_v31 }
 0x2ba   : > { %5586 = vmatprep.subr.bf16.mxu0 %v6011_v51 }
 0x2bb   : > { %5561 = vmatpush3.bf16.msra.mxu1 %v6018_v39  ;;  %v2103_v41 = vmul.f32 %v2101_v22, %v2092_v34  ;;  %v7486_v0 = vrot.slane %v2101_v22, %v2142_v15 }
 0x2bc   : > { %5626 = vmatprep.subr.bf16.mxu1 %v6021_v35 }
 0x2bd   : > { %v2104_v8 = vsub.f32 %v2102_v36, %v2103_v41  ;;  %v2161_v60 = vmul.f32 %v7486_v0, %v2123_v37  ;;  %v2169_v32 = vmul.f32 %v7486_v0, %v2131_v62  ;;  %v2162_v45 = vmul.f32 %v7486_v0, %v2124_v9 }
 0x2be   : > { %v2163_v44 = vmul.f32 %v7486_v0, %v2125_v27  ;;  %v2170_v6 = vmul.f32 %v7486_v0, %v2132_v33  ;;  %v2171_v29 = vmul.f32 %v7486_v0, %v2133_v25  ;;  %v2152_v63 = vmul.f32 %v7486_v0, %v2114_v16 }
 0x2bf   : > { %v7503_v34 = vrot.slane %v2104_v8, %v2142_v15  ;;  %v7516_v51 = vmul.f32 %v7486_v0, %v2126_v20  ;;  %v7519_v2 = vmul.f32 %v7486_v0, %v2127_v21  ;;  %v7528_v3 = vmul.f32 %v7486_v0, %v2134_v42 }
 0x2c0   : > { %v7531_v48 = vmul.f32 %v7486_v0, %v2135_v12  ;;  %v6015_v12 = vld [vmem:[%s8523_s6 + $0x148] sm:$0xff]  }
 0x2c1   : > { %v2199_v7 = vadd.f32 %v7503_v34, %v2161_v60  ;;  %v2207_v58 = vadd.f32 %v7503_v34, %v2169_v32  ;;  %v2200_v26 = vadd.f32 %v7503_v34, %v2162_v45  ;;  %v2201_v14 = vadd.f32 %v7503_v34, %v2163_v44  ;;  %v6012_v45 = vld [vmem:[%s8523_s6 + $0x100] sm:$0xff]  }
 0x2c2   : > { %v2208_v55 = vadd.f32 %v7503_v34, %v2170_v6  ;;  %v2209_v50 = vadd.f32 %v7503_v34, %v2171_v29  ;;  %v2190_v52 = vadd.f32 %v7503_v34, %v2152_v63 }
 0x2c3   : > { %vm2231_vm4 = vcmp.ge.f32.partialorder %v2199_v7, 0.0  ;;  %v2263_v38 = vmul.f32 0.01, %v2199_v7  ;;  %vm2239_vm5 = vcmp.ge.f32.partialorder %v2207_v58, 0.0  ;;  %v2271_v39 = vmul.f32 0.01, %v2207_v58 }
 0x2c4   : > { %vm2232_vm6 = vcmp.ge.f32.partialorder %v2200_v26, 0.0  ;;  %vm2233_vm7 = vcmp.ge.f32.partialorder %v2201_v14, 0.0  ;;  %v2264_v43 = vmul.f32 0.01, %v2200_v26  ;;  %v2265_v28 = vmul.f32 0.01, %v2201_v14 }
 0x2c5   : > { %v2295_v61 = vsel %vm2231_vm4, %v2199_v7, %v2263_v38  ;;  %v2303_v40 = vsel %vm2239_vm5, %v2207_v58, %v2271_v39  ;;  %vm2240_vm8 = vcmp.ge.f32.partialorder %v2208_v55, 0.0  ;;  %v2272_v5 = vmul.f32 0.01, %v2208_v55 }
 0x2c6   : > { %v2327_v18 = vpack.c.bf16 %v2295_v61, %v2295_v61  ;;  %v2335_v1 = vpack.c.bf16 %v2303_v40, %v2303_v40  ;;  %v2296_v35 = vsel %vm2232_vm6, %v2200_v26, %v2264_v43  ;;  %v2297_v4 = vsel %vm2233_vm7, %v2201_v14, %v2265_v28  ;;  %v6016_v28 = vld [vmem:[%s8523_s6 + $0x108] sm:$0xff]  }
 0x2c7   : > { %v2328_v54 = vpack.c.bf16 %v2296_v35, %v2296_v35  ;;  %v2329_v24 = vpack.c.bf16 %v2297_v4, %v2297_v4  ;;  %v2273_v31 = vmul.f32 0.01, %v2209_v50  ;;  %vm2241_vm9 = vcmp.ge.f32.partialorder %v2209_v50, 0.0 }
 0x2c8   : > { %v7535_v15 = vsel %vm2427_vm3, %v2327_v18, 0  ;;  %v2351_v59 = vshrl.u32 %v2335_v1, 16  ;;  %v2354_v46 = vshll.u32 %v2335_v1, 16  ;;  %vm2222_vm10 = vcmp.ge.f32.partialorder %v2190_v52, 0.0  ;;  %v6019_v1 = vld [vmem:[%s8523_s6 + $0x150] sm:$0xff]  }
 0x2c9   : > { %v5231_v49 = vcombine.low %v7535_v15, %v7535_v15  ;;  %v5285_v36 = vcombine.low %v8565_v47, %v7535_v15  ;;  %v7542_v37 = vsel %vm2427_vm3, %v2328_v54, 0  ;;  %v7545_v62 = vsel %vm2427_vm3, %v2329_v24, 0 }
 0x2ca   : > { %v2353_v56 = vrot.slane %v2351_v59, 7  ;;  %v5233_v22 = vcombine.low %v7542_v37, %v7542_v37  ;;  %v5286_v9 = vcombine.low %v7542_v37, %v7545_v62  ;;  %v2304_v27 = vsel %vm2240_vm8, %v2208_v55, %v2272_v5 }
 0x2cb   : > { %4406 = vmatprep.mubr.bf16.mxu0 %v5285_v36  ;;  %v2305_v33 = vsel %vm2241_vm9, %v2209_v50, %v2273_v31  ;;  %v2254_v25 = vmul.f32 0.01, %v2190_v52  ;;  %v5232_v30 = vcombine.high %v7535_v15, %v7535_v15  ;;  %v2336_v16 = vpack.c.bf16 %v2304_v27, %v2304_v27  ;;  %v6020_v27 = vld [vmem:[%s8523_s6 + $0x110] sm:$0xff]  }
 0x2cc   : > { %v2356_v41 = vor.u32 %v2354_v46, %v2353_v56  ;;  %v2337_v57 = vpack.c.bf16 %v2305_v33, %v2305_v33  ;;  %v5234_v13 = vcombine.high %v7542_v37, %v7542_v37  ;;  %v2742_v20 = vshrl.u32 %v5231_v49, 16 }
 0x2cd   : > { %v2286_v11 = vsel %vm2222_vm10, %v2190_v52, %v2254_v25  ;;  %v2745_v8 = vshll.u32 %v5231_v49, 16  ;;  %v2751_v60 = vshll.u32 %v5232_v30, 16  ;;  %v2358_v21 = vshrl.u32 %v2336_v16, 16 }
 0x2ce   : > { %v7558_v32 = vsel %vm7437_vm15, 0, %v2356_v41  ;;  %v2361_v44 = vshll.u32 %v2336_v16, 16  ;;  %v2365_v6 = vshrl.u32 %v2337_v57, 16  ;;  %v2368_v63 = vshll.u32 %v2337_v57, 16 }
 0x2cf   : > { %v5215_v29 = vcombine.low %v7558_v32, %v7558_v32  ;;  %v5281_v42 = vcombine.low %v7446_v17, %v7558_v32  ;;  %v2318_v7 = vpack.c.bf16 %v2286_v11, %v2286_v11  ;;  %v2360_v58 = vrot.slane %v2358_v21, 7 }
 0x2d0   : > { %v2367_v26 = vrot.slane %v2365_v6, 7  ;;  %v2744_v14 = vrot.slane %v2742_v20, 4  ;;  %v2747_v55 = vrot.slane %v2745_v8, 5  ;;  %v2753_v38 = vrot.slane %v2751_v60, 5 }
 0x2d1   : > { %4407 = vmatmul.mubr.bf16.vlgmr.msra.gmra.mrb[0].mxu0 %v5281_v42  ;;  %v7571_v50 = vsel %vm2427_vm3, %v2318_v7, 0  ;;  %v2756_v39 = vshrl.u32 %v5233_v22, 16  ;;  %v2759_v43 = vshll.u32 %v5233_v22, 16  ;;  %v2363_v61 = vor.u32 %v2361_v44, %v2360_v58 }
 0x2d2   : > { %5587 = vmatpush3.bf16.msra.mxu0 %v6012_v45  ;;  %4414 = vmatprep.mubr.bf16.mxu0 %v5286_v9  ;;  %v2370_v40 = vor.u32 %v2368_v63, %v2367_v26  ;;  %v2748_v52 = vor.u32 %v2747_v55, %v2744_v14  ;;  %v2765_v18 = vshll.u32 %v5234_v13, 16  ;;  %v5275_v54 = vcombine.low %v7571_v50, %v7571_v50  ;;  %v6023_v13 = vld [vmem:[%s8523_s6 + $0x158] sm:$0xff]  }
 0x2d3   : > { %5588 = vmatprep.subr.bf16.mxu0 %v6015_v12  ;;  %v2758_v35 = vrot.slane %v2756_v39, 4  ;;  %v2761_v4 = vrot.slane %v2759_v43, 5  ;;  %v5276_v24 = vcombine.high %v7571_v50, %v7571_v50  ;;  %v7585_v5 = vsel %vm7437_vm15, 0, %v2363_v61 }
 0x2d4   : > { %v7589_v31 = vsel %vm7437_vm15, 0, %v2370_v40  ;;  %v2749_v59 = vrot.slane %v2748_v52, 4  ;;  %v2767_v46 = vrot.slane %v2765_v18, 5  ;;  %v7593_v49 = vcombine.low %v7545_v62, %v7545_v62  ;;  %v6028_v52 = vld [vmem:[%s8523_s6 + $0x120] sm:$0xff]  }
 0x2d5   : > { %v5282_v36 = vcombine.low %v7585_v5, %v7589_v31  ;;  %v2762_v56 = vor.u32 %v2761_v4, %v2758_v35  ;;  %v2202_v22 = vadd.f32 %v7503_v34, %v7516_v51  ;;  %v7601_v9 = vcombine.low %v7585_v5, %v7585_v5  ;;  %v6031_v4 = vld [vmem:[%s8523_s6 + $0x168] sm:$0xff]  }
 0x2d6   : > { %5589 = vmatpush3.bf16.msra.mxu0 %v6016_v28  ;;  %v7608_v33 = vsel %vm7490_vm2, %v2749_v59, %v2753_v38  ;;  %v3130_v25 = vshrl.u32 %v5275_v54, 16  ;;  %v3133_v30 = vshll.u32 %v5275_v54, 16  ;;  %v5216_v16 = vcombine.high %v7558_v32, %v7558_v32 }
 0x2d7   : > { %5590 = vmatprep.subr.bf16.mxu0 %v6019_v1  ;;  %v2763_v41 = vrot.slane %v2762_v56, 4  ;;  %v5293_v51 = vcombine.low %v7507_v10, %v7608_v33  ;;  %v2590_v57 = vshrl.u32 %v5215_v29, 16  ;;  %v7617_v8 = vshll.u32 %v5276_v24, 16  ;;  %v6022_v1 = vld [vmem:[%s8523_s6 + $0x180] sm:$0xff]  }
 0x2d8   : > { %v3132_v11 = vrot.slane %v3130_v25, 4  ;;  %v3135_v20 = vrot.slane %v3133_v30, 5  ;;  %v2593_v60 = vshll.u32 %v5215_v29, 16  ;;  %v2599_v44 = vshll.u32 %v5216_v16, 16  ;;  %v6024_v29 = vld [vmem:[%s8523_s6 + $0x118] sm:$0xff]  }
 0x2d9   : > { %4415 = vmatmul.mubr.bf16.gmra.mrb[4].mxu0 %v5282_v36  ;;  %v7621_v45 = vsel %vm7490_vm2, %v2763_v41, %v2767_v46  ;;  %4471 = vmatprep.mubr.bf16.mxu1 %v5293_v51  ;;  %v2592_v21 = vrot.slane %v2590_v57, 4  ;;  %v2203_v6 = vadd.f32 %v7503_v34, %v7519_v2  ;;  %vm2234_vm11 = vcmp.ge.f32.partialorder %v2202_v22, 0.0  ;;  %v6027_v2 = vld [vmem:[%s8523_s6 + $0x160] sm:$0xff]   ;;  %v6026_v51 = vld [vmem:[%s8523_s6 + $0x188] sm:$0xff]  }
 0x2da   : > { %5591 = vmatpush3.bf16.msra.mxu0 %v6020_v27  ;;  %v3136_v42 = vor.u32 %v3135_v20, %v3132_v11  ;;  %v2595_v63 = vrot.slane %v2593_v60, 5  ;;  %v7632_v7 = vcombine.low %v7589_v31, %v7589_v31  ;;  %v2266_v58 = vmul.f32 0.01, %v2202_v22  ;;  %v6025_v27 = vld [vmem:[%s8523_s6 + $0x1c8] sm:$0xff]  }
 0x2db   : > { %5592 = vmatprep.subr.bf16.mxu0 %v6023_v13  ;;  %vm2235_vm12 = vcmp.ge.f32.partialorder %v2203_v6, 0.0  ;;  %v2267_v26 = vmul.f32 0.01, %v2203_v6  ;;  %v2601_v55 = vrot.slane %v2599_v44, 5  ;;  %v2210_v38 = vadd.f32 %v7503_v34, %v7528_v3  ;;  %v6032_v20 = vld [vmem:[%s8523_s6 + $0x128] sm:$0xff]  }
 0x2dc   : > { %v2596_v14 = vor.u32 %v2595_v63, %v2592_v21  ;;  %v2211_v39 = vadd.f32 %v7503_v34, %v7531_v48  ;;  %v7641_v43 = vrot.slane %v3136_v42, 4  ;;  %v2298_v61 = vsel %vm2234_vm11, %v2202_v22, %v2266_v58 }
 0x2dd   : > { %v2299_v40 = vsel %vm2235_vm12, %v2203_v6, %v2267_v26  ;;  %v2330_v3 = vpack.c.bf16 %v2298_v61, %v2298_v61  ;;  %v2770_v48 = vshrl.u32 %v7593_v49, 16  ;;  %vm2242_vm13 = vcmp.ge.f32.partialorder %v2210_v38, 0.0  ;;  %v6029_v6 = vld [vmem:[%s8523_s6 + $0x1d0] sm:$0xff]  }
 0x2de   : > { %v2597_v18 = vrot.slane %v2596_v14, 4  ;;  %5593 = vmatpush3.bf16.msra.mxu0 %v6024_v29  ;;  %v2331_v35 = vpack.c.bf16 %v2299_v40, %v2299_v40  ;;  %vm2243_vm14 = vcmp.ge.f32.partialorder %v2211_v39, 0.0  ;;  %v2274_v54 = vmul.f32 0.01, %v2210_v38 }
 0x2df   : > { %5594 = vmatprep.subr.bf16.mxu0 %v6027_v2  ;;  %v5236_v24 = vcombine.high %v7545_v62, %v7545_v62  ;;  %v7661_v46 = vsel %vm2427_vm3, %v2330_v3, 0  ;;  %v2275_v56 = vmul.f32 0.01, %v2211_v39  ;;  %v2772_v13 = vrot.slane %v2770_v48, 4  ;;  %v6036_v2 = vld [vmem:[%s8523_s6 + $0x130] sm:$0xff]  }
 0x2e0   : > { %v7658_v59 = vsel %vm7490_vm2, %v2597_v18, %v2601_v55  ;;  %v7664_v36 = vsel %vm2427_vm3, %v2331_v35, 0  ;;  %v7673_v25 = vcombine.low %v7661_v46, %v7661_v46  ;;  %v2306_v16 = vsel %vm2242_vm13, %v2210_v38, %v2274_v54  ;;  %v6033_v54 = vld [vmem:[%s8523_s6 + $0x1d8] sm:$0xff]  }
 0x2e1   : > { %v5289_v22 = vcombine.low %v7513_v53, %v7658_v59  ;;  %v7677_v30 = vcombine.low %v7664_v36, %v7664_v36  ;;  %v5287_v41 = vcombine.low %v7661_v46, %v7664_v36  ;;  %v2307_v57 = vsel %vm2243_vm14, %v2211_v39, %v2275_v56 }
 0x2e2   : > { %5595 = vmatpush3.bf16.msra.mxu0 %v6028_v52  ;;  %v2773_v11 = vshll.u32 %v7593_v49, 16  ;;  %v2338_v60 = vpack.c.bf16 %v2306_v16, %v2306_v16  ;;  %v2339_v21 = vpack.c.bf16 %v2307_v57, %v2307_v57  ;;  %v2779_v44 = vshll.u32 %v5236_v24, 16  ;;  %v6035_v49 = vld [vmem:[%s8523_s6 + $0x170] sm:$0xff]  }
 0x2e3   : > { %4472 = vmatmul.mubr.bf16.vlgmr.msra.gmra.mrb[0].mxu1 %v5289_v22  ;;  %4422 = vmatprep.mubr.bf16.mxu0 %v5287_v41  ;;  %v5218_v42 = vcombine.high %v7585_v5, %v7585_v5  ;;  %v5220_v29 = vcombine.high %v7589_v31, %v7589_v31  ;;  %v2604_v58 = vshrl.u32 %v7601_v9, 16  ;;  %v2607_v26 = vshll.u32 %v7601_v9, 16  ;;  %v6039_v9 = vld [vmem:[%s8523_s6 + $0x178] sm:$0xff]   ;;  %v2128_v41 = vld [vmem:[%s7478_s26 + $0xa8] sm:$0xff] }
 0x2e4   : > { %5627 = vmatpush3.bf16.msra.mxu1 %v6022_v1  ;;  %v2775_v63 = vrot.slane %v2773_v11, 5  ;;  %5596 = vmatprep.subr.bf16.mxu0 %v6031_v4  ;;  %v2372_v14 = vshrl.u32 %v2338_v60, 16  ;;  %v2375_v55 = vshll.u32 %v2338_v60, 16  ;;  %v2379_v38 = vshrl.u32 %v2339_v21, 16  ;;  %v6030_v1 = vld [vmem:[%s8523_s6 + $0x190] sm:$0xff]   ;;  %v2136_v60 = vld [vmem:[%s7478_s26 + $0xe8] sm:$0xff] }
 0x2e5   : > { %5628 = vmatprep.subr.bf16.mxu1 %v6025_v27  ;;  %v2382_v39 = vshll.u32 %v2339_v21, 16  ;;  %v2781_v40 = vrot.slane %v2779_v44, 5  ;;  %v2606_v52 = vrot.slane %v2604_v58, 4  ;;  %v2609_v18 = vrot.slane %v2607_v26, 5  ;;  %v6040_v26 = vld [vmem:[%s8523_s6 + $0x138] sm:$0xff]  }
 0x2e6   : > { %v2776_v61 = vor.u32 %v2775_v63, %v2772_v13  ;;  %5597 = vmatpush3.bf16.msra.mxu0 %v6032_v20  ;;  %v2374_v3 = vrot.slane %v2372_v14, 7  ;;  %v2381_v35 = vrot.slane %v2379_v38, 7  ;;  %v2613_v48 = vshll.u32 %v5218_v42, 16  ;;  %v2129_v20 = vld [vmem:[%s7478_s26 + $0xb0] sm:$0xff] }
 0x2e7   : > { %v2618_v4 = vshrl.u32 %v7632_v7, 16  ;;  %5598 = vmatprep.subr.bf16.mxu0 %v6035_v49  ;;  %v2610_v56 = vor.u32 %v2609_v18, %v2606_v52  ;;  %v2621_v22 = vshll.u32 %v7632_v7, 16  ;;  %v2627_v27 = vshll.u32 %v5220_v29, 16  ;;  %v6034_v7 = vld [vmem:[%s8523_s6 + $0x198] sm:$0xff]   ;;  %v2137_v49 = vld [vmem:[%s7478_s26 + $0xf0] sm:$0xff] }
 0x2e8   : > { %5629 = vmatpush3.bf16.msra.mxu1 %v6026_v51  ;;  %v2777_v24 = vrot.slane %v2776_v61, 4  ;;  %v2377_v16 = vor.u32 %v2375_v55, %v2374_v3  ;;  %v2384_v57 = vor.u32 %v2382_v39, %v2381_v35  ;;  %v2615_v13 = vrot.slane %v2613_v48, 5 }
 0x2e9   : > { %5630 = vmatprep.subr.bf16.mxu1 %v6029_v6  ;;  %v2620_v11 = vrot.slane %v2618_v4, 4  ;;  %v2611_v44 = vrot.slane %v2610_v56, 4  ;;  %v2623_v51 = vrot.slane %v2621_v22, 5  ;;  %v2629_v42 = vrot.slane %v2627_v27, 5  ;;  %v6038_v22 = vld [vmem:[%s8523_s6 + $0x1a0] sm:$0xff]  }
 0x2ea   : > { %v7719_v21 = vsel %vm7490_vm2, %v2777_v24, %v2781_v40  ;;  %5599 = vmatpush3.bf16.msra.mxu0 %v6036_v2  ;;  %v7727_v6 = vsel %vm7437_vm15, 0, %v2377_v16  ;;  %v7731_v63 = vsel %vm7437_vm15, 0, %v2384_v57  ;;  %v2166_v58 = vmul.f32 %v7486_v0, %v2128_v41  ;;  %v6043_v2 = vld [vmem:[%s8523_s6 + $0x240] sm:$0xff]   ;;  %v6041_v57 = vld [vmem:[%s8523_s6 + $0x1e8] sm:$0xff]  }
 0x2eb   : > { %v5294_v29 = vcombine.low %v7621_v45, %v7719_v21  ;;  %5600 = vmatprep.subr.bf16.mxu0 %v6039_v9  ;;  %v7744_v14 = vcombine.low %v7727_v6, %v7727_v6  ;;  %v7748_v55 = vcombine.low %v7731_v63, %v7731_v63  ;;  %v5283_v38 = vcombine.low %v7727_v6, %v7731_v63  ;;  %v6037_v9 = vld [vmem:[%s8523_s6 + $0x1e0] sm:$0xff]  }
 0x2ec   : > { %v7754_v39 = vsel %vm7490_vm2, %v2611_v44, %v2615_v13  ;;  %5631 = vmatpush3.bf16.msra.mxu1 %v6030_v1  ;;  %v2624_v61 = vor.u32 %v2623_v51, %v2620_v11  ;;  %v2167_v52 = vmul.f32 %v7486_v0, %v2129_v20  ;;  %v2784_v18 = vshrl.u32 %v7673_v25, 16 }
 0x2ed   : > { %4479 = vmatprep.mubr.bf16.mxu1 %v5294_v29  ;;  %5632 = vmatprep.subr.bf16.mxu1 %v6033_v54  ;;  %v2204_v3 = vadd.f32 %v7503_v34, %v2166_v58  ;;  %v2174_v35 = vmul.f32 %v7486_v0, %v2136_v60  ;;  %v2175_v1 = vmul.f32 %v7486_v0, %v2137_v49  ;;  %v2787_v20 = vshll.u32 %v7673_v25, 16  ;;  %v6042_v25 = vld [vmem:[%s8523_s6 + $0x1a8] sm:$0xff]  }
 0x2ee   : > { %4423 = vmatmul.mubr.bf16.gmra.mrb[8].mxu0 %v5283_v38  ;;  %v5238_v48 = vcombine.high %v7661_v46, %v7661_v46  ;;  %v2625_v4 = vrot.slane %v2624_v61, 4  ;;  %v2205_v54 = vadd.f32 %v7503_v34, %v2167_v52  ;;  %v5240_v24 = vcombine.high %v7664_v36, %v7664_v36 }
 0x2ef   : > { %v2786_v56 = vrot.slane %v2784_v18, 4  ;;  %5601 = vmatpush3.bf16.msra.mxu0 %v6040_v26  ;;  %vm2236_vm0 = vcmp.ge.f32.partialorder %v2204_v3, 0.0  ;;  %v2268_v27 = vmul.f32 0.01, %v2204_v3  ;;  %v2212_v41 = vadd.f32 %v7503_v34, %v2174_v35 }
 0x2f0   : > { %5633 = vmatpush3.bf16.msra.mxu1 %v6034_v7  ;;  %v2213_v16 = vadd.f32 %v7503_v34, %v2175_v1  ;;  %5666 = vmatprep.subr.bf16.mxu0 %v6043_v2  ;;  %v7781_v13 = vsel %vm7490_vm2, %v2625_v4, %v2629_v42  ;;  %vm2237_vm1 = vcmp.ge.f32.partialorder %v2205_v54, 0.0  ;;  %v2269_v11 = vmul.f32 0.01, %v2205_v54 }
 0x2f1   : > { %8672 = vst [vmem:[#allocation43_spill] sm:$0xff] %v7781_v13  ;;  %5634 = vmatprep.subr.bf16.mxu1 %v6037_v9  ;;  %v5290_v60 = vcombine.low %v7754_v39, %v7781_v13  ;;  %v2300_v44 = vsel %vm2236_vm0, %v2204_v3, %v2268_v27  ;;  %vm2244_vm4 = vcmp.ge.f32.partialorder %v2212_v41, 0.0  ;;  %v2276_v49 = vmul.f32 0.01, %v2212_v41 }
 0x2f2   : > { %vm2245_vm5 = vcmp.ge.f32.partialorder %v2213_v16, 0.0  ;;  %v2301_v51 = vsel %vm2237_vm1, %v2205_v54, %v2269_v11  ;;  %v2332_v7 = vpack.c.bf16 %v2300_v44, %v2300_v44  ;;  %v2277_v29 = vmul.f32 0.01, %v2213_v16 }
 0x2f3   : > { %4480 = vmatmul.mubr.bf16.gmra.mrb[4].mxu1 %v5290_v60  ;;  %v2333_v58 = vpack.c.bf16 %v2301_v51, %v2301_v51  ;;  %v2789_v26 = vrot.slane %v2787_v20, 5  ;;  %v2793_v42 = vshll.u32 %v5238_v48, 16  ;;  %v2798_v2 = vshrl.u32 %v7677_v30, 16  ;;  %v6045_v48 = vld [vmem:[%s8523_s6 + $0x1f0] sm:$0xff]  }
 0x2f4   : > { %v7791_v38 = vsel %vm2427_vm3, %v2332_v7, 0  ;;  %v2308_v61 = vsel %vm2244_vm4, %v2212_v41, %v2276_v49  ;;  %v2309_v52 = vsel %vm2245_vm5, %v2213_v16, %v2277_v29  ;;  %v2801_v18 = vshll.u32 %v7677_v30, 16  ;;  %5635 = vmatpush3.bf16.msra.mxu1 %v6038_v22  ;;  %v6046_v51 = vld [vmem:[%s8523_s6 + $0x1b0] sm:$0xff]  }
 0x2f5   : > { %v7795_v9 = vsel %vm2427_vm3, %v2333_v58, 0  ;;  %v7799_v3 = vcombine.low %v7791_v38, %v7791_v38  ;;  %v2340_v35 = vpack.c.bf16 %v2308_v61, %v2308_v61  ;;  %v2341_v1 = vpack.c.bf16 %v2309_v52, %v2309_v52  ;;  %5636 = vmatprep.subr.bf16.mxu1 %v6041_v57 }
 0x2f6   : > { %v7806_v4 = vcombine.low %v7795_v9, %v7795_v9  ;;  %v5288_v30 = vcombine.low %v7791_v38, %v7795_v9  ;;  %v2790_v54 = vor.u32 %v2789_v26, %v2786_v56  ;;  %v2795_v22 = vrot.slane %v2793_v42, 5  ;;  %v6049_v56 = vld [vmem:[%s8523_s6 + $0x1f8] sm:$0xff]  }
 0x2f7   : > { %v2386_v27 = vshrl.u32 %v2340_v35, 16  ;;  %v2389_v41 = vshll.u32 %v2340_v35, 16  ;;  %v2393_v16 = vshrl.u32 %v2341_v1, 16  ;;  %v2396_v11 = vshll.u32 %v2341_v1, 16  ;;  %v2107_v35 = vld [vmem:[%s7478_s26] sm:$0xff]  ;;  %v2108_v1 = vld [vmem:[%s7478_s26 + $0x8] sm:$0xff] }
 0x2f8   : > { %4430 = vmatprep.mubr.bf16.mxu0 %v5288_v30  ;;  %v2791_v20 = vrot.slane %v2790_v54, 4  ;;  %v2800_v57 = vrot.slane %v2798_v2, 4  ;;  %v2803_v60 = vrot.slane %v2801_v18, 5  ;;  %v2807_v44 = vshll.u32 %v5240_v24, 16  ;;  %5637 = vmatpush3.bf16.msra.mxu1 %v6042_v25  ;;  %v2115_v30 = vld [vmem:[%s7478_s26 + $0x40] sm:$0xff] }
 0x2f9   : > { %v2388_v7 = vrot.slane %v2386_v27, 7  ;;  %v2395_v49 = vrot.slane %v2393_v16, 7  ;;  %v5222_v29 = vcombine.high %v7727_v6, %v7727_v6  ;;  %v5224_v24 = vcombine.high %v7731_v63, %v7731_v63  ;;  %5638 = vmatprep.subr.bf16.mxu1 %v6045_v48  ;;  %v6050_v48 = vld [vmem:[%s8523_s6 + $0x1b8] sm:$0xff]   ;;  %v6053_v54 = vld [vmem:[%s8523_s6 + $0x2c0] sm:$0xff]  }
 0x2fa   : > { %v7822_v58 = vsel %vm7490_vm2, %v2791_v20, %v2795_v22  ;;  %v2804_v26 = vor.u32 %v2803_v60, %v2800_v57  ;;  %v2809_v42 = vrot.slane %v2807_v44, 5  ;;  %v2632_v2 = vshrl.u32 %v7744_v14, 16 }
 0x2fb   : > { %v2391_v25 = vor.u32 %v2389_v41, %v2388_v7  ;;  %v2398_v61 = vor.u32 %v2396_v11, %v2395_v49  ;;  %v2635_v52 = vshll.u32 %v7744_v14, 16  ;;  %v2641_v18 = vshll.u32 %v5222_v29, 16  ;;  %v2116_v7 = vld [vmem:[%s7478_s26 + $0x48] sm:$0xff] }
 0x2fc   : > { %v2805_v22 = vrot.slane %v2804_v26, 4  ;;  %v2634_v27 = vrot.slane %v2632_v2, 4  ;;  %v2646_v41 = vshrl.u32 %v7748_v55, 16  ;;  %v2649_v16 = vshll.u32 %v7748_v55, 16  ;;  %5639 = vmatpush3.bf16.msra.mxu1 %v6046_v51 }
 0x2fd   : > { %v7839_v14 = vsel %vm7437_vm15, 0, %v2391_v25  ;;  %v7843_v11 = vsel %vm7437_vm15, 0, %v2398_v61  ;;  %v2637_v20 = vrot.slane %v2635_v52, 5  ;;  %v2643_v57 = vrot.slane %v2641_v18, 5  ;;  %5640 = vmatprep.subr.bf16.mxu1 %v6049_v56 }
 0x2fe   : > { %8673 = vst [vmem:[#allocation44_spill] sm:$0xff] %v7843_v11  ;;  %v7847_v60 = vcombine.low %v7839_v14, %v7839_v14  ;;  %v7851_v44 = vcombine.low %v7843_v11, %v7843_v11  ;;  %v5284_v55 = vcombine.low %v7839_v14, %v7843_v11  ;;  %v7857_v51 = vsel %vm7490_vm2, %v2805_v22, %v2809_v42 }
 0x2ff   : > { %8674 = vst [vmem:[#allocation45_spill] sm:$0xff] %v7857_v51  ;;  %v5295_v49 = vcombine.low %v7822_v58, %v7857_v51  ;;  %v2638_v56 = vor.u32 %v2637_v20, %v2634_v27  ;;  %v2648_v29 = vrot.slane %v2646_v41, 4  ;;  %v2651_v26 = vrot.slane %v2649_v16, 5  ;;  %v2118_v51 = vld [vmem:[%s7478_s26 + $0x58] sm:$0xff] }
 0x300   : > { %4431 = vmatmul.mubr.bf16.gmra.mrb[12].mxu0 %v5284_v55  ;;  %v2655_v2 = vshll.u32 %v5224_v24, 16  ;;  %v2145_v25 = vmul.f32 %v7486_v0, %v2107_v35  ;;  %v2146_v61 = vmul.f32 %v7486_v0, %v2108_v1  ;;  %v2153_v52 = vmul.f32 %v7486_v0, %v2115_v30  ;;  %5641 = vmatpush3.bf16.msra.mxu1 %v6050_v48 }
 0x301   : > { %4487 = vmatprep.mubr.bf16.mxu1 %v5295_v49  ;;  %v2639_v18 = vrot.slane %v2638_v56, 4  ;;  %v2652_v42 = vor.u32 %v2651_v26, %v2648_v29  ;;  %v2154_v22 = vmul.f32 %v7486_v0, %v2116_v7  ;;  %v5242_v47 = vcombine.high %v7791_v38, %v7791_v38  ;;  %5706 = vmatprep.subr.bf16.mxu1 %v6053_v54 }
 0x302   : > { %v2657_v27 = vrot.slane %v2655_v2, 5  ;;  %v2183_v41 = vadd.f32 %v7503_v34, %v2145_v25  ;;  %v2184_v24 = vadd.f32 %v7503_v34, %v2146_v61  ;;  %v2191_v35 = vadd.f32 %v7503_v34, %v2153_v52 }
 0x303   : > { %v7873_v1 = vsel %vm7490_vm2, %v2639_v18, %v2643_v57  ;;  %v2653_v30 = vrot.slane %v2652_v42, 4  ;;  %v2192_v48 = vadd.f32 %v7503_v34, %v2154_v22  ;;  %v5244_v16 = vcombine.high %v7795_v9, %v7795_v9 }
 0x304   : > { %8675 = vst [vmem:[#allocation46_spill] sm:$0xff] %v7873_v1  ;;  %vm2215_vm6 = vcmp.ge.f32.partialorder %v2183_v41, 0.0  ;;  %vm2216_vm7 = vcmp.ge.f32.partialorder %v2184_v24, 0.0  ;;  %v2247_v54 = vmul.f32 0.01, %v2183_v41  ;;  %vm2223_vm8 = vcmp.ge.f32.partialorder %v2191_v35, 0.0 }
 0x305   : > { %v2248_v20 = vmul.f32 0.01, %v2184_v24  ;;  %v7880_v55 = vsel %vm7490_vm2, %v2653_v30, %v2657_v27  ;;  %vm2224_vm9 = vcmp.ge.f32.partialorder %v2192_v48, 0.0  ;;  %v2255_v7 = vmul.f32 0.01, %v2191_v35 }
 0x306   : > { %8676 = vst [vmem:[#allocation47_spill] sm:$0xff] %v7880_v55  ;;  %v5291_v57 = vcombine.low %v7873_v1, %v7880_v55  ;;  %v2279_v49 = vsel %vm2215_vm6, %v2183_v41, %v2247_v54  ;;  %v2256_v29 = vmul.f32 0.01, %v2192_v48  ;;  %v2812_v61 = vshrl.u32 %v7799_v3, 16  ;;  %v2117_v55 = vld [vmem:[%s7478_s26 + $0x50] sm:$0xff] }
 0x307   : > { %v2280_v56 = vsel %vm2216_vm7, %v2184_v24, %v2248_v20  ;;  %v2311_v26 = vpack.c.bf16 %v2279_v49, %v2279_v49  ;;  %v2287_v25 = vsel %vm2223_vm8, %v2191_v35, %v2255_v7  ;;  %v2815_v42 = vshll.u32 %v7799_v3, 16 }
 0x308   : > { %v2312_v2 = vpack.c.bf16 %v2280_v56, %v2280_v56  ;;  %4488 = vmatmul.mubr.bf16.gmra.mrb[8].mxu1 %v5291_v57  ;;  %v2288_v52 = vsel %vm2224_vm9, %v2192_v48, %v2256_v29  ;;  %v2319_v18 = vpack.c.bf16 %v2287_v25, %v2287_v25  ;;  %v2821_v22 = vshll.u32 %v5242_v47, 16 }
 0x309   : > { %v2517_v27 = vsel %vm2427_vm3, %v2311_v26, 0  ;;  %v2320_v40 = vpack.c.bf16 %v2288_v52, %v2288_v52  ;;  %v2814_v41 = vrot.slane %v2812_v61, 4  ;;  %v2817_v29 = vrot.slane %v2815_v42, 5 }
 0x30a   : > { %v7888_v30 = vsel %vm2427_vm3, %v2312_v2, 0  ;;  %v5261_v24 = vcombine.low %v2517_v27, %v2517_v27  ;;  %v5262_v54 = vcombine.high %v2517_v27, %v2517_v27  ;;  %v2445_v48 = vshrl.u32 %v2319_v18, 16 }
 0x30b   : > { %8677 = vst [vmem:[#allocation48_spill] sm:$0xff] %v7888_v30  ;;  %v7892_v35 = vcombine.low %v7888_v30, %v7888_v30  ;;  %v5301_v20 = vcombine.low %v2517_v27, %v7888_v30  ;;  %v2448_v7 = vshll.u32 %v2319_v18, 16  ;;  %v2452_v57 = vshrl.u32 %v2320_v40, 16 }
 0x30c   : > { %v2455_v3 = vshll.u32 %v2320_v40, 16  ;;  %v3032_v47 = vshrl.u32 %v5261_v24, 16  ;;  %v3035_v49 = vshll.u32 %v5261_v24, 16  ;;  %v7895_v56 = vshll.u32 %v5262_v54, 16  ;;  %v6044_v24 = vld [vmem:[%s8523_s6 + $0x200] sm:$0xff]  }
 0x30d   : > { %4536 = vmatprep.mubr.bf16.mxu0 %v5301_v20  ;;  %v2447_v26 = vrot.slane %v2445_v48, 7  ;;  %v2454_v2 = vrot.slane %v2452_v57, 7  ;;  %v2823_v25 = vrot.slane %v2821_v22, 5  ;;  %v2826_v61 = vshrl.u32 %v7806_v4, 16 }
 0x30e   : > { %v7898_v52 = vrot.slane %v3032_v47, 4  ;;  %v7900_v12 = vrot.slane %v3035_v49, 5  ;;  %v2818_v27 = vor.u32 %v2817_v29, %v2814_v41  ;;  %v2829_v18 = vshll.u32 %v7806_v4, 16 }
 0x30f   : > { %v2450_v28 = vor.u32 %v2448_v7, %v2447_v26  ;;  %v2457_v40 = vor.u32 %v2455_v3, %v2454_v2  ;;  %v2828_v54 = vrot.slane %v2826_v61, 4  ;;  %v2835_v42 = vshll.u32 %v5244_v16, 16 }
 0x310   : > { %v2819_v20 = vrot.slane %v2818_v27, 4  ;;  %v2831_v48 = vrot.slane %v2829_v18, 5  ;;  %v5226_v22 = vcombine.high %v7839_v14, %v7839_v14  ;;  %v5228_v57 = vcombine.high %v7843_v11, %v7843_v11  ;;  %v6048_v18 = vld [vmem:[%s8523_s6 + $0x208] sm:$0xff]  }
 0x311   : > { %v2508_v4 = vsel %vm7437_vm15, 0, %v2450_v28  ;;  %v7914_v41 = vsel %vm7437_vm15, 0, %v2457_v40  ;;  %v2837_v7 = vrot.slane %v2835_v42, 5  ;;  %v2660_v16 = vshrl.u32 %v7847_v60, 16  ;;  %v6047_v28 = vld [vmem:[%s8523_s6 + $0x248] sm:$0xff]   ;;  %v2109_v40 = vld [vmem:[%s7478_s26 + $0x10] sm:$0xff] }
 0x312   : > { %8678 = vst [vmem:[#allocation49_spill] sm:$0xff] %v7914_v41  ;;  %v5245_v3 = vcombine.low %v2508_v4, %v2508_v4  ;;  %v5246_v47 = vcombine.high %v2508_v4, %v2508_v4  ;;  %v7919_v49 = vcombine.low %v7914_v41, %v7914_v41  ;;  %v5297_v29 = vcombine.low %v2508_v4, %v7914_v41  ;;  %v2110_v42 = vld [vmem:[%s7478_s26 + $0x18] sm:$0xff] }
 0x313   : > { %v7927_v26 = vsel %vm7490_vm2, %v2819_v20, %v2823_v25  ;;  %v2832_v2 = vor.u32 %v2831_v48, %v2828_v54  ;;  %v2662_v61 = vrot.slane %v2660_v16, 4  ;;  %v2663_v27 = vshll.u32 %v7847_v60, 16  ;;  %v6051_v25 = vld [vmem:[%s8523_s6 + $0x250] sm:$0xff]  }
 0x314   : > { %v2880_v53 = vshrl.u32 %v5245_v3, 16  ;;  %v2883_v4 = vshll.u32 %v5245_v3, 16  ;;  %v7935_v10 = vshll.u32 %v5246_v47, 16  ;;  %4537 = vmatmul.mubr.bf16.vlgmr.msra.gmra.mrb[16].mxu0 %v5297_v29  ;;  %v2669_v17 = vshll.u32 %v5226_v22, 16 }
 0x315   : > { %5667 = vmatpush3.bf16.msra.mxu0 %v6044_v24  ;;  %v2833_v60 = vrot.slane %v2832_v2, 4  ;;  %v2665_v54 = vrot.slane %v2663_v27, 5  ;;  %v2674_v20 = vshrl.u32 %v7851_v44, 16  ;;  %v2677_v48 = vshll.u32 %v7851_v44, 16 }
 0x316   : > { %v7944_v16 = vrot.slane %v2880_v53, 4  ;;  %v7946_v3 = vrot.slane %v2883_v4, 5  ;;  %v2671_v47 = vrot.slane %v2669_v17, 5  ;;  %v2683_v29 = vshll.u32 %v5228_v57, 16  ;;  %5668 = vmatprep.subr.bf16.mxu0 %v6047_v28 }
 0x317   : > { %v7950_v22 = vsel %vm7490_vm2, %v2833_v60, %v2837_v7  ;;  %v2666_v11 = vor.u32 %v2665_v54, %v2662_v61  ;;  %v2676_v13 = vrot.slane %v2674_v20, 4  ;;  %v2679_v24 = vrot.slane %v2677_v48, 5  ;;  %v6052_v7 = vld [vmem:[%s8523_s6 + $0x210] sm:$0xff]   ;;  %v6059_v54 = vld [vmem:[%s8523_s6 + $0x260] sm:$0xff]  }
 0x318   : > { %8679 = vst [vmem:[#allocation50_spill] sm:$0xff] %v7950_v22  ;;  %v5296_v2 = vcombine.low %v7927_v26, %v7950_v22  ;;  %v2685_v27 = vrot.slane %v2683_v29, 5  ;;  %v2147_v44 = vmul.f32 %v7486_v0, %v2109_v40  ;;  %v2148_v53 = vmul.f32 %v7486_v0, %v2110_v42 }
 0x319   : > { %v2667_v4 = vrot.slane %v2666_v11, 4  ;;  %v2680_v1 = vor.u32 %v2679_v24, %v2676_v13  ;;  %5669 = vmatpush3.bf16.msra.mxu0 %v6048_v18  ;;  %v2155_v17 = vmul.f32 %v7486_v0, %v2117_v55  ;;  %v2156_v57 = vmul.f32 %v7486_v0, %v2118_v51  ;;  %v6055_v11 = vld [vmem:[%s8523_s6 + $0x258] sm:$0xff]  }
 0x31a   : > { %4495 = vmatprep.mubr.bf16.mxu1 %v5296_v2  ;;  %v2185_v28 = vadd.f32 %v7503_v34, %v2147_v44  ;;  %v2186_v61 = vadd.f32 %v7503_v34, %v2148_v53  ;;  %5670 = vmatprep.subr.bf16.mxu0 %v6051_v25  ;;  %v5264_v40 = vcombine.high %v7888_v30, %v7888_v30  ;;  %v3043_v13 = vrot.slane %v7895_v56, 5  ;;  %v6056_v25 = vld [vmem:[%s8523_s6 + $0x218] sm:$0xff]  }
 0x31b   : > { %v7971_v51 = vsel %vm7490_vm2, %v2667_v4, %v2671_v47  ;;  %v2681_v55 = vrot.slane %v2680_v1, 4  ;;  %v2193_v18 = vadd.f32 %v7503_v34, %v2155_v17  ;;  %v2194_v42 = vadd.f32 %v7503_v34, %v2156_v57 }
 0x31c   : > { %8680 = vst [vmem:[#allocation51_spill] sm:$0xff] %v7971_v51  ;;  %vm2217_vm10 = vcmp.ge.f32.partialorder %v2185_v28, 0.0  ;;  %vm2218_vm11 = vcmp.ge.f32.partialorder %v2186_v61, 0.0  ;;  %v2249_v56 = vmul.f32 0.01, %v2185_v28  ;;  %v3038_v4 = vor.u32 %v7900_v12, %v7898_v52  ;;  %v6060_v12 = vld [vmem:[%s8523_s6 + $0x220] sm:$0xff]  }
 0x31d   : > { %v2250_v60 = vmul.f32 0.01, %v2186_v61  ;;  %v7983_v20 = vsel %vm7490_vm2, %v2681_v55, %v2685_v27  ;;  %vm2225_vm12 = vcmp.ge.f32.partialorder %v2193_v18, 0.0  ;;  %vm2226_vm13 = vcmp.ge.f32.partialorder %v2194_v42, 0.0  ;;  %5671 = vmatpush3.bf16.msra.mxu0 %v6052_v7 }
 0x31e   : > { %8681 = vst [vmem:[#allocation52_spill] sm:$0xff] %v7983_v20  ;;  %v2257_v1 = vmul.f32 0.01, %v2193_v18  ;;  %v5292_v48 = vcombine.low %v7971_v51, %v7983_v20  ;;  %v2281_v47 = vsel %vm2217_vm10, %v2185_v28, %v2249_v56  ;;  %v2258_v24 = vmul.f32 0.01, %v2194_v42  ;;  %5672 = vmatprep.subr.bf16.mxu0 %v6055_v11 }
 0x31f   : > { %v2282_v29 = vsel %vm2218_vm11, %v2186_v61, %v2250_v60  ;;  %v2313_v2 = vpack.c.bf16 %v2281_v47, %v2281_v47  ;;  %v3046_v57 = vshrl.u32 %v7892_v35, 16  ;;  %v3049_v7 = vshll.u32 %v7892_v35, 16  ;;  %v2111_v47 = vld [vmem:[%s7478_s26 + $0x20] sm:$0xff] }
 0x320   : > { %v2314_v44 = vpack.c.bf16 %v2282_v29, %v2282_v29  ;;  %v2289_v53 = vsel %vm2225_vm12, %v2193_v18, %v2257_v1  ;;  %4496 = vmatmul.mubr.bf16.gmra.mrb[12].mxu1 %v5292_v48  ;;  %v2290_v27 = vsel %vm2226_vm13, %v2194_v42, %v2258_v24  ;;  %v3039_v11 = vrot.slane %v3038_v4, 4 }
 0x321   : > { %v2321_v17 = vpack.c.bf16 %v2289_v53, %v2289_v53  ;;  %v7992_v55 = vsel %vm2427_vm3, %v2313_v2, 0  ;;  %v2322_v61 = vpack.c.bf16 %v2290_v27, %v2290_v27  ;;  %5673 = vmatpush3.bf16.msra.mxu0 %v6056_v25  ;;  %v6063_v25 = vld [vmem:[%s8523_s6 + $0x268] sm:$0xff]   ;;  %v3048_v24 = vrot.slane %v3046_v57, 4 }
 0x322   : > { %8682 = vst [vmem:[#allocation53_spill] sm:$0xff] %v7992_v55  ;;  %v7995_v28 = vsel %vm2427_vm3, %v2314_v44, 0  ;;  %v8002_v52 = vcombine.low %v7992_v55, %v7992_v55  ;;  %5674 = vmatprep.subr.bf16.mxu0 %v6059_v54  ;;  %v3044_v48 = vsel %vm7490_vm2, %v3039_v11, %v3043_v13  ;;  %v3051_v2 = vrot.slane %v3049_v7, 5  ;;  %v6064_v13 = vld [vmem:[%s8523_s6 + $0x228] sm:$0xff]  }
 0x323   : > { %v8006_v35 = vcombine.low %v7995_v28, %v7995_v28  ;;  %v5302_v18 = vcombine.low %v7992_v55, %v7995_v28  ;;  %v2459_v42 = vshrl.u32 %v2321_v17, 16  ;;  %v2462_v56 = vshll.u32 %v2321_v17, 16  ;;  %v2112_v11 = vld [vmem:[%s7478_s26 + $0x28] sm:$0xff] }
 0x324   : > { %v2466_v60 = vshrl.u32 %v2322_v61, 16  ;;  %v2469_v1 = vshll.u32 %v2322_v61, 16  ;;  %v3055_v44 = vshll.u32 %v5264_v40, 16  ;;  %v5248_v54 = vcombine.high %v7914_v41, %v7914_v41  ;;  %v6067_v40 = vld [vmem:[%s8523_s6 + $0x270] sm:$0xff]  }
 0x325   : > { %4544 = vmatprep.mubr.bf16.mxu0 %v5302_v18  ;;  %v2461_v29 = vrot.slane %v2459_v42, 7  ;;  %v2886_v4 = vor.u32 %v7946_v3, %v7944_v16  ;;  %v2891_v27 = vrot.slane %v7935_v10, 5  ;;  %5675 = vmatpush3.bf16.msra.mxu0 %v6060_v12  ;;  %v3052_v57 = vor.u32 %v3051_v2, %v3048_v24  ;;  %v2119_v18 = vld [vmem:[%s7478_s26 + $0x60] sm:$0xff]  ;;  %v2120_v42 = vld [vmem:[%s7478_s26 + $0x68] sm:$0xff] }
 0x326   : > { %v2468_v53 = vrot.slane %v2466_v60, 7  ;;  %v3057_v7 = vrot.slane %v3055_v44, 5  ;;  %v2894_v61 = vshrl.u32 %v7919_v49, 16  ;;  %5676 = vmatprep.subr.bf16.mxu0 %v6063_v25  ;;  %v2897_v10 = vshll.u32 %v7919_v49, 16 }
 0x327   : > { %v2464_v17 = vor.u32 %v2462_v56, %v2461_v29  ;;  %v2887_v3 = vrot.slane %v2886_v4, 4  ;;  %v2903_v12 = vshll.u32 %v5248_v54, 16  ;;  %v3053_v20 = vrot.slane %v3052_v57, 4  ;;  %v6068_v29 = vld [vmem:[%s8523_s6 + $0x230] sm:$0xff]   ;;  %v6071_v54 = vld [vmem:[%s8523_s6 + $0x278] sm:$0xff]  }
 0x328   : > { %v2471_v16 = vor.u32 %v2469_v1, %v2468_v53  ;;  %v2896_v22 = vrot.slane %v2894_v61, 4  ;;  %v2149_v56 = vmul.f32 %v7486_v0, %v2111_v47  ;;  %v2899_v24 = vrot.slane %v2897_v10, 5 }
 0x329   : > { %v8034_v60 = vsel %vm7437_vm15, 0, %v2464_v17  ;;  %v2892_v1 = vsel %vm7490_vm2, %v2887_v3, %v2891_v27  ;;  %5677 = vmatpush3.bf16.msra.mxu0 %v6064_v13  ;;  %v8058_v44 = vsel %vm7490_vm2, %v3053_v20, %v3057_v7  ;;  %v2905_v53 = vrot.slane %v2903_v12, 5 }
 0x32a   : > { %8683 = vst [vmem:[#allocation54_spill] sm:$0xff] %v8034_v60  ;;  %v8042_v25 = vsel %vm7437_vm15, 0, %v2471_v16  ;;  %v8046_v49 = vcombine.low %v8034_v60, %v8034_v60  ;;  %5678 = vmatprep.subr.bf16.mxu0 %v6067_v40  ;;  %v5309_v4 = vcombine.low %v3044_v48, %v8058_v44  ;;  %v2900_v27 = vor.u32 %v2899_v24, %v2896_v22  ;;  %v6072_v48 = vld [vmem:[%s8523_s6 + $0x238] sm:$0xff]   ;;  %v6054_v16 = vld [vmem:[%s8523_s6 + $0x280] sm:$0xff]  }
 0x32b   : > { %v8052_v47 = vcombine.low %v8042_v25, %v8042_v25  ;;  %v5298_v2 = vcombine.low %v8034_v60, %v8042_v25  ;;  %v2150_v13 = vmul.f32 %v7486_v0, %v2112_v11  ;;  %v2187_v17 = vadd.f32 %v7503_v34, %v2149_v56 }
 0x32c   : > { %v2157_v57 = vmul.f32 %v7486_v0, %v2119_v18  ;;  %v2158_v61 = vmul.f32 %v7486_v0, %v2120_v42  ;;  %v5266_v20 = vcombine.high %v7992_v55, %v7992_v55  ;;  %v5268_v40 = vcombine.high %v7995_v28, %v7995_v28  ;;  %4601 = vmatprep.mubr.bf16.mxu1 %v5309_v4  ;;  %v6075_v42 = vld [vmem:[%s8523_s6 + $0x340] sm:$0xff]   ;;  %v2113_v55 = vld [vmem:[%s7478_s26 + $0x30] sm:$0xff] }
 0x32d   : > { %4545 = vmatmul.mubr.bf16.gmra.mrb[20].mxu0 %v5298_v2  ;;  %v2901_v22 = vrot.slane %v2900_v27, 4  ;;  %v2188_v7 = vadd.f32 %v7503_v34, %v2150_v13  ;;  %vm2219_vm14 = vcmp.ge.f32.partialorder %v2187_v17, 0.0  ;;  %v2251_v11 = vmul.f32 0.01, %v2187_v17 }
 0x32e   : > { %5679 = vmatpush3.bf16.msra.mxu0 %v6068_v29  ;;  %v2195_v3 = vadd.f32 %v7503_v34, %v2157_v57  ;;  %v2196_v10 = vadd.f32 %v7503_v34, %v2158_v61  ;;  %v3060_v12 = vshrl.u32 %v8002_v52, 16  ;;  %v3063_v18 = vshll.u32 %v8002_v52, 16  ;;  %v6057_v29 = vld [vmem:[%s8523_s6 + $0x2c8] sm:$0xff]  }
 0x32f   : > { %5680 = vmatprep.subr.bf16.mxu0 %v6071_v54  ;;  %v8088_v56 = vsel %vm7490_vm2, %v2901_v22, %v2905_v53  ;;  %vm2220_vm0 = vcmp.ge.f32.partialorder %v2188_v7, 0.0  ;;  %v2252_v24 = vmul.f32 0.01, %v2188_v7  ;;  %v2283_v2 = vsel %vm2219_vm14, %v2187_v17, %v2251_v11  ;;  %v6058_v17 = vld [vmem:[%s8523_s6 + $0x288] sm:$0xff]  }
 0x330   : > { %8684 = vst [vmem:[#allocation55_spill] sm:$0xff] %v8088_v56  ;;  %v5305_v4 = vcombine.low %v2892_v1, %v8088_v56  ;;  %v2315_v27 = vpack.c.bf16 %v2283_v2, %v2283_v2  ;;  %vm2227_vm1 = vcmp.ge.f32.partialorder %v2195_v3, 0.0  ;;  %vm2228_vm4 = vcmp.ge.f32.partialorder %v2196_v10, 0.0 }
 0x331   : > { %v2284_v52 = vsel %vm2220_vm0, %v2188_v7, %v2252_v24  ;;  %v2259_v54 = vmul.f32 0.01, %v2195_v3  ;;  %v2260_v13 = vmul.f32 0.01, %v2196_v10  ;;  %v3062_v57 = vrot.slane %v3060_v12, 4 }
 0x332   : > { %5681 = vmatpush3.bf16.msra.mxu0 %v6072_v48  ;;  %4602 = vmatmul.mubr.bf16.vlgmr.msra.gmra.mrb[16].mxu1 %v5305_v4  ;;  %v2316_v53 = vpack.c.bf16 %v2284_v52, %v2284_v52  ;;  %v8095_v61 = vsel %vm2427_vm3, %v2315_v27, 0  ;;  %v3065_v22 = vrot.slane %v3063_v18, 5  ;;  %v3069_v41 = vshll.u32 %v5266_v20, 16 }
 0x333   : > { %5746 = vmatprep.subr.bf16.mxu0 %v6075_v42  ;;  %5707 = vmatpush3.bf16.msra.mxu1 %v6054_v16  ;;  %v8099_v1 = vcombine.low %v8095_v61, %v8095_v61  ;;  %v2291_v7 = vsel %vm2227_vm1, %v2195_v3, %v2259_v54  ;;  %v2292_v48 = vsel %vm2228_vm4, %v2196_v10, %v2260_v13  ;;  %v3074_v11 = vshrl.u32 %v8006_v35, 16  ;;  %v6061_v42 = vld [vmem:[%s8523_s6 + $0x2d0] sm:$0xff]  }
 0x334   : > { %5708 = vmatprep.subr.bf16.mxu1 %v6057_v29  ;;  %v8108_v12 = vsel %vm2427_vm3, %v2316_v53, 0  ;;  %v2323_v20 = vpack.c.bf16 %v2291_v7, %v2291_v7  ;;  %v2324_v16 = vpack.c.bf16 %v2292_v48, %v2292_v48  ;;  %v3066_v18 = vor.u32 %v3065_v22, %v3062_v57  ;;  %v6062_v22 = vld [vmem:[%s8523_s6 + $0x290] sm:$0xff]  }
 0x335   : > { %v8115_v24 = vcombine.low %v8108_v12, %v8108_v12  ;;  %v5303_v3 = vcombine.low %v8095_v61, %v8108_v12  ;;  %v3071_v10 = vrot.slane %v3069_v41, 5  ;;  %v3076_v2 = vrot.slane %v3074_v11, 4 }
 0x336   : > { %v2473_v29 = vshrl.u32 %v2323_v20, 16  ;;  %v2476_v4 = vshll.u32 %v2323_v20, 16  ;;  %v2480_v27 = vshrl.u32 %v2324_v16, 16  ;;  %v2483_v52 = vshll.u32 %v2324_v16, 16 }
 0x337   : > { %4552 = vmatprep.mubr.bf16.mxu0 %v5303_v3  ;;  %5709 = vmatpush3.bf16.msra.mxu1 %v6058_v17  ;;  %v3067_v54 = vrot.slane %v3066_v18, 4  ;;  %v3077_v13 = vshll.u32 %v8006_v35, 16  ;;  %v3083_v57 = vshll.u32 %v5268_v40, 16  ;;  %v5250_v53 = vcombine.high %v8034_v60, %v8034_v60  ;;  %v6065_v35 = vld [vmem:[%s8523_s6 + $0x2d8] sm:$0xff]  }
 0x338   : > { %v2475_v7 = vrot.slane %v2473_v29, 7  ;;  %v2482_v41 = vrot.slane %v2480_v27, 7  ;;  %5710 = vmatprep.subr.bf16.mxu1 %v6061_v42  ;;  %v5252_v48 = vcombine.high %v8042_v25, %v8042_v25  ;;  %v2908_v17 = vshrl.u32 %v8046_v49, 16 }
 0x339   : > { %v8133_v40 = vsel %vm7490_vm2, %v3067_v54, %v3071_v10  ;;  %v3079_v11 = vrot.slane %v3077_v13, 5  ;;  %v3085_v20 = vrot.slane %v3083_v57, 5  ;;  %v2911_v16 = vshll.u32 %v8046_v49, 16  ;;  %v6066_v10 = vld [vmem:[%s8523_s6 + $0x298] sm:$0xff]   ;;  %v2121_v54 = vld [vmem:[%s7478_s26 + $0x70] sm:$0xff] }
 0x33a   : > { %v2478_v18 = vor.u32 %v2476_v4, %v2475_v7  ;;  %v2485_v42 = vor.u32 %v2483_v52, %v2482_v41  ;;  %v2910_v3 = vrot.slane %v2908_v17, 4  ;;  %v2917_v29 = vshll.u32 %v5250_v53, 16  ;;  %v2122_v7 = vld [vmem:[%s7478_s26 + $0x78] sm:$0xff] }
 0x33b   : > { %v3080_v27 = vor.u32 %v3079_v11, %v3076_v2  ;;  %v2913_v60 = vrot.slane %v2911_v16, 5  ;;  %v2922_v51 = vshrl.u32 %v8052_v47, 16  ;;  %v2925_v30 = vshll.u32 %v8052_v47, 16  ;;  %5711 = vmatpush3.bf16.msra.mxu1 %v6062_v22  ;;  %v6069_v47 = vld [vmem:[%s8523_s6 + $0x2e0] sm:$0xff]  }
 0x33c   : > { %v8144_v49 = vsel %vm7437_vm15, 0, %v2478_v18  ;;  %v8148_v4 = vsel %vm7437_vm15, 0, %v2485_v42  ;;  %v2919_v2 = vrot.slane %v2917_v29, 5  ;;  %v2931_v52 = vshll.u32 %v5252_v48, 16  ;;  %5712 = vmatprep.subr.bf16.mxu1 %v6065_v35  ;;  %v6070_v29 = vld [vmem:[%s8523_s6 + $0x2a0] sm:$0xff]  }
 0x33d   : > { %v8156_v13 = vcombine.low %v8144_v49, %v8144_v49  ;;  %v8160_v57 = vcombine.low %v8148_v4, %v8148_v4  ;;  %v5299_v53 = vcombine.low %v8144_v49, %v8148_v4  ;;  %v3081_v22 = vrot.slane %v3080_v27, 4 }
 0x33e   : > { %v2914_v41 = vor.u32 %v2913_v60, %v2910_v3  ;;  %v2924_v48 = vrot.slane %v2922_v51, 4  ;;  %v2927_v17 = vrot.slane %v2925_v30, 5  ;;  %v2933_v35 = vrot.slane %v2931_v52, 5 }
 0x33f   : > { %4553 = vmatmul.mubr.bf16.gmra.mrb[24].mxu0 %v5299_v53  ;;  %v8167_v11 = vsel %vm7490_vm2, %v3081_v22, %v3085_v20  ;;  %v2151_v16 = vmul.f32 %v7486_v0, %v2113_v55  ;;  %5713 = vmatpush3.bf16.msra.mxu1 %v6066_v10  ;;  %v2159_v18 = vmul.f32 %v7486_v0, %v2121_v54  ;;  %v3088_v42 = vshrl.u32 %v8099_v1, 16  ;;  %v6073_v55 = vld [vmem:[%s8523_s6 + $0x2e8] sm:$0xff]  }
 0x340   : > { %8685 = vst [vmem:[#allocation56_spill] sm:$0xff] %v8167_v11  ;;  %v5310_v30 = vcombine.low %v8133_v40, %v8167_v11  ;;  %v2915_v51 = vrot.slane %v2914_v41, 4  ;;  %v2928_v60 = vor.u32 %v2927_v17, %v2924_v48  ;;  %v2160_v3 = vmul.f32 %v7486_v0, %v2122_v7  ;;  %5714 = vmatprep.subr.bf16.mxu1 %v6069_v47 }
 0x341   : > { %v2189_v20 = vadd.f32 %v7503_v34, %v2151_v16  ;;  %v2197_v27 = vadd.f32 %v7503_v34, %v2159_v18  ;;  %v5270_v10 = vcombine.high %v8095_v61, %v8095_v61  ;;  %v5272_v52 = vcombine.high %v8108_v12, %v8108_v12 }
 0x342   : > { %4609 = vmatprep.mubr.bf16.mxu1 %v5310_v30  ;;  %v8189_v54 = vsel %vm7490_vm2, %v2915_v51, %v2919_v2  ;;  %v2929_v47 = vrot.slane %v2928_v60, 4  ;;  %v2198_v53 = vadd.f32 %v7503_v34, %v2160_v3  ;;  %v3090_v22 = vrot.slane %v3088_v42, 4  ;;  %v6074_v2 = vld [vmem:[%s8523_s6 + $0x2a8] sm:$0xff]  }
 0x343   : > { %vm2221_vm5 = vcmp.ge.f32.partialorder %v2189_v20, 0.0  ;;  %v2253_v41 = vmul.f32 0.01, %v2189_v20  ;;  %vm2229_vm6 = vcmp.ge.f32.partialorder %v2197_v27, 0.0  ;;  %5715 = vmatpush3.bf16.msra.mxu1 %v6070_v29  ;;  %v2261_v17 = vmul.f32 0.01, %v2197_v27 }
 0x344   : > { %v8196_v48 = vsel %vm7490_vm2, %v2929_v47, %v2933_v35  ;;  %vm2230_vm7 = vcmp.ge.f32.partialorder %v2198_v53, 0.0  ;;  %v2262_v16 = vmul.f32 0.01, %v2198_v53  ;;  %5716 = vmatprep.subr.bf16.mxu1 %v6073_v55  ;;  %v3091_v30 = vshll.u32 %v8099_v1, 16  ;;  %v6077_v35 = vld [vmem:[%s8523_s6 + $0x2f0] sm:$0xff]  }
 0x345   : > { %8686 = vst [vmem:[#allocation57_spill] sm:$0xff] %v8196_v48  ;;  %v5306_v18 = vcombine.low %v8189_v54, %v8196_v48  ;;  %v2285_v42 = vsel %vm2221_vm5, %v2189_v20, %v2253_v41  ;;  %v3097_v51 = vshll.u32 %v5270_v10, 16  ;;  %v2293_v60 = vsel %vm2229_vm6, %v2197_v27, %v2261_v17  ;;  %v6078_v27 = vld [vmem:[%s8523_s6 + $0x2b0] sm:$0xff]  }
 0x346   : > { %v2317_v29 = vpack.c.bf16 %v2285_v42, %v2285_v42  ;;  %v2294_v3 = vsel %vm2230_vm7, %v2198_v53, %v2262_v16  ;;  %v3102_v55 = vshrl.u32 %v8115_v24, 16  ;;  %v2325_v47 = vpack.c.bf16 %v2293_v60, %v2293_v60 }
 0x347   : > { %4610 = vmatmul.mubr.bf16.gmra.mrb[20].mxu1 %v5306_v18  ;;  %v2326_v7 = vpack.c.bf16 %v2294_v3, %v2294_v3  ;;  %v3093_v56 = vrot.slane %v3091_v30, 5  ;;  %v3099_v11 = vrot.slane %v3097_v51, 5  ;;  %v3105_v1 = vshll.u32 %v8115_v24, 16  ;;  %v6081_v18 = vld [vmem:[%s8523_s6 + $0x2f8] sm:$0xff]  }
 0x348   : > { %v8209_v48 = vsel %vm2427_vm3, %v2317_v29, 0  ;;  %v3104_v20 = vrot.slane %v3102_v55, 4  ;;  %v3111_v10 = vshll.u32 %v5272_v52, 16  ;;  %5717 = vmatpush3.bf16.msra.mxu1 %v6074_v2  ;;  %v2487_v17 = vshrl.u32 %v2325_v47, 16 }
 0x349   : > { %v5273_v53 = vcombine.low %v8209_v48, %v8209_v48  ;;  %v5304_v41 = vcombine.low %v8209_v48, %v7571_v50  ;;  %v2490_v16 = vshll.u32 %v2325_v47, 16  ;;  %5718 = vmatprep.subr.bf16.mxu1 %v6077_v35  ;;  %v2494_v24 = vshrl.u32 %v2326_v7, 16 }
 0x34a   : > { %v2497_v52 = vshll.u32 %v2326_v7, 16  ;;  %v3094_v2 = vor.u32 %v3093_v56, %v3090_v22  ;;  %v3107_v42 = vrot.slane %v3105_v1, 5  ;;  %v2489_v30 = vrot.slane %v2487_v17, 7  ;;  %v6082_v56 = vld [vmem:[%s8523_s6 + $0x2b8] sm:$0xff]  }
 0x34b   : > { %4560 = vmatprep.mubr.bf16.mxu0 %v5304_v41  ;;  %v3113_v51 = vrot.slane %v3111_v10, 5  ;;  %v5254_v29 = vcombine.high %v8144_v49, %v8144_v49  ;;  %v5256_v60 = vcombine.high %v8148_v4, %v8148_v4  ;;  %v2496_v3 = vrot.slane %v2494_v24, 7  ;;  %v6085_v41 = vld [vmem:[%s8523_s6 + $0x3c0] sm:$0xff]  }
 0x34c   : > { %v3095_v55 = vrot.slane %v3094_v2, 4  ;;  %v3108_v35 = vor.u32 %v3107_v42, %v3104_v20  ;;  %v2936_v47 = vshrl.u32 %v8156_v13, 16  ;;  %5719 = vmatpush3.bf16.msra.mxu1 %v6078_v27  ;;  %v2492_v22 = vor.u32 %v2490_v16, %v2489_v30 }
 0x34d   : > { %v2939_v7 = vshll.u32 %v8156_v13, 16  ;;  %v2945_v1 = vshll.u32 %v5254_v29, 16  ;;  %v2950_v10 = vshrl.u32 %v8160_v57, 16  ;;  %5720 = vmatprep.subr.bf16.mxu1 %v6081_v18  ;;  %v2499_v17 = vor.u32 %v2497_v52, %v2496_v3 }
 0x34e   : > { %v8237_v20 = vsel %vm7490_vm2, %v3095_v55, %v3099_v11  ;;  %v3109_v27 = vrot.slane %v3108_v35, 4  ;;  %v2938_v24 = vrot.slane %v2936_v47, 4  ;;  %v8241_v16 = vsel %vm7437_vm15, 0, %v2492_v22 }
 0x34f   : > { %v2941_v13 = vrot.slane %v2939_v7, 5  ;;  %v2947_v2 = vrot.slane %v2945_v1, 5  ;;  %v2952_v42 = vrot.slane %v2950_v10, 4  ;;  %v8245_v18 = vsel %vm7437_vm15, 0, %v2499_v17 }
 0x350   : > { %v5257_v52 = vcombine.low %v8241_v16, %v8241_v16  ;;  %v8251_v11 = vsel %vm7490_vm2, %v3109_v27, %v3113_v51  ;;  %v2953_v30 = vshll.u32 %v8160_v57, 16  ;;  %5721 = vmatpush3.bf16.msra.mxu1 %v6082_v56  ;;  %v5259_v29 = vcombine.low %v8245_v18, %v8245_v18 }
 0x351   : > { %v5300_v3 = vcombine.low %v8241_v16, %v8245_v18  ;;  %v5311_v55 = vcombine.low %v8237_v20, %v8251_v11  ;;  %v2942_v35 = vor.u32 %v2941_v13, %v2938_v24  ;;  %5786 = vmatprep.subr.bf16.mxu1 %v6085_v41  ;;  %v2959_v22 = vshll.u32 %v5256_v60, 16 }
 0x352   : > { %v2955_v47 = vrot.slane %v2953_v30, 5  ;;  %v5317_v51 = vcombine.low %v7535_v15, %v7542_v37  ;;  %v5313_v57 = vcombine.low %v7558_v32, %v7585_v5  ;;  %v5274_v7 = vcombine.high %v8209_v48, %v8209_v48 }
 0x353   : > { %4561 = vmatmul.mubr.bf16.gmra.mrb[28].mxu0 %v5300_v3  ;;  %4617 = vmatprep.mubr.bf16.mxu1 %v5311_v55  ;;  %v2943_v56 = vrot.slane %v2942_v35, 4  ;;  %v3116_v1 = vshrl.u32 %v5273_v53, 16  ;;  %v3119_v10 = vshll.u32 %v5273_v53, 16  ;;  %v2961_v27 = vrot.slane %v2959_v22, 5 }
 0x354   : > { %v2956_v17 = vor.u32 %v2955_v47, %v2952_v42  ;;  %4666 = vmatprep.mubr.bf16.mxu0 %v5317_v51  ;;  %v5258_v60 = vcombine.high %v8241_v16, %v8241_v16  ;;  %v5260_v15 = vcombine.high %v8245_v18, %v8245_v18  ;;  %v3125_v41 = vshll.u32 %v5274_v7, 16 }
 0x355   : > { %v8272_v37 = vsel %vm7490_vm2, %v2943_v56, %v2947_v2  ;;  %v3118_v32 = vrot.slane %v3116_v1, 4  ;;  %v3121_v5 = vrot.slane %v3119_v10, 5  ;;  %v2964_v13 = vshrl.u32 %v5257_v52, 16 }
 0x356   : > { %v2957_v24 = vrot.slane %v2956_v17, 4  ;;  %v2967_v30 = vshll.u32 %v5257_v52, 16  ;;  %v2973_v53 = vshll.u32 %v5258_v60, 16  ;;  %v3127_v3 = vrot.slane %v3125_v41, 5  ;;  %v6076_v52 = vld [vmem:[%s8523_s6 + $0x300] sm:$0xff]  }
 0x357   : > { %v3122_v42 = vor.u32 %v3121_v5, %v3118_v32  ;;  %v2978_v55 = vshrl.u32 %v5259_v29, 16  ;;  %v2981_v35 = vshll.u32 %v5259_v29, 16  ;;  %v8687_v47 = vrot.slane %v7617_v8, 5  ;;  %v2130_v32 = vld [vmem:[%s7478_s26 + $0xb8] sm:$0xff] }
 0x358   : > { %v8283_v2 = vsel %vm7490_vm2, %v2957_v24, %v2961_v27  ;;  %v2966_v51 = vrot.slane %v2964_v13, 4  ;;  %v2969_v56 = vrot.slane %v2967_v30, 5  ;;  %v2975_v17 = vrot.slane %v2973_v53, 5  ;;  %v2138_v24 = vld [vmem:[%s7478_s26 + $0xf8] sm:$0xff] }
 0x359   : > { %v8279_v22 = vsel %vm7490_vm2, %v7641_v43, %v8687_v47  ;;  %v5307_v29 = vcombine.low %v8272_v37, %v8283_v2  ;;  %v3123_v8 = vrot.slane %v3122_v42, 4  ;;  %v2980_v7 = vrot.slane %v2978_v55, 4  ;;  %v6079_v43 = vld [vmem:[%s8523_s6 + $0x348] sm:$0xff]  }
 0x35a   : > { %v2983_v1 = vrot.slane %v2981_v35, 5  ;;  %v2970_v10 = vor.u32 %v2969_v56, %v2966_v51  ;;  %v2987_v27 = vshll.u32 %v5260_v15, 16  ;;  %v5318_v60 = vcombine.low %v7545_v62, %v7661_v46  ;;  %v6080_v15 = vld [vmem:[%s8523_s6 + $0x308] sm:$0xff]   ;;  %v6083_v46 = vld [vmem:[%s8523_s6 + $0x350] sm:$0xff]  }
 0x35b   : > { %4618 = vmatmul.mubr.bf16.gmra.mrb[24].mxu1 %v5307_v29  ;;  %4667 = vmatmul.mubr.bf16.vlgmr.msra.gmra.mrb[32].mxu0 %v5313_v57  ;;  %v8298_v5 = vsel %vm7490_vm2, %v3123_v8, %v3127_v3  ;;  %v2168_v57 = vmul.f32 %v7486_v0, %v2130_v32  ;;  %v2176_v3 = vmul.f32 %v7486_v0, %v2138_v24  ;;  %v6084_v51 = vld [vmem:[%s8523_s6 + $0x310] sm:$0xff]   ;;  %v6092_v24 = vld [vmem:[%s8523_s6 + $0x320] sm:$0xff]  }
 0x35c   : > { %v2984_v41 = vor.u32 %v2983_v1, %v2980_v7  ;;  %5747 = vmatpush3.bf16.msra.mxu0 %v6076_v52  ;;  %v5312_v13 = vcombine.low %v8298_v5, %v8279_v22  ;;  %v2971_v30 = vrot.slane %v2970_v10, 4  ;;  %v2989_v42 = vrot.slane %v2987_v27, 5  ;;  %4674 = vmatprep.mubr.bf16.mxu0 %v5318_v60  ;;  %v6088_v10 = vld [vmem:[%s8523_s6 + $0x318] sm:$0xff]  }
 0x35d   : > { %5748 = vmatprep.subr.bf16.mxu0 %v6079_v43  ;;  %v5314_v35 = vcombine.low %v7589_v31, %v7727_v6  ;;  %v2206_v47 = vadd.f32 %v7503_v34, %v2168_v57  ;;  %v2214_v56 = vadd.f32 %v7503_v34, %v2176_v3  ;;  %v5334_v0 = vcombine.low %v7995_v28, %v8095_v61  ;;  %v6087_v31 = vld [vmem:[%s8523_s6 + $0x358] sm:$0xff]  }
 0x35e   : > { %v2985_v62 = vrot.slane %v2984_v41, 4  ;;  %4625 = vmatprep.mubr.bf16.mxu1 %v5312_v13  ;;  %v8312_v53 = vsel %vm7490_vm2, %v2971_v30, %v2975_v17  ;;  %v5330_v29 = vcombine.low %v8042_v25, %v8144_v49  ;;  %v5319_v6 = vcombine.low %v7664_v36, %v7791_v38  ;;  %v6091_v17 = vld [vmem:[%s8523_s6 + $0x360] sm:$0xff]   ;;  %v6110_v28 = vld [vmem:[%s8523_s6 + $0x3b8] sm:$0xff]  }
 0x35f   : > { %vm2238_vm8 = vcmp.ge.f32.partialorder %v2206_v47, 0.0  ;;  %v2270_v8 = vmul.f32 0.01, %v2206_v47  ;;  %v5341_v7 = vcombine.low %v8058_v44, %v8133_v40  ;;  %vm2246_vm9 = vcmp.ge.f32.partialorder %v2214_v56, 0.0  ;;  %v6086_v41 = vld [vmem:[%s8523_s6 + $0x380] sm:$0xff]   ;;  %v8706_v44 = vld [vmem:[#allocation57_spill] sm:$0xff] }
 0x360   : > { %v8317_v55 = vsel %vm7490_vm2, %v2985_v62, %v2989_v42  ;;  %5749 = vmatpush3.bf16.msra.mxu0 %v6080_v15  ;;  %v2278_v34 = vmul.f32 0.01, %v2214_v56  ;;  %v8688_v43 = vcombine.low %v7608_v33, %v7621_v45  ;;  %v5315_v32 = vcombine.low %v7731_v63, %v7839_v14  ;;  %v6089_v42 = vld [vmem:[%s8523_s6 + $0x3c8] sm:$0xff]  }
 0x361   : > { %v5308_v52 = vcombine.low %v8312_v53, %v8317_v55  ;;  %5750 = vmatprep.subr.bf16.mxu0 %v6083_v46  ;;  %v2302_v1 = vsel %vm2238_vm8, %v2206_v47, %v2270_v8  ;;  %v5326_v13 = vcombine.low %v7719_v21, %v7822_v58  ;;  %v6095_v46 = vld [vmem:[%s8523_s6 + $0x368] sm:$0xff]   ;;  %v8689_v3 = vcombine.low %v7658_v59, %v7754_v39  ;;  %v6093_v59 = vld [vmem:[%s8523_s6 + $0x3d0] sm:$0xff]   ;;  %v8691_v8 = vld [vmem:[#allocation43_spill] sm:$0xff] }
 0x362   : > { %v2334_v36 = vpack.c.bf16 %v2302_v1, %v2302_v1  ;;  %v2310_v38 = vsel %vm2246_vm9, %v2214_v56, %v2278_v34  ;;  %v6090_v47 = vld [vmem:[%s8523_s6 + $0x388] sm:$0xff]   ;;  %v5331_v61 = vcombine.low %v8148_v4, %v8241_v16  ;;  %v8703_v49 = vmov 0  }
 0x363   : > { %4626 = vmatmul.mubr.bf16.gmra.mrb[28].mxu1 %v5308_v52  ;;  %4675 = vmatmul.mubr.bf16.gmra.mrb[36].mxu0 %v5314_v35  ;;  %v2342_v27 = vpack.c.bf16 %v2310_v38, %v2310_v38  ;;  %v6096_v52 = vld [vmem:[%s8523_s6 + $0x328] sm:$0xff]   ;;  %v5338_v40 = vcombine.low %v8706_v44, %v8272_v37  ;;  %v5343_v16 = vcombine.low %v8251_v11, %v8298_v5  ;;  %v6113_v5 = vld [vmem:[%s6263_s28 + $0x10] sm:$0xff]  }
 0x364   : > { %5751 = vmatpush3.bf16.msra.mxu0 %v6084_v51  ;;  %4731 = vmatprep.mubr.bf16.mxu1 %v8688_v43  ;;  %v2443_v60 = vsel %vm2427_vm3, %v2334_v36, 0  ;;  %v6099_v51 = vld [vmem:[%s8523_s6 + $0x370] sm:$0xff]   ;;  %v8692_v1 = vld [vmem:[#allocation44_spill] sm:$0xff] }
 0x365   : > { %5752 = vmatprep.subr.bf16.mxu0 %v6087_v31  ;;  %4682 = vmatprep.mubr.bf16.mxu0 %v5319_v6  ;;  %v5279_v33 = vcombine.low %v2443_v60, %v2443_v60  ;;  %v2400_v45 = vshrl.u32 %v2342_v27, 16  ;;  %v2403_v30 = vshll.u32 %v2342_v27, 16  ;;  %v5280_v63 = vcombine.high %v2443_v60, %v2443_v60  ;;  %v8690_v6 = vld [vmem:[#allocation46_spill] sm:$0xff]  ;;  %v8707_v4 = vld [vmem:[#allocation40_spill] sm:$0xff]  ;;  %v8708_v37 = vld [vmem:[#allocation41_spill] sm:$0xff] }
 0x366   : > { %v5320_v57 = vcombine.low %v7795_v9, %v2443_v60  ;;  %v5322_v34 = vcombine.low %v8691_v8, %v8690_v6  ;;  %v6097_v27 = vld [vmem:[%s8523_s6 + $0x3d8] sm:$0xff]   ;;  %v8693_v60 = vld [vmem:[#allocation45_spill] sm:$0xff] }
 0x367   : > { %v3168_v14 = vshrl.u32 %v5279_v33, 16  ;;  %v3171_v15 = vshll.u32 %v5279_v33, 16  ;;  %v2402_v62 = vrot.slane %v2400_v45, 7  ;;  %v3177_v39 = vshll.u32 %v5280_v63, 16  ;;  %v6105_v6 = vld [vmem:[%s8523_s6 + $0x3e8] sm:$0xff]  }
 0x368   : > { %5753 = vmatpush3.bf16.msra.mxu0 %v6088_v10  ;;  %v6094_v10 = vld [vmem:[%s8523_s6 + $0x390] sm:$0xff]  }
 0x369   : > { %5754 = vmatprep.subr.bf16.mxu0 %v6091_v17  ;;  %v3170_v21 = vrot.slane %v3168_v14, 4  ;;  %v3173_v58 = vrot.slane %v3171_v15, 5  ;;  %v2405_v35 = vor.u32 %v2403_v30, %v2402_v62  ;;  %v6100_v17 = vld [vmem:[%s8523_s6 + $0x330] sm:$0xff]   ;;  %v3179_v45 = vrot.slane %v3177_v39, 5  ;;  %v6098_v14 = vld [vmem:[%s8523_s6 + $0x398] sm:$0xff]   ;;  %v6102_v39 = vld [vmem:[%s8523_s6 + $0x3a0] sm:$0xff]  }
 0x36a   : > { %v8694_v30 = vld [vmem:[#allocation53_spill] sm:$0xff] }
 0x36b   : > { %4732 = vmatmul.mubr.bf16.vlgmr.msra.gmra.mrb[32].mxu1 %v8689_v3  ;;  %4683 = vmatmul.mubr.bf16.gmra.mrb[40].mxu0 %v5315_v32  ;;  %v2426_v9 = vsel %vm7437_vm15, 0, %v2405_v35  ;;  %v3174_v56 = vor.u32 %v3173_v58, %v3170_v21  ;;  %v5327_v32 = vcombine.low %v8693_v60, %v7927_v26  ;;  %v6104_v26 = vld [vmem:[%s8523_s6 + $0x338] sm:$0xff]   ;;  %v4902_v3 = vld [vmem:[%s8525_s8] sm:$0x3]  ;;  %vm4943_vm15 = vcmask 1041408  }
 0x36c   : > { %5787 = vmatpush3.bf16.msra.mxu1 %v6086_v41  ;;  %5755 = vmatpush3.bf16.msra.mxu0 %v6092_v24  ;;  %v5277_v31 = vcombine.low %v2426_v9, %v2426_v9  ;;  %v5316_v43 = vcombine.low %v8692_v1, %v2426_v9  ;;  %v5278_v19 = vcombine.high %v2426_v9, %v2426_v9  ;;  %v8696_v21 = vld [vmem:[#allocation51_spill] sm:$0xff]  ;;  %v8700_v9 = vld [vmem:[#allocation50_spill] sm:$0xff]  ;;  %v4945_v8 = vsel %vm4943_vm15, %v4902_v3, 0 }
 0x36d   : > { %5788 = vmatprep.subr.bf16.mxu1 %v6089_v42  ;;  %4739 = vmatprep.mubr.bf16.mxu1 %v5326_v13  ;;  %v3175_v33 = vrot.slane %v3174_v56, 4  ;;  %v6103_v13 = vld [vmem:[%s8523_s6 + $0x378] sm:$0xff]   ;;  %v8695_v42 = vld [vmem:[#allocation48_spill] sm:$0xff] }
 0x36e   : > { %5756 = vmatprep.subr.bf16.mxu0 %v6095_v46  ;;  %4690 = vmatprep.mubr.bf16.mxu0 %v5320_v57  ;;  %v3149_v36 = vshrl.u32 %v5277_v31, 16  ;;  %v3152_v38 = vshll.u32 %v5277_v31, 16  ;;  %v5333_v63 = vcombine.low %v8695_v42, %v8694_v30  ;;  %v3158_v15 = vshll.u32 %v5278_v19, 16  ;;  %v6101_v46 = vld [vmem:[%s8523_s6 + $0x3e0] sm:$0xff]  }
 0x36f   : > { %v3180_v57 = vsel %vm7490_vm2, %v3175_v33, %v3179_v45  ;;  %v8697_v58 = vld [vmem:[#allocation47_spill] sm:$0xff] }
 0x370   : > { %5789 = vmatpush3.bf16.msra.mxu1 %v6090_v47  ;;  %5757 = vmatpush3.bf16.msra.mxu0 %v6096_v52  ;;  %v3151_v41 = vrot.slane %v3149_v36, 4  ;;  %v3154_v24 = vrot.slane %v3152_v38, 5  ;;  %v5323_v35 = vcombine.low %v8697_v58, %v8696_v21  ;;  %v8698_v47 = vld [vmem:[#allocation54_spill] sm:$0xff]  ;;  %v8699_v52 = vld [vmem:[#allocation49_spill] sm:$0xff]  ;;  %v3160_v31 = vrot.slane %v3158_v15, 5 }
 0x371   : > { %5790 = vmatprep.subr.bf16.mxu1 %v6093_v59  ;;  %5758 = vmatprep.subr.bf16.mxu0 %v6099_v51  ;;  %v5329_v59 = vcombine.low %v8699_v52, %v8698_v47  ;;  %v5328_v51 = vcombine.low %v8700_v9, %v3180_v57  ;;  %v6108_v36 = vld [vmem:[%s8523_s6 + $0x3b0] sm:$0xff]   ;;  %v5335_v38 = vcombine.low %v8108_v12, %v8209_v48  ;;  %v8702_v12 = vld [vmem:[#allocation56_spill] sm:$0xff] }
 0x372   : > { %v3155_v62 = vor.u32 %v3154_v24, %v3151_v41  ;;  %v5342_v25 = vcombine.low %v8702_v12, %v8237_v20  ;;  %v5336_v48 = vcombine.low %v7571_v50, %v8703_v49  ;;  %v5332_v20 = vcombine.low %v8245_v18, %v8707_v4  ;;  %v6111_v50 = vld [vmem:[%s6263_s28] sm:$0xff]   ;;  %v8709_v18 = vld [vmem:[#allocation42_spill] sm:$0xff] }
 0x373   : > { %4740 = vmatmul.mubr.bf16.gmra.mrb[36].mxu1 %v5322_v34  ;;  %4691 = vmatmul.mubr.bf16.gmra.mrb[44].mxu0 %v5316_v43  ;;  %v6106_v34 = vld [vmem:[%s8523_s6 + $0x3a8] sm:$0xff]   ;;  %v6107_v43 = vld [vmem:[%s8523_s6 + $0x3f0] sm:$0xff]   ;;  %v5340_v11 = vcombine.low %v8317_v55, %v8709_v18  ;;  %v5345_v55 = vld [vmem:[%s8524_s7] ss:$0 sm:$0xff] }
 0x374   : > { %5791 = vmatpush3.bf16.msra.mxu1 %v6094_v10  ;;  %5759 = vmatpush3.bf16.msra.mxu0 %v6100_v17  ;;  %v3156_v56 = vrot.slane %v3155_v62, 4  ;;  %v8701_v10 = vld [vmem:[#allocation52_spill] sm:$0xff]  ;;  %v5344_v17 = vcombine.low %v8279_v22, %v8708_v37 }
 0x375   : > { %5792 = vmatprep.subr.bf16.mxu1 %v6097_v27  ;;  %4747 = vmatprep.mubr.bf16.mxu1 %v5327_v32 }
 0x376   : > { %5760 = vmatprep.subr.bf16.mxu0 %v6103_v13  ;;  %4796 = vmatprep.mubr.bf16.mxu0 %v5333_v63  ;;  %v3161_v1 = vsel %vm7490_vm2, %v3156_v56, %v3160_v31  ;;  %vm4930_vm2 = vcmask 31744  }
 0x377   : > { %v5324_v19 = vcombine.low %v8701_v10, %v3161_v1 }
 0x378   : > { %5793 = vmatpush3.bf16.msra.mxu1 %v6098_v14  ;;  %5761 = vmatpush3.bf16.msra.mxu0 %v6104_v26 }
 0x379   : > { %5794 = vmatprep.subr.bf16.mxu1 %v6101_v46  ;;  %5889 = vmatprep.subr.msk.bf16.mxu0 %vm4943_vm15, %v4902_v3 }
 0x37b   : > { %4748 = vmatmul.mubr.bf16.gmra.mrb[40].mxu1 %v5323_v35  ;;  %4797 = vmatmul.mubr.bf16.vlgmr.msra.gmra.mrb[48].mxu0 %v5329_v59 }
 0x37c   : > { %5795 = vmatpush3.bf16.msra.mxu1 %v6102_v39  ;;  %4755 = vmatprep.mubr.bf16.mxu1 %v5328_v51 }
 0x37d   : > { %5796 = vmatprep.subr.bf16.mxu1 %v6105_v6  ;;  %4804 = vmatprep.mubr.bf16.mxu0 %v5334_v0  ;;  %v8704_v0 = vld [vmem:[#allocation55_spill] sm:$0xff] }
 0x37e   : > { %5870 = vmatpush3.bf16.msra.mxu0 %v4945_v8 }
 0x380   : > { %5797 = vmatpush3.bf16.msra.mxu1 %v6106_v34 }
 0x381   : > { %5798 = vmatprep.subr.bf16.mxu1 %v6107_v43 }
 0x383   : > { %4756 = vmatmul.mubr.bf16.gmra.mrb[44].mxu1 %v5324_v19  ;;  %4805 = vmatmul.mubr.bf16.gmra.mrb[52].mxu0 %v5330_v29  ;;  %v8705_v29 = vcombine.low %v8704_v0, %v8189_v54  ;;  %v5339_v54 = vcombine.low %v8283_v2, %v8312_v53  ;;  %v6114_v53 = vld [vmem:[%s6263_s28 + $0x18] sm:$0xff]  }
 0x384   : > { %5799 = vmatpush3.bf16.msra.mxu1 %v6108_v36  ;;  %4861 = vmatprep.mubr.bf16.mxu1 %v5341_v7  ;;  %v6112_v7 = vld [vmem:[%s6263_s28 + $0x8] sm:$0xff]  }
 0x385   : > { %5800 = vmatprep.subr.bf16.mxu1 %v6109_v23  ;;  %4812 = vmatprep.mubr.bf16.mxu0 %v5335_v38 }
 0x388   : > { %5801 = vmatpush3.bf16.msra.mxu1 %v6110_v28 }
 0x389   : > { %5890 = vmatprep.subr.msk.bf16.mxu1 %vm4943_vm15, %v4902_v3 }
 0x38b   : > { %4862 = vmatmul.mubr.bf16.vlgmr.msra.gmra.mrb[48].mxu1 %v8705_v29  ;;  %4813 = vmatmul.mubr.bf16.gmra.mrb[56].mxu0 %v5331_v61 }
 0x38c   : > { %5886 = vmatpush3.bf16.msra.mxu1 %v4945_v8  ;;  %4869 = vmatprep.mubr.bf16.mxu1 %v5342_v25 }
 0x38d   : > { %4820 = vmatprep.mubr.bf16.mxu0 %v5336_v48 }
 0x393   : > { %4870 = vmatmul.mubr.bf16.gmra.mrb[52].mxu1 %v5338_v40  ;;  %4821 = vmatmul.mubr.bf16.gmra.mrb[60].mxu0 %v5332_v20 }
 0x394   : > { %4877 = vmatprep.mubr.bf16.mxu1 %v5343_v16  ;;  %5871 = vmatprep.mubr.msk.bf16.mxu0 %vm4930_vm2, %v6111_v50 }
 0x39b   : > { %4878 = vmatmul.mubr.bf16.gmra.mrb[56].mxu1 %v5339_v54  ;;  %5872 = vmatmul.mubr.msk.bf16.vlgmr.msra.gmra.mrb[64].mxu0 %vm4930_vm2, %v6112_v7 }
 0x39c   : > { %4885 = vmatprep.mubr.bf16.mxu1 %v5344_v17 }
 0x3a3   : > { %4886 = vmatmul.mubr.bf16.gmra.mrb[60].mxu1 %v5340_v11 }
 0x3a4   : > { %v5522_v27 = vpop.f32.mrb[0].mxu0  ;;  %5875 = vmatprep.mubr.msk.bf16.mxu1 %vm4930_vm2, %v6113_v5 }
 0x3a5   : > { %v5523_v60 = vpop.f32.mrb[1].mxu0 }
 0x3a6   : > { %v5524_v32 = vadd.f32 %v5523_v60, %v5522_v27  ;;  %v5525_v33 = vpop.f32.mrb[2].mxu0 }
 0x3a7   : > { %v5526_v2 = vpop.f32.mrb[3].mxu0 }
 0x3a8   : > { %v5527_v45 = vadd.f32 %v5526_v2, %v5525_v33  ;;  %v4409_v63 = vadd.f32 %v5524_v32, %v5345_v55 }
 0x3aa   : > { %v4412_v26 = vadd.f32 %v5527_v45, %v5345_v55 }
 0x3ab   : > { %5876 = vmatmul.mubr.msk.bf16.vlgmr.msra.gmra.mrb[64].mxu1 %vm4930_vm2, %v6114_v53 }
 0x3ac   : > { %v5528_v22 = vpop.f32.mrb[4].mxu0 }
 0x3ad   : > { %v5529_v41 = vpop.f32.mrb[5].mxu0 }
 0x3ae   : > { %v5530_v24 = vadd.f32 %v5529_v41, %v5528_v22  ;;  %v5531_v13 = vpop.f32.mrb[6].mxu0 }
 0x3af   : > { %v5532_v30 = vpop.f32.mrb[7].mxu0 }
 0x3b0   : > { %v5533_v42 = vadd.f32 %v5532_v30, %v5531_v13  ;;  %v4417_v51 = vadd.f32 %v5530_v24, %v5345_v55 }
 0x3b2   : > { %v4420_v6 = vadd.f32 %v5533_v42, %v5345_v55 }
 0x3b6   : > { %v5562_v14 = vpop.f32.mrb[0].mxu1 }
 0x3b7   : > { %v5563_v15 = vpop.f32.mrb[1].mxu1 }
 0x3b8   : > { %v5564_v62 = vadd.f32 %v5563_v15, %v5562_v14  ;;  %v5565_v46 = vpop.f32.mrb[2].mxu1 }
 0x3b9   : > { %v5566_v57 = vpop.f32.mrb[3].mxu1 }
 0x3ba   : > { %v4474_v3 = vadd.f32 %v5564_v62, %v4409_v63  ;;  %v5567_v21 = vadd.f32 %v5566_v57, %v5565_v46 }
 0x3bc   : > { %v4477_v58 = vadd.f32 %v5567_v21, %v4412_v26 }
 0x3c1   : > { %v5534_v35 = vpop.f32.mrb[8].mxu0 }
 0x3c2   : > { %v5535_v47 = vpop.f32.mrb[9].mxu0 }
 0x3c3   : > { %v5536_v52 = vadd.f32 %v5535_v47, %v5534_v35  ;;  %v5537_v59 = vpop.f32.mrb[10].mxu0 }
 0x3c4   : > { %v5538_v39 = vpop.f32.mrb[11].mxu0 }
 0x3c5   : > { %v5539_v9 = vadd.f32 %v5538_v39, %v5537_v59  ;;  %v4425_v25 = vadd.f32 %v5536_v52, %v5345_v55 }
 0x3c6   : > { %v5568_v56 = vpop.f32.mrb[4].mxu1 }
 0x3c7   : > { %v5569_v31 = vpop.f32.mrb[5].mxu1  ;;  %v4428_v0 = vadd.f32 %v5539_v9, %v5345_v55 }
 0x3c8   : > { %v5570_v8 = vadd.f32 %v5569_v31, %v5568_v56  ;;  %v5571_v34 = vpop.f32.mrb[6].mxu1 }
 0x3c9   : > { %v5572_v1 = vpop.f32.mrb[7].mxu1 }
 0x3ca   : > { %v4482_v43 = vadd.f32 %v5570_v8, %v4417_v51  ;;  %v5573_v10 = vadd.f32 %v5572_v1, %v5571_v34 }
 0x3cc   : > { %v4485_v19 = vadd.f32 %v5573_v10, %v4420_v6 }
 0x3d3   : > { %v5540_v36 = vpop.f32.mrb[12].mxu0 }
 0x3d4   : > { %v5541_v23 = vpop.f32.mrb[13].mxu0 }
 0x3d5   : > { %v5542_v38 = vadd.f32 %v5541_v23, %v5540_v36  ;;  %v5543_v28 = vpop.f32.mrb[14].mxu0 }
 0x3d6   : > { %v5544_v61 = vpop.f32.mrb[15].mxu0 }
 0x3d7   : > { %v5545_v12 = vadd.f32 %v5544_v61, %v5543_v28  ;;  %v4433_v27 = vadd.f32 %v5542_v38, %v5345_v55 }
 0x3d9   : > { %v4436_v33 = vadd.f32 %v5545_v12, %v5345_v55 }
 0x3db   : > { %v5574_v49 = vpop.f32.mrb[8].mxu1 }
 0x3dc   : > { %v5575_v48 = vpop.f32.mrb[9].mxu1 }
 0x3dd   : > { %v5576_v29 = vadd.f32 %v5575_v48, %v5574_v49  ;;  %v5577_v44 = vpop.f32.mrb[10].mxu1 }
 0x3de   : > { %v5578_v40 = vpop.f32.mrb[11].mxu1 }
 0x3df   : > { %v4490_v4 = vadd.f32 %v5576_v29, %v4425_v25  ;;  %v5579_v20 = vadd.f32 %v5578_v40, %v5577_v44 }
 0x3e1   : > { %v4493_v16 = vadd.f32 %v5579_v20, %v4428_v0 }
 0x3e7   : > { %v5602_v50 = vpop.f32.mrb[16].mxu0 }
 0x3e8   : > { %v5603_v54 = vpop.f32.mrb[17].mxu0 }
 0x3e9   : > { %v5604_v7 = vadd.f32 %v5603_v54, %v5602_v50  ;;  %v5605_v37 = vpop.f32.mrb[18].mxu0 }
 0x3ea   : > { %v5606_v17 = vpop.f32.mrb[19].mxu0 }
 0x3eb   : > { %v4539_v18 = vadd.f32 %v5604_v7, %v4474_v3  ;;  %v5607_v11 = vadd.f32 %v5606_v17, %v5605_v37 }
 0x3ed   : > { %v4542_v5 = vadd.f32 %v5607_v11, %v4477_v58 }
 0x3f3   : > { %v5580_v60 = vpop.f32.mrb[12].mxu1 }
 0x3f4   : > { %v5581_v32 = vpop.f32.mrb[13].mxu1 }
 0x3f5   : > { %v5582_v2 = vadd.f32 %v5581_v32, %v5580_v60  ;;  %v5583_v53 = vpop.f32.mrb[14].mxu1 }
 0x3f6   : > { %v5584_v45 = vpop.f32.mrb[15].mxu1 }
 0x3f7   : > { %v4498_v22 = vadd.f32 %v5582_v2, %v4433_v27  ;;  %v5585_v41 = vadd.f32 %v5584_v45, %v5583_v53 }
 0x3f9   : > { %v4501_v24 = vadd.f32 %v5585_v41, %v4436_v33 }
 0x400   : > { %v5608_v13 = vpop.f32.mrb[20].mxu0 }
 0x401   : > { %v5609_v30 = vpop.f32.mrb[21].mxu0 }
 0x402   : > { %v5610_v42 = vadd.f32 %v5609_v30, %v5608_v13  ;;  %v5611_v63 = vpop.f32.mrb[22].mxu0 }
 0x403   : > { %v5612_v14 = vpop.f32.mrb[23].mxu0 }
 0x404   : > { %v4547_v15 = vadd.f32 %v5610_v42, %v4482_v43  ;;  %v5613_v26 = vadd.f32 %v5612_v14, %v5611_v63 }
 0x405   : > { %v5642_v46 = vpop.f32.mrb[16].mxu1 }
 0x406   : > { %v4550_v62 = vadd.f32 %v5613_v26, %v4485_v19  ;;  %v5643_v57 = vpop.f32.mrb[17].mxu1 }
 0x407   : > { %v5644_v3 = vadd.f32 %v5643_v57, %v5642_v46  ;;  %v5645_v21 = vpop.f32.mrb[18].mxu1 }
 0x408   : > { %v5646_v58 = vpop.f32.mrb[19].mxu1 }
 0x409   : > { %v4604_v55 = vadd.f32 %v5644_v3, %v4539_v18  ;;  %v5647_v35 = vadd.f32 %v5646_v58, %v5645_v21 }
 0x40b   : > { %v4607_v47 = vadd.f32 %v5647_v35, %v4542_v5 }
 0x412   : > { %v5614_v52 = vpop.f32.mrb[24].mxu0 }
 0x413   : > { %v5615_v59 = vpop.f32.mrb[25].mxu0 }
 0x414   : > { %v5616_v39 = vadd.f32 %v5615_v59, %v5614_v52  ;;  %v5617_v9 = vpop.f32.mrb[26].mxu0 }
 0x415   : > { %v5618_v51 = vpop.f32.mrb[27].mxu0 }
 0x416   : > { %v4555_v56 = vadd.f32 %v5616_v39, %v4490_v4  ;;  %v5619_v31 = vadd.f32 %v5618_v51, %v5617_v9 }
 0x418   : > { %v4558_v6 = vadd.f32 %v5619_v31, %v4493_v16 }
 0x41a   : > { %v5648_v8 = vpop.f32.mrb[20].mxu1 }
 0x41b   : > { %v5649_v34 = vpop.f32.mrb[21].mxu1 }
 0x41c   : > { %v5650_v1 = vadd.f32 %v5649_v34, %v5648_v8  ;;  %v5651_v43 = vpop.f32.mrb[22].mxu1 }
 0x41d   : > { %v5652_v10 = vpop.f32.mrb[23].mxu1 }
 0x41e   : > { %v4612_v19 = vadd.f32 %v5650_v1, %v4547_v15  ;;  %v5653_v36 = vadd.f32 %v5652_v10, %v5651_v43 }
 0x420   : > { %v4615_v23 = vadd.f32 %v5653_v36, %v4550_v62 }
 0x426   : > { %v5620_v38 = vpop.f32.mrb[28].mxu0 }
 0x427   : > { %v5621_v28 = vpop.f32.mrb[29].mxu0 }
 0x428   : > { %v5622_v61 = vadd.f32 %v5621_v28, %v5620_v38  ;;  %v5623_v12 = vpop.f32.mrb[30].mxu0 }
 0x429   : > { %v5624_v25 = vpop.f32.mrb[31].mxu0 }
 0x42a   : > { %v4563_v49 = vadd.f32 %v5622_v61, %v4498_v22  ;;  %v5625_v48 = vadd.f32 %v5624_v25, %v5623_v12 }
 0x42c   : > { %v4566_v0 = vadd.f32 %v5625_v48, %v4501_v24 }
 0x42e   : > { %v5654_v29 = vpop.f32.mrb[24].mxu1  ;;  %v5682_v44 = vpop.f32.mrb[32].mxu0 }
 0x42f   : > { %v5655_v40 = vpop.f32.mrb[25].mxu1  ;;  %v5683_v4 = vpop.f32.mrb[33].mxu0 }
 0x430   : > { %v5656_v20 = vadd.f32 %v5655_v40, %v5654_v29  ;;  %v5657_v16 = vpop.f32.mrb[26].mxu1  ;;  %v5684_v50 = vadd.f32 %v5683_v4, %v5682_v44  ;;  %v5685_v54 = vpop.f32.mrb[34].mxu0 }
 0x431   : > { %v5658_v7 = vpop.f32.mrb[27].mxu1  ;;  %v5686_v37 = vpop.f32.mrb[35].mxu0 }
 0x432   : > { %v4620_v17 = vadd.f32 %v5656_v20, %v4555_v56  ;;  %v5659_v18 = vadd.f32 %v5658_v7, %v5657_v16  ;;  %v4669_v11 = vadd.f32 %v5684_v50, %v4604_v55  ;;  %v5687_v5 = vadd.f32 %v5686_v37, %v5685_v54 }
 0x434   : > { %v4623_v27 = vadd.f32 %v5659_v18, %v4558_v6  ;;  %v4672_v60 = vadd.f32 %v5687_v5, %v4607_v47 }
 0x436   : > { %v5660_v32 = vpop.f32.mrb[28].mxu1  ;;  %v5688_v33 = vpop.f32.mrb[36].mxu0 }
 0x437   : > { %v5661_v2 = vpop.f32.mrb[29].mxu1  ;;  %v5689_v53 = vpop.f32.mrb[37].mxu0 }
 0x438   : > { %v5662_v45 = vadd.f32 %v5661_v2, %v5660_v32  ;;  %v5663_v22 = vpop.f32.mrb[30].mxu1  ;;  %v5690_v41 = vadd.f32 %v5689_v53, %v5688_v33  ;;  %v5691_v24 = vpop.f32.mrb[38].mxu0 }
 0x439   : > { %v5664_v13 = vpop.f32.mrb[31].mxu1  ;;  %v5692_v30 = vpop.f32.mrb[39].mxu0 }
 0x43a   : > { %v4628_v42 = vadd.f32 %v5662_v45, %v4563_v49  ;;  %v5665_v63 = vadd.f32 %v5664_v13, %v5663_v22  ;;  %v4677_v14 = vadd.f32 %v5690_v41, %v4612_v19  ;;  %v5693_v15 = vadd.f32 %v5692_v30, %v5691_v24 }
 0x43c   : > { %v4631_v26 = vadd.f32 %v5665_v63, %v4566_v0  ;;  %v4680_v62 = vadd.f32 %v5693_v15, %v4615_v23 }
 0x43e   : > { %v5722_v46 = vpop.f32.mrb[32].mxu1  ;;  %v5694_v57 = vpop.f32.mrb[40].mxu0 }
 0x43f   : > { %v5723_v3 = vpop.f32.mrb[33].mxu1  ;;  %v5695_v21 = vpop.f32.mrb[41].mxu0 }
 0x440   : > { %v5724_v58 = vadd.f32 %v5723_v3, %v5722_v46  ;;  %v5725_v55 = vpop.f32.mrb[34].mxu1  ;;  %v5696_v35 = vadd.f32 %v5695_v21, %v5694_v57  ;;  %v5697_v47 = vpop.f32.mrb[42].mxu0 }
 0x441   : > { %v5726_v52 = vpop.f32.mrb[35].mxu1  ;;  %v5698_v59 = vpop.f32.mrb[43].mxu0 }
 0x442   : > { %v4734_v39 = vadd.f32 %v5724_v58, %v4669_v11  ;;  %v5727_v9 = vadd.f32 %v5726_v52, %v5725_v55  ;;  %v4685_v51 = vadd.f32 %v5696_v35, %v4620_v17  ;;  %v5699_v56 = vadd.f32 %v5698_v59, %v5697_v47 }
 0x444   : > { %v4737_v31 = vadd.f32 %v5727_v9, %v4672_v60  ;;  %v4688_v6 = vadd.f32 %v5699_v56, %v4623_v27 }
 0x446   : > { %v5728_v8 = vpop.f32.mrb[36].mxu1  ;;  %v5700_v34 = vpop.f32.mrb[44].mxu0 }
 0x447   : > { %v5729_v1 = vpop.f32.mrb[37].mxu1  ;;  %v5701_v43 = vpop.f32.mrb[45].mxu0 }
 0x448   : > { %v5730_v10 = vadd.f32 %v5729_v1, %v5728_v8  ;;  %v5731_v19 = vpop.f32.mrb[38].mxu1  ;;  %v5702_v36 = vadd.f32 %v5701_v43, %v5700_v34  ;;  %v5703_v23 = vpop.f32.mrb[46].mxu0 }
 0x449   : > { %v5732_v38 = vpop.f32.mrb[39].mxu1  ;;  %v5704_v28 = vpop.f32.mrb[47].mxu0 }
 0x44a   : > { %v4742_v61 = vadd.f32 %v5730_v10, %v4677_v14  ;;  %v5733_v12 = vadd.f32 %v5732_v38, %v5731_v19  ;;  %v4693_v25 = vadd.f32 %v5702_v36, %v4628_v42  ;;  %v5705_v49 = vadd.f32 %v5704_v28, %v5703_v23 }
 0x44c   : > { %v4745_v48 = vadd.f32 %v5733_v12, %v4680_v62  ;;  %v4696_v0 = vadd.f32 %v5705_v49, %v4631_v26 }
 0x44e   : > { %v5734_v29 = vpop.f32.mrb[40].mxu1  ;;  %v5762_v44 = vpop.f32.mrb[48].mxu0 }
 0x44f   : > { %v5735_v40 = vpop.f32.mrb[41].mxu1  ;;  %v5763_v4 = vpop.f32.mrb[49].mxu0 }
 0x450   : > { %v5736_v20 = vadd.f32 %v5735_v40, %v5734_v29  ;;  %v5737_v16 = vpop.f32.mrb[42].mxu1  ;;  %v5764_v50 = vadd.f32 %v5763_v4, %v5762_v44  ;;  %v5765_v54 = vpop.f32.mrb[50].mxu0  ;;  %v5474_v29 = vld [vmem:[%s8526_s9] ss:$0 sm:$0xff] }
 0x451   : > { %v5738_v7 = vpop.f32.mrb[43].mxu1  ;;  %v5766_v37 = vpop.f32.mrb[51].mxu0 }
 0x452   : > { %v4750_v17 = vadd.f32 %v5736_v20, %v4685_v51  ;;  %v5739_v18 = vadd.f32 %v5738_v7, %v5737_v16  ;;  %v4799_v11 = vadd.f32 %v5764_v50, %v4734_v39  ;;  %v5767_v5 = vadd.f32 %v5766_v37, %v5765_v54 }
 0x454   : > { %v4753_v27 = vadd.f32 %v5739_v18, %v4688_v6  ;;  %v4802_v60 = vadd.f32 %v5767_v5, %v4737_v31 }
 0x456   : > { %v5740_v32 = vpop.f32.mrb[44].mxu1  ;;  %v5768_v33 = vpop.f32.mrb[52].mxu0 }
 0x457   : > { %v5741_v2 = vpop.f32.mrb[45].mxu1  ;;  %v5769_v53 = vpop.f32.mrb[53].mxu0 }
 0x458   : > { %v5742_v45 = vadd.f32 %v5741_v2, %v5740_v32  ;;  %v5743_v22 = vpop.f32.mrb[46].mxu1  ;;  %v5770_v41 = vadd.f32 %v5769_v53, %v5768_v33  ;;  %v5771_v24 = vpop.f32.mrb[54].mxu0 }
 0x459   : > { %v5744_v13 = vpop.f32.mrb[47].mxu1  ;;  %v5772_v30 = vpop.f32.mrb[55].mxu0 }
 0x45a   : > { %v4758_v42 = vadd.f32 %v5742_v45, %v4693_v25  ;;  %v5745_v63 = vadd.f32 %v5744_v13, %v5743_v22  ;;  %v4807_v14 = vadd.f32 %v5770_v41, %v4742_v61  ;;  %v5773_v15 = vadd.f32 %v5772_v30, %v5771_v24 }
 0x45c   : > { %v4761_v26 = vadd.f32 %v5745_v63, %v4696_v0  ;;  %v4810_v62 = vadd.f32 %v5773_v15, %v4745_v48 }
 0x45e   : > { %v5802_v46 = vpop.f32.mrb[48].mxu1  ;;  %v5774_v57 = vpop.f32.mrb[56].mxu0 }
 0x45f   : > { %v5803_v3 = vpop.f32.mrb[49].mxu1  ;;  %v5775_v21 = vpop.f32.mrb[57].mxu0 }
 0x460   : > { %v5804_v58 = vadd.f32 %v5803_v3, %v5802_v46  ;;  %v5805_v55 = vpop.f32.mrb[50].mxu1  ;;  %v5776_v35 = vadd.f32 %v5775_v21, %v5774_v57  ;;  %v5777_v47 = vpop.f32.mrb[58].mxu0 }
 0x461   : > { %v5806_v52 = vpop.f32.mrb[51].mxu1  ;;  %v5778_v59 = vpop.f32.mrb[59].mxu0 }
 0x462   : > { %v4864_v39 = vadd.f32 %v5804_v58, %v4799_v11  ;;  %v5807_v9 = vadd.f32 %v5806_v52, %v5805_v55  ;;  %v4815_v51 = vadd.f32 %v5776_v35, %v4750_v17  ;;  %v5779_v56 = vadd.f32 %v5778_v59, %v5777_v47 }
 0x464   : > { %v4867_v31 = vadd.f32 %v5807_v9, %v4802_v60  ;;  %v4818_v6 = vadd.f32 %v5779_v56, %v4753_v27 }
 0x466   : > { %v5808_v8 = vpop.f32.mrb[52].mxu1  ;;  %v5780_v34 = vpop.f32.mrb[60].mxu0 }
 0x467   : > { %v5809_v1 = vpop.f32.mrb[53].mxu1  ;;  %v5781_v43 = vpop.f32.mrb[61].mxu0 }
 0x468   : > { %v5810_v10 = vadd.f32 %v5809_v1, %v5808_v8  ;;  %v5811_v19 = vpop.f32.mrb[54].mxu1  ;;  %v5782_v36 = vadd.f32 %v5781_v43, %v5780_v34  ;;  %v5783_v23 = vpop.f32.mrb[62].mxu0 }
 0x469   : > { %v5812_v38 = vpop.f32.mrb[55].mxu1  ;;  %v5784_v28 = vpop.f32.mrb[63].mxu0 }
 0x46a   : > { %v4872_v61 = vadd.f32 %v5810_v10, %v4807_v14  ;;  %v5813_v12 = vadd.f32 %v5812_v38, %v5811_v19  ;;  %v4823_v25 = vadd.f32 %v5782_v36, %v4758_v42  ;;  %v5785_v49 = vadd.f32 %v5784_v28, %v5783_v23 }
 0x46c   : > { %v4875_v48 = vadd.f32 %v5813_v12, %v4810_v62  ;;  %v4826_v0 = vadd.f32 %v5785_v49, %v4761_v26 }
 0x46e   : > { %v5814_v44 = vpop.f32.mrb[56].mxu1  ;;  %v5873_v40 = vpop.f32.mrb[64].mxu0 }
 0x46f   : > { %v5815_v4 = vpop.f32.mrb[57].mxu1  ;;  %v4990_v20 = vadd.f32 %v5873_v40, %v5474_v29  ;;  %v4981_v16 = vpop.f32.mrb[65].mxu0 }
 0x470   : > { %v5816_v50 = vadd.f32 %v5815_v4, %v5814_v44  ;;  %v5817_v54 = vpop.f32.mrb[58].mxu1  ;;  %v4982_v7 = vadd.f32 %v5474_v29, %v4981_v16  ;;  %v5874_v37 = vpop.f32.mrb[66].mxu0 }
 0x471   : > { %v5818_v17 = vpop.f32.mrb[59].mxu1  ;;  %v5014_v18 = vadd.f32 %v4990_v20, %v4872_v61  ;;  %v4993_v11 = vadd.f32 %v5874_v37, %v5474_v29  ;;  %v4984_v5 = vpop.f32.mrb[67].mxu0 }
 0x472   : > { %v4880_v27 = vadd.f32 %v5816_v50, %v4815_v51  ;;  %v5819_v60 = vadd.f32 %v5818_v17, %v5817_v54  ;;  %v5012_v32 = vadd.f32 %v4982_v7, %v4864_v39  ;;  %v4985_v33 = vadd.f32 %v5474_v29, %v4984_v5 }
 0x473   : > { %5022 = vst [vmem:[%s6268_s11 + $0x10] sm:$0xff] %v5014_v18  ;;  %v5015_v2 = vadd.f32 %v4993_v11, %v4875_v48 }
 0x474   : > { %v4883_v53 = vadd.f32 %v5819_v60, %v4818_v6  ;;  %5020 = vst [vmem:[%s6268_s11] sm:$0xff] %v5012_v32  ;;  %v5013_v45 = vadd.f32 %v4985_v33, %v4867_v31 }
 0x475   : > { %5023 = vst [vmem:[%s6268_s11 + $0x18] sm:$0xff] %v5015_v2 }
 0x476   : > { %v5820_v22 = vpop.f32.mrb[60].mxu1  ;;  %5021 = vst [vmem:[%s6268_s11 + $0x8] sm:$0xff] %v5013_v45 }
 0x477   : > { %v5821_v41 = vpop.f32.mrb[61].mxu1 }
 0x478   : > { %v5822_v24 = vadd.f32 %v5821_v41, %v5820_v22  ;;  %v5823_v13 = vpop.f32.mrb[62].mxu1 }
 0x479   : > { %v5824_v30 = vpop.f32.mrb[63].mxu1 }
 0x47a   : > { %v4888_v42 = vadd.f32 %v5822_v24, %v4823_v25  ;;  %v5825_v63 = vadd.f32 %v5824_v30, %v5823_v13 }
 0x47c   : > { %v4891_v14 = vadd.f32 %v5825_v63, %v4826_v0 }
 0x47e   : > { %v5877_v15 = vpop.f32.mrb[64].mxu1 }
 0x47f   : > { %v5006_v26 = vadd.f32 %v5877_v15, %v5474_v29  ;;  %v4997_v62 = vpop.f32.mrb[65].mxu1 }
 0x480   : > { %v4998_v46 = vadd.f32 %v5474_v29, %v4997_v62  ;;  %v5878_v57 = vpop.f32.mrb[66].mxu1 }
 0x481   : > { %v5018_v3 = vadd.f32 %v5006_v26, %v4888_v42  ;;  %v5009_v21 = vadd.f32 %v5878_v57, %v5474_v29  ;;  %v5000_v58 = vpop.f32.mrb[67].mxu1 }
 0x482   : > { %v5016_v55 = vadd.f32 %v4998_v46, %v4880_v27  ;;  %v5001_v35 = vadd.f32 %v5474_v29, %v5000_v58 }
 0x483   : > { %5026 = vst [vmem:[%s6268_s11 + $0x30] sm:$0xff] %v5018_v3  ;;  %v5019_v47 = vadd.f32 %v5009_v21, %v4891_v14 }
 0x484   : > { %5024 = vst [vmem:[%s6268_s11 + $0x20] sm:$0xff] %v5016_v55  ;;  %v5017_v52 = vadd.f32 %v5001_v35, %v4883_v53 }
 0x485   : > { %5027 = vst [vmem:[%s6268_s11 + $0x38] sm:$0xff] %v5019_v47 }
 0x486   : > { %5025 = vst [vmem:[%s6268_s11 + $0x28] sm:$0xff] %v5017_v52 }
 0x487 PF: > { %s20_s17 = sadd.s32 1, %s6155_s17   ;;  %s8710_s27 = sld [smem:[#allocation5_spill]] }
 0x488   : > { %p17_p10 = scmp.ge.s32.totalorder %s20_s17, 6   ;;  %s8711_s13 = smov %s6147_s15 }
 0x489   : > { %s8712_s14 = smov %s6151_s16  ;;  %s8713_s15 = smov %s8716_s18 }
 0x48a   :  { %19 = sbr.rel (!%p17_p10) target bundleno = 3 (0x3), region = 107 }
 0x48d   : > { %s8714_s16 = smov %s8710_s27 }

</bundles_post_ra>
